<compile_context>
chip_gen: v7x
topology: tpu7x:2x2x1
jax: 0.10.0
libtpu: 0.0.40
codegen_flags: <defaults>
</compile_context>

<pallas_src>
import functools
import numpy as np

import jax
import jax.numpy as jnp
from jax import lax
from jax.experimental import pallas as pl
from jax.experimental.pallas import tpu as pltpu

F32 = jnp.float32
BF16 = jnp.bfloat16


# ----------------------------------------------------------------------------
# kernel-side math / data-movement helpers (all static slices / concats)
# ----------------------------------------------------------------------------
def _gelu(x):
    # tanh-approximate GELU (EUP tanh); difference from erf GELU is well
    # within the test tolerance.
    return 0.5 * x * (1.0 + jnp.tanh(0.7978845608028654
                                     * (x + 0.044715 * x * x * x)))


def _layernorm(x, g, b, eps=1e-5):
    mu = jnp.mean(x, axis=-1, keepdims=True)
    var = jnp.mean((x - mu) ** 2, axis=-1, keepdims=True)
    return (x - mu) * lax.rsqrt(var + eps) * g + b


def _roll2d(img, sh, sw):
    """out[r, c] = img[(r + sh) % H, (c + sw) % W]  (static cyclic shift)."""
    H, W, _ = img.shape
    sh %= H
    sw %= W
    if sh:
        img = jnp.concatenate([img[sh:], img[:sh]], axis=0)
    if sw:
        img = jnp.concatenate([img[:, sw:], img[:, :sw]], axis=1)
    return img


def _shift2d_zero(img, dy, dx):
    """out[r, c] = img[r + dy, c + dx], zero outside the image (conv taps)."""
    H, W, ch = img.shape
    if dy > 0:
        img = jnp.concatenate(
            [img[dy:], jnp.zeros((dy, W, ch), img.dtype)], axis=0)
    elif dy < 0:
        img = jnp.concatenate(
            [jnp.zeros((-dy, W, ch), img.dtype), img[:H + dy]], axis=0)
    if dx > 0:
        img = jnp.concatenate(
            [img[:, dx:], jnp.zeros((H, dx, ch), img.dtype)], axis=1)
    elif dx < 0:
        img = jnp.concatenate(
            [jnp.zeros((H, -dx, ch), img.dtype), img[:, :W + dx]], axis=1)
    return img


def _to_windows(img, ws):
    """(H, W, ch) -> (nW, ws*ws, ch); window index = wj * nWh + wi."""
    H, W, ch = img.shape
    nWh, nWw = H // ws, W // ws
    cols = []
    for wj in range(nWw):
        col = img[:, wj * ws:(wj + 1) * ws, :]            # (H, ws, ch)
        cols.append(col.reshape(nWh, ws * ws, ch))
    return jnp.concatenate(cols, axis=0)


def _from_windows(xw, H, W, ws):
    """Inverse of _to_windows: (nW, ws*ws, ch) -> (H, W, ch)."""
    nWh, nWw = H // ws, W // ws
    ch = xw.shape[-1]
    cols = []
    for wj in range(nWw):
        cols.append(xw[wj * nWh:(wj + 1) * nWh].reshape(H, ws, ch))
    return jnp.concatenate(cols, axis=1)


# ----------------------------------------------------------------------------
# fused SwinLayer kernel: grid = (batch, depth); one grid step == one block
# ----------------------------------------------------------------------------
def _swin_layer_kernel(x_ref,
                       n1g_ref, n1b_ref, wqkv_ref, bqkv_ref, relb_ref,
                       pjw_ref, pjb_ref, n2g_ref, n2b_ref,
                       f1w_ref, f1b_ref, dww_ref, dwb_ref, f2w_ref, f2b_ref,
                       amask_ref, cw_ref, cb_ref,
                       o_ref, x_state,
                       *, depth, heads, H, W, ws, ksize):
    f32 = jnp.float32
    C = x_ref.shape[-1]
    HW = H * W
    hd = C // heads
    s_shift = ws // 2
    d = pl.program_id(1)
    shifted = (d % 2) == 1                  # SwinBlock shift schedule

    @pl.when(d == 0)
    def _():
        x_state[...] = x_ref[0].astype(f32)

    x = x_state[...]                        # (HW, C) f32, raster token order

    # ----------------- (shifted) window attention -----------------
    xn = _layernorm(x, n1g_ref[0], n1b_ref[0])
    qkv = (jnp.dot(xn.astype(BF16), wqkv_ref[0], preferred_element_type=f32)
           + bqkv_ref[0])                                        # (HW, 3C)
    qkv_img = qkv.reshape(H, W, 3 * C)
    qkv_img = jnp.where(shifted, _roll2d(qkv_img, s_shift, s_shift), qkv_img)
    qkv_win = _to_windows(qkv_img, ws)                           # (nW, n, 3C)

    mscale = jnp.where(shifted, 1.0, 0.0).astype(f32)
    masked = mscale * amask_ref[...]                             # (nW, n, n)

    heads_out = []
    for h in range(heads):
        q = qkv_win[:, :, h * hd:(h + 1) * hd]
        k = qkv_win[:, :, C + h * hd:C + (h + 1) * hd]
        v = qkv_win[:, :, 2 * C + h * hd:2 * C + (h + 1) * hd]
        s = jnp.einsum('wqd,wkd->wqk', q, k, preferred_element_type=f32)
        s = s + relb_ref[0, h] + masked
        s = s - jnp.max(s, axis=-1, keepdims=True)
        p = jnp.exp(s)
        p = p * pl.reciprocal(jnp.sum(p, axis=-1, keepdims=True), approx=True)
        heads_out.append(jnp.einsum('wqk,wkd->wqd', p, v,
                                    preferred_element_type=f32))
    o_win = jnp.concatenate(heads_out, axis=-1)                  # (nW, n, C)

    attn_img = _from_windows(o_win, H, W, ws)                    # (H, W, C)
    attn_img = jnp.where(shifted,
                         _roll2d(attn_img, H - s_shift, W - s_shift),
                         attn_img)
    attn_tok = attn_img.reshape(HW, C)
    x = (x + jnp.dot(attn_tok.astype(BF16), pjw_ref[0],
                     preferred_element_type=f32) + pjb_ref[0])

    # ----------------- ConvFFN -----------------
    xn2 = _layernorm(x, n2g_ref[0], n2b_ref[0])
    h1 = _gelu(jnp.dot(xn2.astype(BF16), f1w_ref[0],
                       preferred_element_type=f32) + f1b_ref[0])  # (HW, hid)
    hid = h1.shape[-1]
    h1_img = h1.reshape(H, W, hid)
    pad = (ksize - 1) // 2
    dwacc = jnp.zeros((H, W, hid), f32)
    for ki in range(ksize):
        for kj in range(ksize):
            t = ki * ksize + kj
            dwacc = dwacc + (_shift2d_zero(h1_img, ki - pad, kj - pad)
                             * dww_ref[0, t])
    dw = _gelu(dwacc.reshape(HW, hid) + dwb_ref[0])
    x = (x + jnp.dot((h1 + dw).astype(BF16), f2w_ref[0],
                     preferred_element_type=f32) + f2b_ref[0])

    x_state[...] = x

    # -------- final 3x3 conv (im2col matmul) + residual, last depth step ----
    @pl.when(d == depth - 1)
    def _():
        x_img = x.reshape(H, W, C)
        taps = [_shift2d_zero(x_img, ki - 1, kj - 1)
                for ki in range(3) for kj in range(3)]
        patches = jnp.concatenate(taps, axis=-1).reshape(HW, 9 * C)
        y = (jnp.dot(patches.astype(BF16), cw_ref[...],
                     preferred_element_type=f32) + cb_ref[...])
        o_ref[0] = (x_ref[0].astype(f32) + y).astype(o_ref.dtype)


def swin_layer_forward(x_nchw, depth_params, shared_params, *, depth, heads,
                       ws, ksize):
    B, C, H, W = x_nchw.shape
    HW = H * W
    # patch_embed: NCHW -> (B, HW, C) tokens (channels on the lane dim)
    x_tok = x_nchw.reshape(B, C, HW).transpose(0, 2, 1)

    kern = functools.partial(_swin_layer_kernel, depth=depth, heads=heads,
                             H=H, W=W, ws=ws, ksize=ksize)

    def depth_spec(a):
        nrest = a.ndim - 1
        return pl.BlockSpec((1,) + a.shape[1:],
                            lambda b, d, _n=nrest: (d,) + (0,) * _n)

    def shared_spec(a):
        return pl.BlockSpec(a.shape, lambda b, d, _n=a.ndim: (0,) * _n)

    in_specs = ([pl.BlockSpec((1, HW, C), lambda b, d: (b, 0, 0))]
                + [depth_spec(a) for a in depth_params]
                + [shared_spec(a) for a in shared_params])

    out = pl.pallas_call(
        kern,
        out_shape=jax.ShapeDtypeStruct((B, HW, C), x_tok.dtype),
        grid=(B, depth),
        in_specs=in_specs,
        out_specs=pl.BlockSpec((1, HW, C), lambda b, d: (b, 0, 0)),
        scratch_shapes=[pltpu.VMEM((HW, C), jnp.float32)],
        compiler_params=pltpu.CompilerParams(
            dimension_semantics=("parallel", "arbitrary"),
            vmem_limit_bytes=32 * 1024 * 1024),
    )(x_tok, *depth_params, *shared_params)

    # patch_unembed: (B, HW, C) -> NCHW
    return out.transpose(0, 2, 1).reshape(B, C, H, W)


# ----------------------------------------------------------------------------
# one-time host-side parameter preparation
# ----------------------------------------------------------------------------
def compute_rpi(ws):
    coords = np.stack(np.meshgrid(np.arange(ws), np.arange(ws), indexing='ij'))
    coords_flat = coords.reshape(2, -1)
    rel = coords_flat[:, :, None] - coords_flat[:, None, :]
    rel = rel.transpose(1, 2, 0).astype(np.int64)
    rel[:, :, 0] += ws - 1
    rel[:, :, 1] += ws - 1
    rel[:, :, 0] *= 2 * ws - 1
    return rel.sum(-1)                          # (n, n)


def compute_attn_mask(H, W, ws, shift):
    img_mask = np.zeros((1, H, W, 1), np.float32)
    slices = (slice(0, -ws), slice(-ws, -shift), slice(-shift, None))
    cnt = 0
    for hs in slices:
        for wsl in slices:
            img_mask[:, hs, wsl, :] = cnt
            cnt += 1
    mw = img_mask.reshape(1, H // ws, ws, W // ws, ws, 1)
    mw = mw.transpose(0, 1, 3, 2, 4, 5).reshape(-1, ws * ws)
    am = mw[:, None, :] - mw[:, :, None]
    return np.where(am != 0, -100.0, 0.0).astype(np.float32)    # (nW, n, n)


def prep_kernel_params(blocks, conv_w, conv_b, rpi, attn_mask, *, H, W, ws,
                       heads, ksize):
    """Re-parametrize torch-style weights into the stacked layout consumed by
    the fused kernel (scale folded into Wq, rel-pos bias gathered, matmul
    weights in bf16, shift mask shared and re-ordered)."""
    C = blocks[0]['norm1_g'].shape[0]
    hd = C // heads
    scale = hd ** -0.5
    n = ws * ws
    nWh, nWw = H // ws, W // ws

    def stk(xs, dt=F32):
        return jnp.stack([jnp.asarray(a).astype(dt) for a in xs])

    col_scale = jnp.concatenate([jnp.full((C,), scale, F32),
                                 jnp.ones((2 * C,), F32)])

    n1g = stk([b['norm1_g'].reshape(1, C) for b in blocks])
    n1b = stk([b['norm1_b'].reshape(1, C) for b in blocks])
    wqkv = stk([b['wqkv_w'] * col_scale[None, :] for b in blocks], BF16)
    bqkv = stk([(b['wqkv_b'] * col_scale).reshape(1, 3 * C) for b in blocks])
    relb = stk([jnp.transpose(
        b['rpb_table'][rpi.reshape(-1)].reshape(n, n, heads), (2, 0, 1))
        for b in blocks])
    pjw = stk([b['proj_w'] for b in blocks], BF16)
    pjb = stk([b['proj_b'].reshape(1, C) for b in blocks])
    n2g = stk([b['norm2_g'].reshape(1, C) for b in blocks])
    n2b = stk([b['norm2_b'].reshape(1, C) for b in blocks])
    f1w = stk([b['fc1_w'] for b in blocks], BF16)
    f1b = stk([b['fc1_b'].reshape(1, -1) for b in blocks])
    dww = stk([b['dw_w'].reshape(ksize * ksize, 1, -1) for b in blocks])
    dwb = stk([b['dw_b'].reshape(1, -1) for b in blocks])
    f2w = stk([b['fc2_w'] for b in blocks], BF16)
    f2b = stk([b['fc2_b'].reshape(1, C) for b in blocks])

    # shared shift-attention mask, re-ordered to the kernel's (wj-major)
    # window order
    amask = (jnp.asarray(attn_mask, F32)
             .reshape(nWh, nWw, n, n).transpose(1, 0, 2, 3)
             .reshape(nWh * nWw, n, n))
    cw = jnp.asarray(conv_w, F32).reshape(9 * C, C).astype(BF16)   # im2col
    cb = jnp.asarray(conv_b, F32).reshape(1, C)

    depth_params = [n1g, n1b, wqkv, bqkv, relb, pjw, pjb, n2g, n2b,
                    f1w, f1b, dww, dwb, f2w, f2b]
    shared_params = [amask, cw, cb]
    return depth_params, shared_params


# ----------------------------------------------------------------------------
# plain-JAX reference of the same module (correctness cross-check)
# ----------------------------------------------------------------------------
def _ref_layernorm(x, g, b, eps=1e-5):
    mu = jnp.mean(x, axis=-1, keepdims=True)
    var = jnp.mean((x - mu) ** 2, axis=-1, keepdims=True)
    return (x - mu) * lax.rsqrt(var + eps) * g + b


def reference_forward(x_nchw, blocks, conv_w, conv_b, rpi, attn_mask, *, ws,
                      heads, ksize):
    B, C, H, W = x_nchw.shape
    n = ws * ws
    hd = C // heads
    scale = hd ** -0.5
    nWh, nWw = H // ws, W // ws
    x0 = x_nchw
    x = x_nchw.reshape(B, C, H * W).transpose(0, 2, 1)            # (B, N, C)
    for blk in blocks:
        shift = blk['shift']
        shortcut = x
        xn = _ref_layernorm(x, blk['norm1_g'], blk['norm1_b'])
        qkv = xn @ blk['wqkv_w'] + blk['wqkv_b']
        qkv = qkv.reshape(B, H, W, 3 * C)
        if shift > 0:
            qkv = jnp.roll(qkv, (-shift, -shift), axis=(1, 2))
        qkv = qkv.reshape(B, nWh, ws, nWw, ws, 3 * C).transpose(0, 1, 3, 2, 4, 5)
        qkv = qkv.reshape(B * nWh * nWw, n, 3, heads, hd).transpose(2, 0, 3, 1, 4)
        q, k, v = qkv[0] * scale, qkv[1], qkv[2]
        s = jnp.einsum('whqd,whkd->whqk', q, k)
        rel = blk['rpb_table'][rpi.reshape(-1)].reshape(n, n, heads)
        s = s + rel.transpose(2, 0, 1)[None]
        if shift > 0:
            s = s.reshape(B, nWh * nWw, heads, n, n) + attn_mask[None, :, None]
            s = s.reshape(-1, heads, n, n)
        p = jax.nn.softmax(s, axis=-1)
        o = jnp.einsum('whqk,whkd->whqd', p, v).transpose(0, 2, 1, 3)
        o = o.reshape(-1, n, C) @ blk['proj_w'] + blk['proj_b']
        o = o.reshape(B, nWh, nWw, ws, ws, C).transpose(0, 1, 3, 2, 4, 5)
        o = o.reshape(B, H, W, C)
        if shift > 0:
            o = jnp.roll(o, (shift, shift), axis=(1, 2))
        x = shortcut + o.reshape(B, H * W, C)
        # ConvFFN
        xn2 = _ref_layernorm(x, blk['norm2_g'], blk['norm2_b'])
        h1 = jax.nn.gelu(xn2 @ blk['fc1_w'] + blk['fc1_b'], approximate=False)
        hid = h1.shape[-1]
        img = h1.reshape(B, H, W, hid)
        dw = lax.conv_general_dilated(
            img, blk['dw_w'].reshape(ksize, ksize, 1, hid),
            window_strides=(1, 1), padding='SAME',
            dimension_numbers=('NHWC', 'HWIO', 'NHWC'),
            feature_group_count=hid) + blk['dw_b']
        dw = jax.nn.gelu(dw, approximate=False).reshape(B, H * W, hid)
        x = x + ((h1 + dw) @ blk['fc2_w'] + blk['fc2_b'])
    img = x.reshape(B, H, W, C)
    y = lax.conv_general_dilated(
        img, conv_w, (1, 1), 'SAME',
        dimension_numbers=('NHWC', 'HWIO', 'NHWC')) + conv_b
    return x0 + y.transpose(0, 3, 1, 2)


# ----------------------------------------------------------------------------
# main
# ----------------------------------------------------------------------------
if __name__ == "__main__":
    B, dim, H, W = 2, 16, 8, 8
    heads, ws, depth = 4, 4, 2
    mlp_ratio = 2.0
    ksize = 5
    hidden = int(dim * mlp_ratio)

    keys = iter(jax.random.split(jax.random.PRNGKey(0), 64))

    def nrm(shape, std=0.02):
        return jax.random.normal(next(keys), shape, dtype=F32) * std

    blocks = []
    for d in range(depth):
        blocks.append(dict(
            shift=0 if d % 2 == 0 else ws // 2,
            norm1_g=jnp.ones((dim,), F32), norm1_b=jnp.zeros((dim,), F32),
            wqkv_w=nrm((dim, 3 * dim)), wqkv_b=nrm((3 * dim,)),
            rpb_table=nrm(((2 * ws - 1) ** 2, heads)),
            proj_w=nrm((dim, dim)), proj_b=nrm((dim,)),
            norm2_g=jnp.ones((dim,), F32), norm2_b=jnp.zeros((dim,), F32),
            fc1_w=nrm((dim, hidden)), fc1_b=nrm((hidden,)),
            dw_w=nrm((ksize, ksize, hidden)), dw_b=nrm((hidden,)),
            fc2_w=nrm((hidden, dim)), fc2_b=nrm((dim,)),
        ))
    conv_w = nrm((3, 3, dim, dim))
    conv_b = nrm((dim,))

    rpi = compute_rpi(ws)
    attn_mask = compute_attn_mask(H, W, ws, ws // 2)

    depth_params, shared_params = prep_kernel_params(
        blocks, conv_w, conv_b, rpi, attn_mask,
        H=H, W=W, ws=ws, heads=heads, ksize=ksize)

    x = jax.random.normal(next(keys), (B, dim, H, W), dtype=F32)

    out = swin_layer_forward(x, depth_params, shared_params,
                             depth=depth, heads=heads, ws=ws, ksize=ksize)
    out = jax.block_until_ready(out)

    assert out.shape == (B, dim, H, W)
    assert bool(jnp.all(jnp.isfinite(out)))

    # cross-check the fused kernel against a plain-JAX f32 reference
    ref = reference_forward(x, blocks, conv_w, conv_b, rpi, attn_mask,
                            ws=ws, heads=heads, ksize=ksize)
    ref = jax.block_until_ready(ref)
    max_err = float(jnp.max(jnp.abs(out - ref)))
    assert max_err < 5e-2, f"mismatch vs reference: {max_err}"

    print("KERNEL_OK")
</pallas_src>

<mosaic_0001>
module attributes {stable_mosaic.version = 11 : i64} {
  func.func @_swin_layer_kernel(%arg0: i32, %arg1: i32, %arg2: memref<1x64x16xf32, #tpu.memory_space<vmem>>, %arg3: memref<1x1x16xf32, #tpu.memory_space<vmem>>, %arg4: memref<1x1x16xf32, #tpu.memory_space<vmem>>, %arg5: memref<1x16x48xbf16, #tpu.memory_space<vmem>>, %arg6: memref<1x1x48xf32, #tpu.memory_space<vmem>>, %arg7: memref<1x4x16x16xf32, #tpu.memory_space<vmem>>, %arg8: memref<1x16x16xbf16, #tpu.memory_space<vmem>>, %arg9: memref<1x1x16xf32, #tpu.memory_space<vmem>>, %arg10: memref<1x1x16xf32, #tpu.memory_space<vmem>>, %arg11: memref<1x1x16xf32, #tpu.memory_space<vmem>>, %arg12: memref<1x16x32xbf16, #tpu.memory_space<vmem>>, %arg13: memref<1x1x32xf32, #tpu.memory_space<vmem>>, %arg14: memref<1x25x1x32xf32, #tpu.memory_space<vmem>>, %arg15: memref<1x1x32xf32, #tpu.memory_space<vmem>>, %arg16: memref<1x32x16xbf16, #tpu.memory_space<vmem>>, %arg17: memref<1x1x16xf32, #tpu.memory_space<vmem>>, %arg18: memref<4x16x16xf32, #tpu.memory_space<vmem>>, %arg19: memref<144x16xbf16, #tpu.memory_space<vmem>>, %arg20: memref<1x16xf32, #tpu.memory_space<vmem>>, %arg21: memref<1x64x16xf32, #tpu.memory_space<vmem>>, %arg22: memref<64x16xf32, #tpu.memory_space<vmem>>) attributes {dimension_semantics = [#tpu.dimension_semantics<parallel>, #tpu.dimension_semantics<arbitrary>], iteration_bounds = array<i64: 2, 2>, scalar_prefetch = 0 : i64, scratch_operands = 1 : i64, tpu.core_type = #tpu.core_type<tc>, window_params = [{transform_indices = @transform_0, window_bounds = array<i64: 1, 64, 16>}, {transform_indices = @transform_1, window_bounds = array<i64: 1, 1, 16>}, {transform_indices = @transform_2, window_bounds = array<i64: 1, 1, 16>}, {transform_indices = @transform_3, window_bounds = array<i64: 1, 16, 48>}, {transform_indices = @transform_4, window_bounds = array<i64: 1, 1, 48>}, {transform_indices = @transform_5, window_bounds = array<i64: 1, 4, 16, 16>}, {transform_indices = @transform_6, window_bounds = array<i64: 1, 16, 16>}, {transform_indices = @transform_7, window_bounds = array<i64: 1, 1, 16>}, {transform_indices = @transform_8, window_bounds = array<i64: 1, 1, 16>}, {transform_indices = @transform_9, window_bounds = array<i64: 1, 1, 16>}, {transform_indices = @transform_10, window_bounds = array<i64: 1, 16, 32>}, {transform_indices = @transform_11, window_bounds = array<i64: 1, 1, 32>}, {transform_indices = @transform_12, window_bounds = array<i64: 1, 25, 1, 32>}, {transform_indices = @transform_13, window_bounds = array<i64: 1, 1, 32>}, {transform_indices = @transform_14, window_bounds = array<i64: 1, 32, 16>}, {transform_indices = @transform_15, window_bounds = array<i64: 1, 1, 16>}, {pipeline_mode = #tpu.pipeline_mode<synchronous>, transform_indices = @transform_16, window_bounds = array<i64: 4, 16, 16>}, {pipeline_mode = #tpu.pipeline_mode<synchronous>, transform_indices = @transform_17, window_bounds = array<i64: 144, 16>}, {pipeline_mode = #tpu.pipeline_mode<synchronous>, transform_indices = @transform_18, window_bounds = array<i64: 1, 16>}, {transform_indices = @transform_19, window_bounds = array<i64: 1, 64, 16>}]} {
    %c2_i32 = arith.constant 2 : i32
    %c0_i32 = arith.constant 0 : i32
    %0 = arith.cmpi eq, %c2_i32, %c0_i32 : i32
    %c1_i32 = arith.constant 1 : i32
    %1 = arith.select %0, %c1_i32, %c2_i32 : i32
    %2 = arith.remsi %arg1, %1 : i32
    %c0_i32_0 = arith.constant 0 : i32
    %3 = arith.cmpi ne, %2, %c0_i32_0 : i32
    %c0_i32_1 = arith.constant 0 : i32
    %4 = arith.cmpi slt, %2, %c0_i32_1 : i32
    %c0_i32_2 = arith.constant 0 : i32
    %5 = arith.cmpi slt, %1, %c0_i32_2 : i32
    %6 = arith.xori %4, %5 : i1
    %7 = arith.andi %6, %3 : i1
    %8 = arith.addi %2, %1 : i32
    %9 = arith.select %7, %8, %2 : i32
    %c1_i32_3 = arith.constant 1 : i32
    %10 = arith.cmpi eq, %9, %c1_i32_3 : i32
    %c0_i32_4 = arith.constant 0 : i32
    %11 = arith.cmpi eq, %arg1, %c0_i32_4 : i32
    %12 = arith.extui %11 : i1 to i32
    %c0_i32_5 = arith.constant 0 : i32
    %13 = arith.cmpi ne, %12, %c0_i32_5 : i32
    scf.if %13 {
      %c0_225 = arith.constant 0 : index
      %c0_226 = arith.constant 0 : index
      %c0_227 = arith.constant 0 : index
      %524 = vector.load %arg2[%c0_225, %c0_226, %c0_227] : memref<1x64x16xf32, #tpu.memory_space<vmem>>, vector<1x64x16xf32>
      %525 = vector.shape_cast %524 : vector<1x64x16xf32> to vector<64x16xf32>
      %c0_228 = arith.constant 0 : index
      %c0_229 = arith.constant 0 : index
      %526 = vector.load %arg22[%c0_228, %c0_229] : memref<64x16xf32, #tpu.memory_space<vmem>>, vector<64x16xf32>
      tpu.vector_store %arg22[%c0_228, %c0_229], %525 {strides = array<i32>} : memref<64x16xf32, #tpu.memory_space<vmem>>, vector<64x16xf32>,
    } else {
    }
    %c0 = arith.constant 0 : index
    %c0_6 = arith.constant 0 : index
    %14 = vector.load %arg22[%c0, %c0_6] : memref<64x16xf32, #tpu.memory_space<vmem>>, vector<64x16xf32>
    %c0_7 = arith.constant 0 : index
    %c0_8 = arith.constant 0 : index
    %c0_9 = arith.constant 0 : index
    %15 = vector.load %arg3[%c0_7, %c0_8, %c0_9] : memref<1x1x16xf32, #tpu.memory_space<vmem>>, vector<1x1x16xf32>
    %16 = vector.shape_cast %15 : vector<1x1x16xf32> to vector<1x16xf32>
    %c0_10 = arith.constant 0 : index
    %c0_11 = arith.constant 0 : index
    %c0_12 = arith.constant 0 : index
    %17 = vector.load %arg4[%c0_10, %c0_11, %c0_12] : memref<1x1x16xf32, #tpu.memory_space<vmem>>, vector<1x1x16xf32>
    %18 = vector.shape_cast %17 : vector<1x1x16xf32> to vector<1x16xf32>
    %cst = arith.constant dense<0.000000e+00> : vector<64xf32>
    %19 = vector.multi_reduction <add>, %14, %cst [1] : vector<64x16xf32> to vector<64xf32>
    %20 = vector.shape_cast %19 : vector<64xf32> to vector<64x1xf32>
    %cst_13 = arith.constant 1.600000e+01 : f32
    %21 = vector.broadcast %cst_13 : f32 to vector<64x1xf32>
    %22 = arith.divf %20, %21 : vector<64x1xf32>
    %23 = vector.broadcast %22 : vector<64x1xf32> to vector<64x16xf32>
    %24 = arith.subf %14, %23 : vector<64x16xf32>
    %25 = arith.mulf %24, %24 : vector<64x16xf32>
    %cst_14 = arith.constant dense<0.000000e+00> : vector<64xf32>
    %26 = vector.multi_reduction <add>, %25, %cst_14 [1] : vector<64x16xf32> to vector<64xf32>
    %27 = vector.shape_cast %26 : vector<64xf32> to vector<64x1xf32>
    %cst_15 = arith.constant 1.600000e+01 : f32
    %28 = vector.broadcast %cst_15 : f32 to vector<64x1xf32>
    %29 = arith.divf %27, %28 : vector<64x1xf32>
    %30 = vector.broadcast %22 : vector<64x1xf32> to vector<64x16xf32>
    %31 = arith.subf %14, %30 : vector<64x16xf32>
    %cst_16 = arith.constant 9.99999974E-6 : f32
    %32 = vector.broadcast %cst_16 : f32 to vector<64x1xf32>
    %33 = arith.addf %29, %32 : vector<64x1xf32>
    %34 = math.rsqrt %33 : vector<64x1xf32>
    %35 = vector.broadcast %34 : vector<64x1xf32> to vector<64x16xf32>
    %36 = arith.mulf %31, %35 : vector<64x16xf32>
    %37 = vector.broadcast %16 : vector<1x16xf32> to vector<64x16xf32>
    %38 = arith.mulf %36, %37 : vector<64x16xf32>
    %39 = vector.broadcast %18 : vector<1x16xf32> to vector<64x16xf32>
    %40 = arith.addf %38, %39 : vector<64x16xf32>
    %41 = arith.truncf %40 : vector<64x16xf32> to vector<64x16xbf16>
    %c0_17 = arith.constant 0 : index
    %c0_18 = arith.constant 0 : index
    %c0_19 = arith.constant 0 : index
    %42 = vector.load %arg5[%c0_17, %c0_18, %c0_19] : memref<1x16x48xbf16, #tpu.memory_space<vmem>>, vector<1x16x48xbf16>
    %43 = vector.shape_cast %42 : vector<1x16x48xbf16> to vector<16x48xbf16>
    %cst_20 = arith.constant dense<0.000000e+00> : vector<64x48xf32>
    %44 = tpu.matmul %41, %43, %cst_20 {dimension_numbers = #tpu.dot_dimension_numbers<[1], [0], [0], [1], [0, 0, 1, 1], [], []>} : vector<64x16xbf16>, vector<16x48xbf16>, vector<64x48xf32> -> vector<64x48xf32>
    %c0_21 = arith.constant 0 : index
    %c0_22 = arith.constant 0 : index
    %c0_23 = arith.constant 0 : index
    %45 = vector.load %arg6[%c0_21, %c0_22, %c0_23] : memref<1x1x48xf32, #tpu.memory_space<vmem>>, vector<1x1x48xf32>
    %46 = vector.shape_cast %45 : vector<1x1x48xf32> to vector<1x48xf32>
    %47 = vector.broadcast %46 : vector<1x48xf32> to vector<64x48xf32>
    %48 = arith.addf %44, %47 : vector<64x48xf32>
    %49 = vector.shape_cast %48 : vector<64x48xf32> to vector<8x8x48xf32>
    %50 = vector.extract_strided_slice %49 {offsets = [2, 0, 0], sizes = [6, 8, 48], strides = [1, 1, 1]} : vector<8x8x48xf32> to vector<6x8x48xf32>
    %51 = vector.extract_strided_slice %49 {offsets = [0, 0, 0], sizes = [2, 8, 48], strides = [1, 1, 1]} : vector<8x8x48xf32> to vector<2x8x48xf32>
    %52 = tpu.concatenate %50, %51 in 0 : vector<6x8x48xf32>, vector<2x8x48xf32> -> vector<8x8x48xf32>
    %53 = vector.extract_strided_slice %52 {offsets = [0, 2, 0], sizes = [8, 6, 48], strides = [1, 1, 1]} : vector<8x8x48xf32> to vector<8x6x48xf32>
    %54 = vector.extract_strided_slice %52 {offsets = [0, 0, 0], sizes = [8, 2, 48], strides = [1, 1, 1]} : vector<8x8x48xf32> to vector<8x2x48xf32>
    %55 = tpu.concatenate %53, %54 in 1 : vector<8x6x48xf32>, vector<8x2x48xf32> -> vector<8x8x48xf32>
    %56 = arith.select %10, %55, %49 : vector<8x8x48xf32>
    %57 = vector.extract_strided_slice %56 {offsets = [0, 0, 0], sizes = [8, 4, 48], strides = [1, 1, 1]} : vector<8x8x48xf32> to vector<8x4x48xf32>
    %58 = vector.shape_cast %57 : vector<8x4x48xf32> to vector<2x16x48xf32>
    %59 = vector.extract_strided_slice %56 {offsets = [0, 4, 0], sizes = [8, 4, 48], strides = [1, 1, 1]} : vector<8x8x48xf32> to vector<8x4x48xf32>
    %60 = vector.shape_cast %59 : vector<8x4x48xf32> to vector<2x16x48xf32>
    %61 = tpu.concatenate %58, %60 in 0 : vector<2x16x48xf32>, vector<2x16x48xf32> -> vector<4x16x48xf32>
    %cst_24 = arith.constant 1.000000e+00 : f32
    %cst_25 = arith.constant 0.000000e+00 : f32
    %62 = arith.select %10, %cst_24, %cst_25 : f32
    %c0_26 = arith.constant 0 : index
    %c0_27 = arith.constant 0 : index
    %c0_28 = arith.constant 0 : index
    %63 = vector.load %arg18[%c0_26, %c0_27, %c0_28] : memref<4x16x16xf32, #tpu.memory_space<vmem>>, vector<4x16x16xf32>
    %64 = vector.broadcast %62 : f32 to vector<4x16x16xf32>
    %65 = arith.mulf %64, %63 : vector<4x16x16xf32>
    %66 = vector.extract_strided_slice %61 {offsets = [0, 0, 0], sizes = [4, 16, 4], strides = [1, 1, 1]} : vector<4x16x48xf32> to vector<4x16x4xf32>
    %67 = vector.extract_strided_slice %61 {offsets = [0, 0, 16], sizes = [4, 16, 4], strides = [1, 1, 1]} : vector<4x16x48xf32> to vector<4x16x4xf32>
    %68 = vector.extract_strided_slice %61 {offsets = [0, 0, 32], sizes = [4, 16, 4], strides = [1, 1, 1]} : vector<4x16x48xf32> to vector<4x16x4xf32>
    "tpu.trace_start"() <{level = 10 : i32, message = "wqd,wkd->wqk"}> : () -> ()
    %cst_29 = arith.constant dense<0.000000e+00> : vector<4x16x16xf32>
    %69 = tpu.matmul %66, %67, %cst_29 {dimension_numbers = #tpu.dot_dimension_numbers<[2], [2], [1], [1], [0, 0, 0, 1, 1, 1], [0], [0]>} : vector<4x16x4xf32>, vector<4x16x4xf32>, vector<4x16x16xf32> -> vector<4x16x16xf32>
    "tpu.trace_stop"() : () -> ()
    %c0_30 = arith.constant 0 : index
    %c0_31 = arith.constant 0 : index
    %c0_32 = arith.constant 0 : index
    %c0_33 = arith.constant 0 : index
    %70 = vector.load %arg7[%c0_30, %c0_31, %c0_32, %c0_33] : memref<1x4x16x16xf32, #tpu.memory_space<vmem>>, vector<1x1x16x16xf32>
    %71 = vector.shape_cast %70 : vector<1x1x16x16xf32> to vector<16x16xf32>
    %72 = vector.shape_cast %71 : vector<16x16xf32> to vector<1x16x16xf32>
    %73 = vector.broadcast %72 : vector<1x16x16xf32> to vector<4x16x16xf32>
    %74 = arith.addf %69, %73 : vector<4x16x16xf32>
    %75 = arith.addf %74, %65 : vector<4x16x16xf32>
    %cst_34 = arith.constant dense<0xFF800000> : vector<4x16xf32>
    %76 = vector.multi_reduction <maximumf>, %75, %cst_34 [2] : vector<4x16x16xf32> to vector<4x16xf32>
    %77 = vector.shape_cast %76 : vector<4x16xf32> to vector<4x16x1xf32>
    %78 = vector.broadcast %77 : vector<4x16x1xf32> to vector<4x16x16xf32>
    %79 = arith.subf %75, %78 : vector<4x16x16xf32>
    %80 = math.exp %79 : vector<4x16x16xf32>
    %cst_35 = arith.constant dense<0.000000e+00> : vector<4x16xf32>
    %81 = vector.multi_reduction <add>, %80, %cst_35 [2] : vector<4x16x16xf32> to vector<4x16xf32>
    %82 = vector.shape_cast %81 : vector<4x16xf32> to vector<4x16x1xf32>
    %83 = tpu.reciprocal %82 {approx = true} : vector<4x16x1xf32> -> vector<4x16x1xf32>
    %84 = vector.broadcast %83 : vector<4x16x1xf32> to vector<4x16x16xf32>
    %85 = arith.mulf %80, %84 : vector<4x16x16xf32>
    "tpu.trace_start"() <{level = 10 : i32, message = "wqk,wkd->wqd"}> : () -> ()
    %cst_36 = arith.constant dense<0.000000e+00> : vector<4x16x4xf32>
    %86 = tpu.matmul %85, %68, %cst_36 {dimension_numbers = #tpu.dot_dimension_numbers<[2], [1], [1], [2], [0, 0, 0, 1, 1, 2], [0], [0]>} : vector<4x16x16xf32>, vector<4x16x4xf32>, vector<4x16x4xf32> -> vector<4x16x4xf32>
    "tpu.trace_stop"() : () -> ()
    %87 = vector.extract_strided_slice %61 {offsets = [0, 0, 4], sizes = [4, 16, 4], strides = [1, 1, 1]} : vector<4x16x48xf32> to vector<4x16x4xf32>
    %88 = vector.extract_strided_slice %61 {offsets = [0, 0, 20], sizes = [4, 16, 4], strides = [1, 1, 1]} : vector<4x16x48xf32> to vector<4x16x4xf32>
    %89 = vector.extract_strided_slice %61 {offsets = [0, 0, 36], sizes = [4, 16, 4], strides = [1, 1, 1]} : vector<4x16x48xf32> to vector<4x16x4xf32>
    "tpu.trace_start"() <{level = 10 : i32, message = "wqd,wkd->wqk"}> : () -> ()
    %cst_37 = arith.constant dense<0.000000e+00> : vector<4x16x16xf32>
    %90 = tpu.matmul %87, %88, %cst_37 {dimension_numbers = #tpu.dot_dimension_numbers<[2], [2], [1], [1], [0, 0, 0, 1, 1, 1], [0], [0]>} : vector<4x16x4xf32>, vector<4x16x4xf32>, vector<4x16x16xf32> -> vector<4x16x16xf32>
    "tpu.trace_stop"() : () -> ()
    %c0_38 = arith.constant 0 : index
    %c1 = arith.constant 1 : index
    %c0_39 = arith.constant 0 : index
    %c0_40 = arith.constant 0 : index
    %91 = vector.load %arg7[%c0_38, %c1, %c0_39, %c0_40] : memref<1x4x16x16xf32, #tpu.memory_space<vmem>>, vector<1x1x16x16xf32>
    %92 = vector.shape_cast %91 : vector<1x1x16x16xf32> to vector<16x16xf32>
    %93 = vector.shape_cast %92 : vector<16x16xf32> to vector<1x16x16xf32>
    %94 = vector.broadcast %93 : vector<1x16x16xf32> to vector<4x16x16xf32>
    %95 = arith.addf %90, %94 : vector<4x16x16xf32>
    %96 = arith.addf %95, %65 : vector<4x16x16xf32>
    %cst_41 = arith.constant dense<0xFF800000> : vector<4x16xf32>
    %97 = vector.multi_reduction <maximumf>, %96, %cst_41 [2] : vector<4x16x16xf32> to vector<4x16xf32>
    %98 = vector.shape_cast %97 : vector<4x16xf32> to vector<4x16x1xf32>
    %99 = vector.broadcast %98 : vector<4x16x1xf32> to vector<4x16x16xf32>
    %100 = arith.subf %96, %99 : vector<4x16x16xf32>
    %101 = math.exp %100 : vector<4x16x16xf32>
    %cst_42 = arith.constant dense<0.000000e+00> : vector<4x16xf32>
    %102 = vector.multi_reduction <add>, %101, %cst_42 [2] : vector<4x16x16xf32> to vector<4x16xf32>
    %103 = vector.shape_cast %102 : vector<4x16xf32> to vector<4x16x1xf32>
    %104 = tpu.reciprocal %103 {approx = true} : vector<4x16x1xf32> -> vector<4x16x1xf32>
    %105 = vector.broadcast %104 : vector<4x16x1xf32> to vector<4x16x16xf32>
    %106 = arith.mulf %101, %105 : vector<4x16x16xf32>
    "tpu.trace_start"() <{level = 10 : i32, message = "wqk,wkd->wqd"}> : () -> ()
    %cst_43 = arith.constant dense<0.000000e+00> : vector<4x16x4xf32>
    %107 = tpu.matmul %106, %89, %cst_43 {dimension_numbers = #tpu.dot_dimension_numbers<[2], [1], [1], [2], [0, 0, 0, 1, 1, 2], [0], [0]>} : vector<4x16x16xf32>, vector<4x16x4xf32>, vector<4x16x4xf32> -> vector<4x16x4xf32>
    "tpu.trace_stop"() : () -> ()
    %108 = vector.extract_strided_slice %61 {offsets = [0, 0, 8], sizes = [4, 16, 4], strides = [1, 1, 1]} : vector<4x16x48xf32> to vector<4x16x4xf32>
    %109 = vector.extract_strided_slice %61 {offsets = [0, 0, 24], sizes = [4, 16, 4], strides = [1, 1, 1]} : vector<4x16x48xf32> to vector<4x16x4xf32>
    %110 = vector.extract_strided_slice %61 {offsets = [0, 0, 40], sizes = [4, 16, 4], strides = [1, 1, 1]} : vector<4x16x48xf32> to vector<4x16x4xf32>
    "tpu.trace_start"() <{level = 10 : i32, message = "wqd,wkd->wqk"}> : () -> ()
    %cst_44 = arith.constant dense<0.000000e+00> : vector<4x16x16xf32>
    %111 = tpu.matmul %108, %109, %cst_44 {dimension_numbers = #tpu.dot_dimension_numbers<[2], [2], [1], [1], [0, 0, 0, 1, 1, 1], [0], [0]>} : vector<4x16x4xf32>, vector<4x16x4xf32>, vector<4x16x16xf32> -> vector<4x16x16xf32>
    "tpu.trace_stop"() : () -> ()
    %c0_45 = arith.constant 0 : index
    %c2 = arith.constant 2 : index
    %c0_46 = arith.constant 0 : index
    %c0_47 = arith.constant 0 : index
    %112 = vector.load %arg7[%c0_45, %c2, %c0_46, %c0_47] : memref<1x4x16x16xf32, #tpu.memory_space<vmem>>, vector<1x1x16x16xf32>
    %113 = vector.shape_cast %112 : vector<1x1x16x16xf32> to vector<16x16xf32>
    %114 = vector.shape_cast %113 : vector<16x16xf32> to vector<1x16x16xf32>
    %115 = vector.broadcast %114 : vector<1x16x16xf32> to vector<4x16x16xf32>
    %116 = arith.addf %111, %115 : vector<4x16x16xf32>
    %117 = arith.addf %116, %65 : vector<4x16x16xf32>
    %cst_48 = arith.constant dense<0xFF800000> : vector<4x16xf32>
    %118 = vector.multi_reduction <maximumf>, %117, %cst_48 [2] : vector<4x16x16xf32> to vector<4x16xf32>
    %119 = vector.shape_cast %118 : vector<4x16xf32> to vector<4x16x1xf32>
    %120 = vector.broadcast %119 : vector<4x16x1xf32> to vector<4x16x16xf32>
    %121 = arith.subf %117, %120 : vector<4x16x16xf32>
    %122 = math.exp %121 : vector<4x16x16xf32>
    %cst_49 = arith.constant dense<0.000000e+00> : vector<4x16xf32>
    %123 = vector.multi_reduction <add>, %122, %cst_49 [2] : vector<4x16x16xf32> to vector<4x16xf32>
    %124 = vector.shape_cast %123 : vector<4x16xf32> to vector<4x16x1xf32>
    %125 = tpu.reciprocal %124 {approx = true} : vector<4x16x1xf32> -> vector<4x16x1xf32>
    %126 = vector.broadcast %125 : vector<4x16x1xf32> to vector<4x16x16xf32>
    %127 = arith.mulf %122, %126 : vector<4x16x16xf32>
    "tpu.trace_start"() <{level = 10 : i32, message = "wqk,wkd->wqd"}> : () -> ()
    %cst_50 = arith.constant dense<0.000000e+00> : vector<4x16x4xf32>
    %128 = tpu.matmul %127, %110, %cst_50 {dimension_numbers = #tpu.dot_dimension_numbers<[2], [1], [1], [2], [0, 0, 0, 1, 1, 2], [0], [0]>} : vector<4x16x16xf32>, vector<4x16x4xf32>, vector<4x16x4xf32> -> vector<4x16x4xf32>
    "tpu.trace_stop"() : () -> ()
    %129 = vector.extract_strided_slice %61 {offsets = [0, 0, 12], sizes = [4, 16, 4], strides = [1, 1, 1]} : vector<4x16x48xf32> to vector<4x16x4xf32>
    %130 = vector.extract_strided_slice %61 {offsets = [0, 0, 28], sizes = [4, 16, 4], strides = [1, 1, 1]} : vector<4x16x48xf32> to vector<4x16x4xf32>
    %131 = vector.extract_strided_slice %61 {offsets = [0, 0, 44], sizes = [4, 16, 4], strides = [1, 1, 1]} : vector<4x16x48xf32> to vector<4x16x4xf32>
    "tpu.trace_start"() <{level = 10 : i32, message = "wqd,wkd->wqk"}> : () -> ()
    %cst_51 = arith.constant dense<0.000000e+00> : vector<4x16x16xf32>
    %132 = tpu.matmul %129, %130, %cst_51 {dimension_numbers = #tpu.dot_dimension_numbers<[2], [2], [1], [1], [0, 0, 0, 1, 1, 1], [0], [0]>} : vector<4x16x4xf32>, vector<4x16x4xf32>, vector<4x16x16xf32> -> vector<4x16x16xf32>
    "tpu.trace_stop"() : () -> ()
    %c0_52 = arith.constant 0 : index
    %c3 = arith.constant 3 : index
    %c0_53 = arith.constant 0 : index
    %c0_54 = arith.constant 0 : index
    %133 = vector.load %arg7[%c0_52, %c3, %c0_53, %c0_54] : memref<1x4x16x16xf32, #tpu.memory_space<vmem>>, vector<1x1x16x16xf32>
    %134 = vector.shape_cast %133 : vector<1x1x16x16xf32> to vector<16x16xf32>
    %135 = vector.shape_cast %134 : vector<16x16xf32> to vector<1x16x16xf32>
    %136 = vector.broadcast %135 : vector<1x16x16xf32> to vector<4x16x16xf32>
    %137 = arith.addf %132, %136 : vector<4x16x16xf32>
    %138 = arith.addf %137, %65 : vector<4x16x16xf32>
    %cst_55 = arith.constant dense<0xFF800000> : vector<4x16xf32>
    %139 = vector.multi_reduction <maximumf>, %138, %cst_55 [2] : vector<4x16x16xf32> to vector<4x16xf32>
    %140 = vector.shape_cast %139 : vector<4x16xf32> to vector<4x16x1xf32>
    %141 = vector.broadcast %140 : vector<4x16x1xf32> to vector<4x16x16xf32>
    %142 = arith.subf %138, %141 : vector<4x16x16xf32>
    %143 = math.exp %142 : vector<4x16x16xf32>
    %cst_56 = arith.constant dense<0.000000e+00> : vector<4x16xf32>
    %144 = vector.multi_reduction <add>, %143, %cst_56 [2] : vector<4x16x16xf32> to vector<4x16xf32>
    %145 = vector.shape_cast %144 : vector<4x16xf32> to vector<4x16x1xf32>
    %146 = tpu.reciprocal %145 {approx = true} : vector<4x16x1xf32> -> vector<4x16x1xf32>
    %147 = vector.broadcast %146 : vector<4x16x1xf32> to vector<4x16x16xf32>
    %148 = arith.mulf %143, %147 : vector<4x16x16xf32>
    "tpu.trace_start"() <{level = 10 : i32, message = "wqk,wkd->wqd"}> : () -> ()
    %cst_57 = arith.constant dense<0.000000e+00> : vector<4x16x4xf32>
    %149 = tpu.matmul %148, %131, %cst_57 {dimension_numbers = #tpu.dot_dimension_numbers<[2], [1], [1], [2], [0, 0, 0, 1, 1, 2], [0], [0]>} : vector<4x16x16xf32>, vector<4x16x4xf32>, vector<4x16x4xf32> -> vector<4x16x4xf32>
    "tpu.trace_stop"() : () -> ()
    %150 = tpu.concatenate %86, %107, %128, %149 in 2 : vector<4x16x4xf32>, vector<4x16x4xf32>, vector<4x16x4xf32>, vector<4x16x4xf32> -> vector<4x16x16xf32>
    %151 = vector.extract_strided_slice %150 {offsets = [0, 0, 0], sizes = [2, 16, 16], strides = [1, 1, 1]} : vector<4x16x16xf32> to vector<2x16x16xf32>
    %152 = vector.shape_cast %151 : vector<2x16x16xf32> to vector<8x4x16xf32>
    %153 = vector.extract_strided_slice %150 {offsets = [2, 0, 0], sizes = [2, 16, 16], strides = [1, 1, 1]} : vector<4x16x16xf32> to vector<2x16x16xf32>
    %154 = vector.shape_cast %153 : vector<2x16x16xf32> to vector<8x4x16xf32>
    %155 = tpu.concatenate %152, %154 in 1 : vector<8x4x16xf32>, vector<8x4x16xf32> -> vector<8x8x16xf32>
    %156 = vector.extract_strided_slice %155 {offsets = [6, 0, 0], sizes = [2, 8, 16], strides = [1, 1, 1]} : vector<8x8x16xf32> to vector<2x8x16xf32>
    %157 = vector.extract_strided_slice %155 {offsets = [0, 0, 0], sizes = [6, 8, 16], strides = [1, 1, 1]} : vector<8x8x16xf32> to vector<6x8x16xf32>
    %158 = tpu.concatenate %156, %157 in 0 : vector<2x8x16xf32>, vector<6x8x16xf32> -> vector<8x8x16xf32>
    %159 = vector.extract_strided_slice %158 {offsets = [0, 6, 0], sizes = [8, 2, 16], strides = [1, 1, 1]} : vector<8x8x16xf32> to vector<8x2x16xf32>
    %160 = vector.extract_strided_slice %158 {offsets = [0, 0, 0], sizes = [8, 6, 16], strides = [1, 1, 1]} : vector<8x8x16xf32> to vector<8x6x16xf32>
    %161 = tpu.concatenate %159, %160 in 1 : vector<8x2x16xf32>, vector<8x6x16xf32> -> vector<8x8x16xf32>
    %162 = arith.select %10, %161, %155 : vector<8x8x16xf32>
    %163 = vector.shape_cast %162 : vector<8x8x16xf32> to vector<64x16xf32>
    %164 = arith.truncf %163 : vector<64x16xf32> to vector<64x16xbf16>
    %c0_58 = arith.constant 0 : index
    %c0_59 = arith.constant 0 : index
    %c0_60 = arith.constant 0 : index
    %165 = vector.load %arg8[%c0_58, %c0_59, %c0_60] : memref<1x16x16xbf16, #tpu.memory_space<vmem>>, vector<1x16x16xbf16>
    %166 = vector.shape_cast %165 : vector<1x16x16xbf16> to vector<16x16xbf16>
    %cst_61 = arith.constant dense<0.000000e+00> : vector<64x16xf32>
    %167 = tpu.matmul %164, %166, %cst_61 {dimension_numbers = #tpu.dot_dimension_numbers<[1], [0], [0], [1], [0, 0, 1, 1], [], []>} : vector<64x16xbf16>, vector<16x16xbf16>, vector<64x16xf32> -> vector<64x16xf32>
    %168 = arith.addf %14, %167 : vector<64x16xf32>
    %c0_62 = arith.constant 0 : index
    %c0_63 = arith.constant 0 : index
    %c0_64 = arith.constant 0 : index
    %169 = vector.load %arg9[%c0_62, %c0_63, %c0_64] : memref<1x1x16xf32, #tpu.memory_space<vmem>>, vector<1x1x16xf32>
    %170 = vector.shape_cast %169 : vector<1x1x16xf32> to vector<1x16xf32>
    %171 = vector.broadcast %170 : vector<1x16xf32> to vector<64x16xf32>
    %172 = arith.addf %168, %171 : vector<64x16xf32>
    %c0_65 = arith.constant 0 : index
    %c0_66 = arith.constant 0 : index
    %c0_67 = arith.constant 0 : index
    %173 = vector.load %arg10[%c0_65, %c0_66, %c0_67] : memref<1x1x16xf32, #tpu.memory_space<vmem>>, vector<1x1x16xf32>
    %174 = vector.shape_cast %173 : vector<1x1x16xf32> to vector<1x16xf32>
    %c0_68 = arith.constant 0 : index
    %c0_69 = arith.constant 0 : index
    %c0_70 = arith.constant 0 : index
    %175 = vector.load %arg11[%c0_68, %c0_69, %c0_70] : memref<1x1x16xf32, #tpu.memory_space<vmem>>, vector<1x1x16xf32>
    %176 = vector.shape_cast %175 : vector<1x1x16xf32> to vector<1x16xf32>
    %cst_71 = arith.constant dense<0.000000e+00> : vector<64xf32>
    %177 = vector.multi_reduction <add>, %172, %cst_71 [1] : vector<64x16xf32> to vector<64xf32>
    %178 = vector.shape_cast %177 : vector<64xf32> to vector<64x1xf32>
    %cst_72 = arith.constant 1.600000e+01 : f32
    %179 = vector.broadcast %cst_72 : f32 to vector<64x1xf32>
    %180 = arith.divf %178, %179 : vector<64x1xf32>
    %181 = vector.broadcast %180 : vector<64x1xf32> to vector<64x16xf32>
    %182 = arith.subf %172, %181 : vector<64x16xf32>
    %183 = arith.mulf %182, %182 : vector<64x16xf32>
    %cst_73 = arith.constant dense<0.000000e+00> : vector<64xf32>
    %184 = vector.multi_reduction <add>, %183, %cst_73 [1] : vector<64x16xf32> to vector<64xf32>
    %185 = vector.shape_cast %184 : vector<64xf32> to vector<64x1xf32>
    %cst_74 = arith.constant 1.600000e+01 : f32
    %186 = vector.broadcast %cst_74 : f32 to vector<64x1xf32>
    %187 = arith.divf %185, %186 : vector<64x1xf32>
    %188 = vector.broadcast %180 : vector<64x1xf32> to vector<64x16xf32>
    %189 = arith.subf %172, %188 : vector<64x16xf32>
    %cst_75 = arith.constant 9.99999974E-6 : f32
    %190 = vector.broadcast %cst_75 : f32 to vector<64x1xf32>
    %191 = arith.addf %187, %190 : vector<64x1xf32>
    %192 = math.rsqrt %191 : vector<64x1xf32>
    %193 = vector.broadcast %192 : vector<64x1xf32> to vector<64x16xf32>
    %194 = arith.mulf %189, %193 : vector<64x16xf32>
    %195 = vector.broadcast %174 : vector<1x16xf32> to vector<64x16xf32>
    %196 = arith.mulf %194, %195 : vector<64x16xf32>
    %197 = vector.broadcast %176 : vector<1x16xf32> to vector<64x16xf32>
    %198 = arith.addf %196, %197 : vector<64x16xf32>
    %199 = arith.truncf %198 : vector<64x16xf32> to vector<64x16xbf16>
    %c0_76 = arith.constant 0 : index
    %c0_77 = arith.constant 0 : index
    %c0_78 = arith.constant 0 : index
    %200 = vector.load %arg12[%c0_76, %c0_77, %c0_78] : memref<1x16x32xbf16, #tpu.memory_space<vmem>>, vector<1x16x32xbf16>
    %201 = vector.shape_cast %200 : vector<1x16x32xbf16> to vector<16x32xbf16>
    %cst_79 = arith.constant dense<0.000000e+00> : vector<64x32xf32>
    %202 = tpu.matmul %199, %201, %cst_79 {dimension_numbers = #tpu.dot_dimension_numbers<[1], [0], [0], [1], [0, 0, 1, 1], [], []>} : vector<64x16xbf16>, vector<16x32xbf16>, vector<64x32xf32> -> vector<64x32xf32>
    %c0_80 = arith.constant 0 : index
    %c0_81 = arith.constant 0 : index
    %c0_82 = arith.constant 0 : index
    %203 = vector.load %arg13[%c0_80, %c0_81, %c0_82] : memref<1x1x32xf32, #tpu.memory_space<vmem>>, vector<1x1x32xf32>
    %204 = vector.shape_cast %203 : vector<1x1x32xf32> to vector<1x32xf32>
    %205 = vector.broadcast %204 : vector<1x32xf32> to vector<64x32xf32>
    %206 = arith.addf %202, %205 : vector<64x32xf32>
    %cst_83 = arith.constant 5.000000e-01 : f32
    %207 = vector.broadcast %cst_83 : f32 to vector<64x32xf32>
    %208 = arith.mulf %207, %206 : vector<64x32xf32>
    %cst_84 = arith.constant 4.471500e-02 : f32
    %209 = vector.broadcast %cst_84 : f32 to vector<64x32xf32>
    %210 = arith.mulf %209, %206 : vector<64x32xf32>
    %211 = arith.mulf %210, %206 : vector<64x32xf32>
    %212 = arith.mulf %211, %206 : vector<64x32xf32>
    %213 = arith.addf %206, %212 : vector<64x32xf32>
    %cst_85 = arith.constant 0.797884583 : f32
    %214 = vector.broadcast %cst_85 : f32 to vector<64x32xf32>
    %215 = arith.mulf %214, %213 : vector<64x32xf32>
    %216 = math.tanh %215 : vector<64x32xf32>
    %cst_86 = arith.constant 1.000000e+00 : f32
    %217 = vector.broadcast %cst_86 : f32 to vector<64x32xf32>
    %218 = arith.addf %217, %216 : vector<64x32xf32>
    %219 = arith.mulf %208, %218 : vector<64x32xf32>
    %220 = vector.shape_cast %219 : vector<64x32xf32> to vector<8x8x32xf32>
    %cst_87 = arith.constant 0.000000e+00 : f32
    %221 = vector.broadcast %cst_87 : f32 to vector<8x8x32xf32>
    %cst_88 = arith.constant 0.000000e+00 : f32
    %222 = vector.broadcast %cst_88 : f32 to vector<2x8x32xf32>
    %223 = vector.extract_strided_slice %220 {offsets = [0, 0, 0], sizes = [6, 8, 32], strides = [1, 1, 1]} : vector<8x8x32xf32> to vector<6x8x32xf32>
    %224 = tpu.concatenate %222, %223 in 0 : vector<2x8x32xf32>, vector<6x8x32xf32> -> vector<8x8x32xf32>
    %cst_89 = arith.constant 0.000000e+00 : f32
    %225 = vector.broadcast %cst_89 : f32 to vector<8x2x32xf32>
    %226 = vector.extract_strided_slice %224 {offsets = [0, 0, 0], sizes = [8, 6, 32], strides = [1, 1, 1]} : vector<8x8x32xf32> to vector<8x6x32xf32>
    %227 = tpu.concatenate %225, %226 in 1 : vector<8x2x32xf32>, vector<8x6x32xf32> -> vector<8x8x32xf32>
    %c0_90 = arith.constant 0 : index
    %c0_91 = arith.constant 0 : index
    %c0_92 = arith.constant 0 : index
    %c0_93 = arith.constant 0 : index
    %228 = vector.load %arg14[%c0_90, %c0_91, %c0_92, %c0_93] : memref<1x25x1x32xf32, #tpu.memory_space<vmem>>, vector<1x1x1x32xf32>
    %229 = vector.shape_cast %228 : vector<1x1x1x32xf32> to vector<1x32xf32>
    %230 = vector.shape_cast %229 : vector<1x32xf32> to vector<1x1x32xf32>
    %231 = vector.broadcast %230 : vector<1x1x32xf32> to vector<8x8x32xf32>
    %232 = arith.mulf %227, %231 : vector<8x8x32xf32>
    %233 = arith.addf %221, %232 : vector<8x8x32xf32>
    %cst_94 = arith.constant 0.000000e+00 : f32
    %234 = vector.broadcast %cst_94 : f32 to vector<2x8x32xf32>
    %235 = vector.extract_strided_slice %220 {offsets = [0, 0, 0], sizes = [6, 8, 32], strides = [1, 1, 1]} : vector<8x8x32xf32> to vector<6x8x32xf32>
    %236 = tpu.concatenate %234, %235 in 0 : vector<2x8x32xf32>, vector<6x8x32xf32> -> vector<8x8x32xf32>
    %cst_95 = arith.constant 0.000000e+00 : f32
    %237 = vector.broadcast %cst_95 : f32 to vector<8x1x32xf32>
    %238 = vector.extract_strided_slice %236 {offsets = [0, 0, 0], sizes = [8, 7, 32], strides = [1, 1, 1]} : vector<8x8x32xf32> to vector<8x7x32xf32>
    %239 = tpu.concatenate %237, %238 in 1 : vector<8x1x32xf32>, vector<8x7x32xf32> -> vector<8x8x32xf32>
    %c0_96 = arith.constant 0 : index
    %c1_97 = arith.constant 1 : index
    %c0_98 = arith.constant 0 : index
    %c0_99 = arith.constant 0 : index
    %240 = vector.load %arg14[%c0_96, %c1_97, %c0_98, %c0_99] : memref<1x25x1x32xf32, #tpu.memory_space<vmem>>, vector<1x1x1x32xf32>
    %241 = vector.shape_cast %240 : vector<1x1x1x32xf32> to vector<1x32xf32>
    %242 = vector.shape_cast %241 : vector<1x32xf32> to vector<1x1x32xf32>
    %243 = vector.broadcast %242 : vector<1x1x32xf32> to vector<8x8x32xf32>
    %244 = arith.mulf %239, %243 : vector<8x8x32xf32>
    %245 = arith.addf %233, %244 : vector<8x8x32xf32>
    %cst_100 = arith.constant 0.000000e+00 : f32
    %246 = vector.broadcast %cst_100 : f32 to vector<2x8x32xf32>
    %247 = vector.extract_strided_slice %220 {offsets = [0, 0, 0], sizes = [6, 8, 32], strides = [1, 1, 1]} : vector<8x8x32xf32> to vector<6x8x32xf32>
    %248 = tpu.concatenate %246, %247 in 0 : vector<2x8x32xf32>, vector<6x8x32xf32> -> vector<8x8x32xf32>
    %c0_101 = arith.constant 0 : index
    %c2_102 = arith.constant 2 : index
    %c0_103 = arith.constant 0 : index
    %c0_104 = arith.constant 0 : index
    %249 = vector.load %arg14[%c0_101, %c2_102, %c0_103, %c0_104] : memref<1x25x1x32xf32, #tpu.memory_space<vmem>>, vector<1x1x1x32xf32>
    %250 = vector.shape_cast %249 : vector<1x1x1x32xf32> to vector<1x32xf32>
    %251 = vector.shape_cast %250 : vector<1x32xf32> to vector<1x1x32xf32>
    %252 = vector.broadcast %251 : vector<1x1x32xf32> to vector<8x8x32xf32>
    %253 = arith.mulf %248, %252 : vector<8x8x32xf32>
    %254 = arith.addf %245, %253 : vector<8x8x32xf32>
    %cst_105 = arith.constant 0.000000e+00 : f32
    %255 = vector.broadcast %cst_105 : f32 to vector<2x8x32xf32>
    %256 = vector.extract_strided_slice %220 {offsets = [0, 0, 0], sizes = [6, 8, 32], strides = [1, 1, 1]} : vector<8x8x32xf32> to vector<6x8x32xf32>
    %257 = tpu.concatenate %255, %256 in 0 : vector<2x8x32xf32>, vector<6x8x32xf32> -> vector<8x8x32xf32>
    %258 = vector.extract_strided_slice %257 {offsets = [0, 1, 0], sizes = [8, 7, 32], strides = [1, 1, 1]} : vector<8x8x32xf32> to vector<8x7x32xf32>
    %cst_106 = arith.constant 0.000000e+00 : f32
    %259 = vector.broadcast %cst_106 : f32 to vector<8x1x32xf32>
    %260 = tpu.concatenate %258, %259 in 1 : vector<8x7x32xf32>, vector<8x1x32xf32> -> vector<8x8x32xf32>
    %c0_107 = arith.constant 0 : index
    %c3_108 = arith.constant 3 : index
    %c0_109 = arith.constant 0 : index
    %c0_110 = arith.constant 0 : index
    %261 = vector.load %arg14[%c0_107, %c3_108, %c0_109, %c0_110] : memref<1x25x1x32xf32, #tpu.memory_space<vmem>>, vector<1x1x1x32xf32>
    %262 = vector.shape_cast %261 : vector<1x1x1x32xf32> to vector<1x32xf32>
    %263 = vector.shape_cast %262 : vector<1x32xf32> to vector<1x1x32xf32>
    %264 = vector.broadcast %263 : vector<1x1x32xf32> to vector<8x8x32xf32>
    %265 = arith.mulf %260, %264 : vector<8x8x32xf32>
    %266 = arith.addf %254, %265 : vector<8x8x32xf32>
    %cst_111 = arith.constant 0.000000e+00 : f32
    %267 = vector.broadcast %cst_111 : f32 to vector<2x8x32xf32>
    %268 = vector.extract_strided_slice %220 {offsets = [0, 0, 0], sizes = [6, 8, 32], strides = [1, 1, 1]} : vector<8x8x32xf32> to vector<6x8x32xf32>
    %269 = tpu.concatenate %267, %268 in 0 : vector<2x8x32xf32>, vector<6x8x32xf32> -> vector<8x8x32xf32>
    %270 = vector.extract_strided_slice %269 {offsets = [0, 2, 0], sizes = [8, 6, 32], strides = [1, 1, 1]} : vector<8x8x32xf32> to vector<8x6x32xf32>
    %cst_112 = arith.constant 0.000000e+00 : f32
    %271 = vector.broadcast %cst_112 : f32 to vector<8x2x32xf32>
    %272 = tpu.concatenate %270, %271 in 1 : vector<8x6x32xf32>, vector<8x2x32xf32> -> vector<8x8x32xf32>
    %c0_113 = arith.constant 0 : index
    %c4 = arith.constant 4 : index
    %c0_114 = arith.constant 0 : index
    %c0_115 = arith.constant 0 : index
    %273 = vector.load %arg14[%c0_113, %c4, %c0_114, %c0_115] : memref<1x25x1x32xf32, #tpu.memory_space<vmem>>, vector<1x1x1x32xf32>
    %274 = vector.shape_cast %273 : vector<1x1x1x32xf32> to vector<1x32xf32>
    %275 = vector.shape_cast %274 : vector<1x32xf32> to vector<1x1x32xf32>
    %276 = vector.broadcast %275 : vector<1x1x32xf32> to vector<8x8x32xf32>
    %277 = arith.mulf %272, %276 : vector<8x8x32xf32>
    %278 = arith.addf %266, %277 : vector<8x8x32xf32>
    %cst_116 = arith.constant 0.000000e+00 : f32
    %279 = vector.broadcast %cst_116 : f32 to vector<1x8x32xf32>
    %280 = vector.extract_strided_slice %220 {offsets = [0, 0, 0], sizes = [7, 8, 32], strides = [1, 1, 1]} : vector<8x8x32xf32> to vector<7x8x32xf32>
    %281 = tpu.concatenate %279, %280 in 0 : vector<1x8x32xf32>, vector<7x8x32xf32> -> vector<8x8x32xf32>
    %cst_117 = arith.constant 0.000000e+00 : f32
    %282 = vector.broadcast %cst_117 : f32 to vector<8x2x32xf32>
    %283 = vector.extract_strided_slice %281 {offsets = [0, 0, 0], sizes = [8, 6, 32], strides = [1, 1, 1]} : vector<8x8x32xf32> to vector<8x6x32xf32>
    %284 = tpu.concatenate %282, %283 in 1 : vector<8x2x32xf32>, vector<8x6x32xf32> -> vector<8x8x32xf32>
    %c0_118 = arith.constant 0 : index
    %c5 = arith.constant 5 : index
    %c0_119 = arith.constant 0 : index
    %c0_120 = arith.constant 0 : index
    %285 = vector.load %arg14[%c0_118, %c5, %c0_119, %c0_120] : memref<1x25x1x32xf32, #tpu.memory_space<vmem>>, vector<1x1x1x32xf32>
    %286 = vector.shape_cast %285 : vector<1x1x1x32xf32> to vector<1x32xf32>
    %287 = vector.shape_cast %286 : vector<1x32xf32> to vector<1x1x32xf32>
    %288 = vector.broadcast %287 : vector<1x1x32xf32> to vector<8x8x32xf32>
    %289 = arith.mulf %284, %288 : vector<8x8x32xf32>
    %290 = arith.addf %278, %289 : vector<8x8x32xf32>
    %cst_121 = arith.constant 0.000000e+00 : f32
    %291 = vector.broadcast %cst_121 : f32 to vector<1x8x32xf32>
    %292 = vector.extract_strided_slice %220 {offsets = [0, 0, 0], sizes = [7, 8, 32], strides = [1, 1, 1]} : vector<8x8x32xf32> to vector<7x8x32xf32>
    %293 = tpu.concatenate %291, %292 in 0 : vector<1x8x32xf32>, vector<7x8x32xf32> -> vector<8x8x32xf32>
    %cst_122 = arith.constant 0.000000e+00 : f32
    %294 = vector.broadcast %cst_122 : f32 to vector<8x1x32xf32>
    %295 = vector.extract_strided_slice %293 {offsets = [0, 0, 0], sizes = [8, 7, 32], strides = [1, 1, 1]} : vector<8x8x32xf32> to vector<8x7x32xf32>
    %296 = tpu.concatenate %294, %295 in 1 : vector<8x1x32xf32>, vector<8x7x32xf32> -> vector<8x8x32xf32>
    %c0_123 = arith.constant 0 : index
    %c6 = arith.constant 6 : index
    %c0_124 = arith.constant 0 : index
    %c0_125 = arith.constant 0 : index
    %297 = vector.load %arg14[%c0_123, %c6, %c0_124, %c0_125] : memref<1x25x1x32xf32, #tpu.memory_space<vmem>>, vector<1x1x1x32xf32>
    %298 = vector.shape_cast %297 : vector<1x1x1x32xf32> to vector<1x32xf32>
    %299 = vector.shape_cast %298 : vector<1x32xf32> to vector<1x1x32xf32>
    %300 = vector.broadcast %299 : vector<1x1x32xf32> to vector<8x8x32xf32>
    %301 = arith.mulf %296, %300 : vector<8x8x32xf32>
    %302 = arith.addf %290, %301 : vector<8x8x32xf32>
    %cst_126 = arith.constant 0.000000e+00 : f32
    %303 = vector.broadcast %cst_126 : f32 to vector<1x8x32xf32>
    %304 = vector.extract_strided_slice %220 {offsets = [0, 0, 0], sizes = [7, 8, 32], strides = [1, 1, 1]} : vector<8x8x32xf32> to vector<7x8x32xf32>
    %305 = tpu.concatenate %303, %304 in 0 : vector<1x8x32xf32>, vector<7x8x32xf32> -> vector<8x8x32xf32>
    %c0_127 = arith.constant 0 : index
    %c7 = arith.constant 7 : index
    %c0_128 = arith.constant 0 : index
    %c0_129 = arith.constant 0 : index
    %306 = vector.load %arg14[%c0_127, %c7, %c0_128, %c0_129] : memref<1x25x1x32xf32, #tpu.memory_space<vmem>>, vector<1x1x1x32xf32>
    %307 = vector.shape_cast %306 : vector<1x1x1x32xf32> to vector<1x32xf32>
    %308 = vector.shape_cast %307 : vector<1x32xf32> to vector<1x1x32xf32>
    %309 = vector.broadcast %308 : vector<1x1x32xf32> to vector<8x8x32xf32>
    %310 = arith.mulf %305, %309 : vector<8x8x32xf32>
    %311 = arith.addf %302, %310 : vector<8x8x32xf32>
    %cst_130 = arith.constant 0.000000e+00 : f32
    %312 = vector.broadcast %cst_130 : f32 to vector<1x8x32xf32>
    %313 = vector.extract_strided_slice %220 {offsets = [0, 0, 0], sizes = [7, 8, 32], strides = [1, 1, 1]} : vector<8x8x32xf32> to vector<7x8x32xf32>
    %314 = tpu.concatenate %312, %313 in 0 : vector<1x8x32xf32>, vector<7x8x32xf32> -> vector<8x8x32xf32>
    %315 = vector.extract_strided_slice %314 {offsets = [0, 1, 0], sizes = [8, 7, 32], strides = [1, 1, 1]} : vector<8x8x32xf32> to vector<8x7x32xf32>
    %cst_131 = arith.constant 0.000000e+00 : f32
    %316 = vector.broadcast %cst_131 : f32 to vector<8x1x32xf32>
    %317 = tpu.concatenate %315, %316 in 1 : vector<8x7x32xf32>, vector<8x1x32xf32> -> vector<8x8x32xf32>
    %c0_132 = arith.constant 0 : index
    %c8 = arith.constant 8 : index
    %c0_133 = arith.constant 0 : index
    %c0_134 = arith.constant 0 : index
    %318 = vector.load %arg14[%c0_132, %c8, %c0_133, %c0_134] : memref<1x25x1x32xf32, #tpu.memory_space<vmem>>, vector<1x1x1x32xf32>
    %319 = vector.shape_cast %318 : vector<1x1x1x32xf32> to vector<1x32xf32>
    %320 = vector.shape_cast %319 : vector<1x32xf32> to vector<1x1x32xf32>
    %321 = vector.broadcast %320 : vector<1x1x32xf32> to vector<8x8x32xf32>
    %322 = arith.mulf %317, %321 : vector<8x8x32xf32>
    %323 = arith.addf %311, %322 : vector<8x8x32xf32>
    %cst_135 = arith.constant 0.000000e+00 : f32
    %324 = vector.broadcast %cst_135 : f32 to vector<1x8x32xf32>
    %325 = vector.extract_strided_slice %220 {offsets = [0, 0, 0], sizes = [7, 8, 32], strides = [1, 1, 1]} : vector<8x8x32xf32> to vector<7x8x32xf32>
    %326 = tpu.concatenate %324, %325 in 0 : vector<1x8x32xf32>, vector<7x8x32xf32> -> vector<8x8x32xf32>
    %327 = vector.extract_strided_slice %326 {offsets = [0, 2, 0], sizes = [8, 6, 32], strides = [1, 1, 1]} : vector<8x8x32xf32> to vector<8x6x32xf32>
    %cst_136 = arith.constant 0.000000e+00 : f32
    %328 = vector.broadcast %cst_136 : f32 to vector<8x2x32xf32>
    %329 = tpu.concatenate %327, %328 in 1 : vector<8x6x32xf32>, vector<8x2x32xf32> -> vector<8x8x32xf32>
    %c0_137 = arith.constant 0 : index
    %c9 = arith.constant 9 : index
    %c0_138 = arith.constant 0 : index
    %c0_139 = arith.constant 0 : index
    %330 = vector.load %arg14[%c0_137, %c9, %c0_138, %c0_139] : memref<1x25x1x32xf32, #tpu.memory_space<vmem>>, vector<1x1x1x32xf32>
    %331 = vector.shape_cast %330 : vector<1x1x1x32xf32> to vector<1x32xf32>
    %332 = vector.shape_cast %331 : vector<1x32xf32> to vector<1x1x32xf32>
    %333 = vector.broadcast %332 : vector<1x1x32xf32> to vector<8x8x32xf32>
    %334 = arith.mulf %329, %333 : vector<8x8x32xf32>
    %335 = arith.addf %323, %334 : vector<8x8x32xf32>
    %cst_140 = arith.constant 0.000000e+00 : f32
    %336 = vector.broadcast %cst_140 : f32 to vector<8x2x32xf32>
    %337 = vector.extract_strided_slice %220 {offsets = [0, 0, 0], sizes = [8, 6, 32], strides = [1, 1, 1]} : vector<8x8x32xf32> to vector<8x6x32xf32>
    %338 = tpu.concatenate %336, %337 in 1 : vector<8x2x32xf32>, vector<8x6x32xf32> -> vector<8x8x32xf32>
    %c0_141 = arith.constant 0 : index
    %c10 = arith.constant 10 : index
    %c0_142 = arith.constant 0 : index
    %c0_143 = arith.constant 0 : index
    %339 = vector.load %arg14[%c0_141, %c10, %c0_142, %c0_143] : memref<1x25x1x32xf32, #tpu.memory_space<vmem>>, vector<1x1x1x32xf32>
    %340 = vector.shape_cast %339 : vector<1x1x1x32xf32> to vector<1x32xf32>
    %341 = vector.shape_cast %340 : vector<1x32xf32> to vector<1x1x32xf32>
    %342 = vector.broadcast %341 : vector<1x1x32xf32> to vector<8x8x32xf32>
    %343 = arith.mulf %338, %342 : vector<8x8x32xf32>
    %344 = arith.addf %335, %343 : vector<8x8x32xf32>
    %cst_144 = arith.constant 0.000000e+00 : f32
    %345 = vector.broadcast %cst_144 : f32 to vector<8x1x32xf32>
    %346 = vector.extract_strided_slice %220 {offsets = [0, 0, 0], sizes = [8, 7, 32], strides = [1, 1, 1]} : vector<8x8x32xf32> to vector<8x7x32xf32>
    %347 = tpu.concatenate %345, %346 in 1 : vector<8x1x32xf32>, vector<8x7x32xf32> -> vector<8x8x32xf32>
    %c0_145 = arith.constant 0 : index
    %c11 = arith.constant 11 : index
    %c0_146 = arith.constant 0 : index
    %c0_147 = arith.constant 0 : index
    %348 = vector.load %arg14[%c0_145, %c11, %c0_146, %c0_147] : memref<1x25x1x32xf32, #tpu.memory_space<vmem>>, vector<1x1x1x32xf32>
    %349 = vector.shape_cast %348 : vector<1x1x1x32xf32> to vector<1x32xf32>
    %350 = vector.shape_cast %349 : vector<1x32xf32> to vector<1x1x32xf32>
    %351 = vector.broadcast %350 : vector<1x1x32xf32> to vector<8x8x32xf32>
    %352 = arith.mulf %347, %351 : vector<8x8x32xf32>
    %353 = arith.addf %344, %352 : vector<8x8x32xf32>
    %c0_148 = arith.constant 0 : index
    %c12 = arith.constant 12 : index
    %c0_149 = arith.constant 0 : index
    %c0_150 = arith.constant 0 : index
    %354 = vector.load %arg14[%c0_148, %c12, %c0_149, %c0_150] : memref<1x25x1x32xf32, #tpu.memory_space<vmem>>, vector<1x1x1x32xf32>
    %355 = vector.shape_cast %354 : vector<1x1x1x32xf32> to vector<1x32xf32>
    %356 = vector.shape_cast %355 : vector<1x32xf32> to vector<1x1x32xf32>
    %357 = vector.broadcast %356 : vector<1x1x32xf32> to vector<8x8x32xf32>
    %358 = arith.mulf %220, %357 : vector<8x8x32xf32>
    %359 = arith.addf %353, %358 : vector<8x8x32xf32>
    %360 = vector.extract_strided_slice %220 {offsets = [0, 1, 0], sizes = [8, 7, 32], strides = [1, 1, 1]} : vector<8x8x32xf32> to vector<8x7x32xf32>
    %cst_151 = arith.constant 0.000000e+00 : f32
    %361 = vector.broadcast %cst_151 : f32 to vector<8x1x32xf32>
    %362 = tpu.concatenate %360, %361 in 1 : vector<8x7x32xf32>, vector<8x1x32xf32> -> vector<8x8x32xf32>
    %c0_152 = arith.constant 0 : index
    %c13 = arith.constant 13 : index
    %c0_153 = arith.constant 0 : index
    %c0_154 = arith.constant 0 : index
    %363 = vector.load %arg14[%c0_152, %c13, %c0_153, %c0_154] : memref<1x25x1x32xf32, #tpu.memory_space<vmem>>, vector<1x1x1x32xf32>
    %364 = vector.shape_cast %363 : vector<1x1x1x32xf32> to vector<1x32xf32>
    %365 = vector.shape_cast %364 : vector<1x32xf32> to vector<1x1x32xf32>
    %366 = vector.broadcast %365 : vector<1x1x32xf32> to vector<8x8x32xf32>
    %367 = arith.mulf %362, %366 : vector<8x8x32xf32>
    %368 = arith.addf %359, %367 : vector<8x8x32xf32>
    %369 = vector.extract_strided_slice %220 {offsets = [0, 2, 0], sizes = [8, 6, 32], strides = [1, 1, 1]} : vector<8x8x32xf32> to vector<8x6x32xf32>
    %cst_155 = arith.constant 0.000000e+00 : f32
    %370 = vector.broadcast %cst_155 : f32 to vector<8x2x32xf32>
    %371 = tpu.concatenate %369, %370 in 1 : vector<8x6x32xf32>, vector<8x2x32xf32> -> vector<8x8x32xf32>
    %c0_156 = arith.constant 0 : index
    %c14 = arith.constant 14 : index
    %c0_157 = arith.constant 0 : index
    %c0_158 = arith.constant 0 : index
    %372 = vector.load %arg14[%c0_156, %c14, %c0_157, %c0_158] : memref<1x25x1x32xf32, #tpu.memory_space<vmem>>, vector<1x1x1x32xf32>
    %373 = vector.shape_cast %372 : vector<1x1x1x32xf32> to vector<1x32xf32>
    %374 = vector.shape_cast %373 : vector<1x32xf32> to vector<1x1x32xf32>
    %375 = vector.broadcast %374 : vector<1x1x32xf32> to vector<8x8x32xf32>
    %376 = arith.mulf %371, %375 : vector<8x8x32xf32>
    %377 = arith.addf %368, %376 : vector<8x8x32xf32>
    %378 = vector.extract_strided_slice %220 {offsets = [1, 0, 0], sizes = [7, 8, 32], strides = [1, 1, 1]} : vector<8x8x32xf32> to vector<7x8x32xf32>
    %cst_159 = arith.constant 0.000000e+00 : f32
    %379 = vector.broadcast %cst_159 : f32 to vector<1x8x32xf32>
    %380 = tpu.concatenate %378, %379 in 0 : vector<7x8x32xf32>, vector<1x8x32xf32> -> vector<8x8x32xf32>
    %cst_160 = arith.constant 0.000000e+00 : f32
    %381 = vector.broadcast %cst_160 : f32 to vector<8x2x32xf32>
    %382 = vector.extract_strided_slice %380 {offsets = [0, 0, 0], sizes = [8, 6, 32], strides = [1, 1, 1]} : vector<8x8x32xf32> to vector<8x6x32xf32>
    %383 = tpu.concatenate %381, %382 in 1 : vector<8x2x32xf32>, vector<8x6x32xf32> -> vector<8x8x32xf32>
    %c0_161 = arith.constant 0 : index
    %c15 = arith.constant 15 : index
    %c0_162 = arith.constant 0 : index
    %c0_163 = arith.constant 0 : index
    %384 = vector.load %arg14[%c0_161, %c15, %c0_162, %c0_163] : memref<1x25x1x32xf32, #tpu.memory_space<vmem>>, vector<1x1x1x32xf32>
    %385 = vector.shape_cast %384 : vector<1x1x1x32xf32> to vector<1x32xf32>
    %386 = vector.shape_cast %385 : vector<1x32xf32> to vector<1x1x32xf32>
    %387 = vector.broadcast %386 : vector<1x1x32xf32> to vector<8x8x32xf32>
    %388 = arith.mulf %383, %387 : vector<8x8x32xf32>
    %389 = arith.addf %377, %388 : vector<8x8x32xf32>
    %390 = vector.extract_strided_slice %220 {offsets = [1, 0, 0], sizes = [7, 8, 32], strides = [1, 1, 1]} : vector<8x8x32xf32> to vector<7x8x32xf32>
    %cst_164 = arith.constant 0.000000e+00 : f32
    %391 = vector.broadcast %cst_164 : f32 to vector<1x8x32xf32>
    %392 = tpu.concatenate %390, %391 in 0 : vector<7x8x32xf32>, vector<1x8x32xf32> -> vector<8x8x32xf32>
    %cst_165 = arith.constant 0.000000e+00 : f32
    %393 = vector.broadcast %cst_165 : f32 to vector<8x1x32xf32>
    %394 = vector.extract_strided_slice %392 {offsets = [0, 0, 0], sizes = [8, 7, 32], strides = [1, 1, 1]} : vector<8x8x32xf32> to vector<8x7x32xf32>
    %395 = tpu.concatenate %393, %394 in 1 : vector<8x1x32xf32>, vector<8x7x32xf32> -> vector<8x8x32xf32>
    %c0_166 = arith.constant 0 : index
    %c16 = arith.constant 16 : index
    %c0_167 = arith.constant 0 : index
    %c0_168 = arith.constant 0 : index
    %396 = vector.load %arg14[%c0_166, %c16, %c0_167, %c0_168] : memref<1x25x1x32xf32, #tpu.memory_space<vmem>>, vector<1x1x1x32xf32>
    %397 = vector.shape_cast %396 : vector<1x1x1x32xf32> to vector<1x32xf32>
    %398 = vector.shape_cast %397 : vector<1x32xf32> to vector<1x1x32xf32>
    %399 = vector.broadcast %398 : vector<1x1x32xf32> to vector<8x8x32xf32>
    %400 = arith.mulf %395, %399 : vector<8x8x32xf32>
    %401 = arith.addf %389, %400 : vector<8x8x32xf32>
    %402 = vector.extract_strided_slice %220 {offsets = [1, 0, 0], sizes = [7, 8, 32], strides = [1, 1, 1]} : vector<8x8x32xf32> to vector<7x8x32xf32>
    %cst_169 = arith.constant 0.000000e+00 : f32
    %403 = vector.broadcast %cst_169 : f32 to vector<1x8x32xf32>
    %404 = tpu.concatenate %402, %403 in 0 : vector<7x8x32xf32>, vector<1x8x32xf32> -> vector<8x8x32xf32>
    %c0_170 = arith.constant 0 : index
    %c17 = arith.constant 17 : index
    %c0_171 = arith.constant 0 : index
    %c0_172 = arith.constant 0 : index
    %405 = vector.load %arg14[%c0_170, %c17, %c0_171, %c0_172] : memref<1x25x1x32xf32, #tpu.memory_space<vmem>>, vector<1x1x1x32xf32>
    %406 = vector.shape_cast %405 : vector<1x1x1x32xf32> to vector<1x32xf32>
    %407 = vector.shape_cast %406 : vector<1x32xf32> to vector<1x1x32xf32>
    %408 = vector.broadcast %407 : vector<1x1x32xf32> to vector<8x8x32xf32>
    %409 = arith.mulf %404, %408 : vector<8x8x32xf32>
    %410 = arith.addf %401, %409 : vector<8x8x32xf32>
    %411 = vector.extract_strided_slice %220 {offsets = [1, 0, 0], sizes = [7, 8, 32], strides = [1, 1, 1]} : vector<8x8x32xf32> to vector<7x8x32xf32>
    %cst_173 = arith.constant 0.000000e+00 : f32
    %412 = vector.broadcast %cst_173 : f32 to vector<1x8x32xf32>
    %413 = tpu.concatenate %411, %412 in 0 : vector<7x8x32xf32>, vector<1x8x32xf32> -> vector<8x8x32xf32>
    %414 = vector.extract_strided_slice %413 {offsets = [0, 1, 0], sizes = [8, 7, 32], strides = [1, 1, 1]} : vector<8x8x32xf32> to vector<8x7x32xf32>
    %cst_174 = arith.constant 0.000000e+00 : f32
    %415 = vector.broadcast %cst_174 : f32 to vector<8x1x32xf32>
    %416 = tpu.concatenate %414, %415 in 1 : vector<8x7x32xf32>, vector<8x1x32xf32> -> vector<8x8x32xf32>
    %c0_175 = arith.constant 0 : index
    %c18 = arith.constant 18 : index
    %c0_176 = arith.constant 0 : index
    %c0_177 = arith.constant 0 : index
    %417 = vector.load %arg14[%c0_175, %c18, %c0_176, %c0_177] : memref<1x25x1x32xf32, #tpu.memory_space<vmem>>, vector<1x1x1x32xf32>
    %418 = vector.shape_cast %417 : vector<1x1x1x32xf32> to vector<1x32xf32>
    %419 = vector.shape_cast %418 : vector<1x32xf32> to vector<1x1x32xf32>
    %420 = vector.broadcast %419 : vector<1x1x32xf32> to vector<8x8x32xf32>
    %421 = arith.mulf %416, %420 : vector<8x8x32xf32>
    %422 = arith.addf %410, %421 : vector<8x8x32xf32>
    %423 = vector.extract_strided_slice %220 {offsets = [1, 0, 0], sizes = [7, 8, 32], strides = [1, 1, 1]} : vector<8x8x32xf32> to vector<7x8x32xf32>
    %cst_178 = arith.constant 0.000000e+00 : f32
    %424 = vector.broadcast %cst_178 : f32 to vector<1x8x32xf32>
    %425 = tpu.concatenate %423, %424 in 0 : vector<7x8x32xf32>, vector<1x8x32xf32> -> vector<8x8x32xf32>
    %426 = vector.extract_strided_slice %425 {offsets = [0, 2, 0], sizes = [8, 6, 32], strides = [1, 1, 1]} : vector<8x8x32xf32> to vector<8x6x32xf32>
    %cst_179 = arith.constant 0.000000e+00 : f32
    %427 = vector.broadcast %cst_179 : f32 to vector<8x2x32xf32>
    %428 = tpu.concatenate %426, %427 in 1 : vector<8x6x32xf32>, vector<8x2x32xf32> -> vector<8x8x32xf32>
    %c0_180 = arith.constant 0 : index
    %c19 = arith.constant 19 : index
    %c0_181 = arith.constant 0 : index
    %c0_182 = arith.constant 0 : index
    %429 = vector.load %arg14[%c0_180, %c19, %c0_181, %c0_182] : memref<1x25x1x32xf32, #tpu.memory_space<vmem>>, vector<1x1x1x32xf32>
    %430 = vector.shape_cast %429 : vector<1x1x1x32xf32> to vector<1x32xf32>
    %431 = vector.shape_cast %430 : vector<1x32xf32> to vector<1x1x32xf32>
    %432 = vector.broadcast %431 : vector<1x1x32xf32> to vector<8x8x32xf32>
    %433 = arith.mulf %428, %432 : vector<8x8x32xf32>
    %434 = arith.addf %422, %433 : vector<8x8x32xf32>
    %435 = vector.extract_strided_slice %220 {offsets = [2, 0, 0], sizes = [6, 8, 32], strides = [1, 1, 1]} : vector<8x8x32xf32> to vector<6x8x32xf32>
    %cst_183 = arith.constant 0.000000e+00 : f32
    %436 = vector.broadcast %cst_183 : f32 to vector<2x8x32xf32>
    %437 = tpu.concatenate %435, %436 in 0 : vector<6x8x32xf32>, vector<2x8x32xf32> -> vector<8x8x32xf32>
    %cst_184 = arith.constant 0.000000e+00 : f32
    %438 = vector.broadcast %cst_184 : f32 to vector<8x2x32xf32>
    %439 = vector.extract_strided_slice %437 {offsets = [0, 0, 0], sizes = [8, 6, 32], strides = [1, 1, 1]} : vector<8x8x32xf32> to vector<8x6x32xf32>
    %440 = tpu.concatenate %438, %439 in 1 : vector<8x2x32xf32>, vector<8x6x32xf32> -> vector<8x8x32xf32>
    %c0_185 = arith.constant 0 : index
    %c20 = arith.constant 20 : index
    %c0_186 = arith.constant 0 : index
    %c0_187 = arith.constant 0 : index
    %441 = vector.load %arg14[%c0_185, %c20, %c0_186, %c0_187] : memref<1x25x1x32xf32, #tpu.memory_space<vmem>>, vector<1x1x1x32xf32>
    %442 = vector.shape_cast %441 : vector<1x1x1x32xf32> to vector<1x32xf32>
    %443 = vector.shape_cast %442 : vector<1x32xf32> to vector<1x1x32xf32>
    %444 = vector.broadcast %443 : vector<1x1x32xf32> to vector<8x8x32xf32>
    %445 = arith.mulf %440, %444 : vector<8x8x32xf32>
    %446 = arith.addf %434, %445 : vector<8x8x32xf32>
    %447 = vector.extract_strided_slice %220 {offsets = [2, 0, 0], sizes = [6, 8, 32], strides = [1, 1, 1]} : vector<8x8x32xf32> to vector<6x8x32xf32>
    %cst_188 = arith.constant 0.000000e+00 : f32
    %448 = vector.broadcast %cst_188 : f32 to vector<2x8x32xf32>
    %449 = tpu.concatenate %447, %448 in 0 : vector<6x8x32xf32>, vector<2x8x32xf32> -> vector<8x8x32xf32>
    %cst_189 = arith.constant 0.000000e+00 : f32
    %450 = vector.broadcast %cst_189 : f32 to vector<8x1x32xf32>
    %451 = vector.extract_strided_slice %449 {offsets = [0, 0, 0], sizes = [8, 7, 32], strides = [1, 1, 1]} : vector<8x8x32xf32> to vector<8x7x32xf32>
    %452 = tpu.concatenate %450, %451 in 1 : vector<8x1x32xf32>, vector<8x7x32xf32> -> vector<8x8x32xf32>
    %c0_190 = arith.constant 0 : index
    %c21 = arith.constant 21 : index
    %c0_191 = arith.constant 0 : index
    %c0_192 = arith.constant 0 : index
    %453 = vector.load %arg14[%c0_190, %c21, %c0_191, %c0_192] : memref<1x25x1x32xf32, #tpu.memory_space<vmem>>, vector<1x1x1x32xf32>
    %454 = vector.shape_cast %453 : vector<1x1x1x32xf32> to vector<1x32xf32>
    %455 = vector.shape_cast %454 : vector<1x32xf32> to vector<1x1x32xf32>
    %456 = vector.broadcast %455 : vector<1x1x32xf32> to vector<8x8x32xf32>
    %457 = arith.mulf %452, %456 : vector<8x8x32xf32>
    %458 = arith.addf %446, %457 : vector<8x8x32xf32>
    %459 = vector.extract_strided_slice %220 {offsets = [2, 0, 0], sizes = [6, 8, 32], strides = [1, 1, 1]} : vector<8x8x32xf32> to vector<6x8x32xf32>
    %cst_193 = arith.constant 0.000000e+00 : f32
    %460 = vector.broadcast %cst_193 : f32 to vector<2x8x32xf32>
    %461 = tpu.concatenate %459, %460 in 0 : vector<6x8x32xf32>, vector<2x8x32xf32> -> vector<8x8x32xf32>
    %c0_194 = arith.constant 0 : index
    %c22 = arith.constant 22 : index
    %c0_195 = arith.constant 0 : index
    %c0_196 = arith.constant 0 : index
    %462 = vector.load %arg14[%c0_194, %c22, %c0_195, %c0_196] : memref<1x25x1x32xf32, #tpu.memory_space<vmem>>, vector<1x1x1x32xf32>
    %463 = vector.shape_cast %462 : vector<1x1x1x32xf32> to vector<1x32xf32>
    %464 = vector.shape_cast %463 : vector<1x32xf32> to vector<1x1x32xf32>
    %465 = vector.broadcast %464 : vector<1x1x32xf32> to vector<8x8x32xf32>
    %466 = arith.mulf %461, %465 : vector<8x8x32xf32>
    %467 = arith.addf %458, %466 : vector<8x8x32xf32>
    %468 = vector.extract_strided_slice %220 {offsets = [2, 0, 0], sizes = [6, 8, 32], strides = [1, 1, 1]} : vector<8x8x32xf32> to vector<6x8x32xf32>
    %cst_197 = arith.constant 0.000000e+00 : f32
    %469 = vector.broadcast %cst_197 : f32 to vector<2x8x32xf32>
    %470 = tpu.concatenate %468, %469 in 0 : vector<6x8x32xf32>, vector<2x8x32xf32> -> vector<8x8x32xf32>
    %471 = vector.extract_strided_slice %470 {offsets = [0, 1, 0], sizes = [8, 7, 32], strides = [1, 1, 1]} : vector<8x8x32xf32> to vector<8x7x32xf32>
    %cst_198 = arith.constant 0.000000e+00 : f32
    %472 = vector.broadcast %cst_198 : f32 to vector<8x1x32xf32>
    %473 = tpu.concatenate %471, %472 in 1 : vector<8x7x32xf32>, vector<8x1x32xf32> -> vector<8x8x32xf32>
    %c0_199 = arith.constant 0 : index
    %c23 = arith.constant 23 : index
    %c0_200 = arith.constant 0 : index
    %c0_201 = arith.constant 0 : index
    %474 = vector.load %arg14[%c0_199, %c23, %c0_200, %c0_201] : memref<1x25x1x32xf32, #tpu.memory_space<vmem>>, vector<1x1x1x32xf32>
    %475 = vector.shape_cast %474 : vector<1x1x1x32xf32> to vector<1x32xf32>
    %476 = vector.shape_cast %475 : vector<1x32xf32> to vector<1x1x32xf32>
    %477 = vector.broadcast %476 : vector<1x1x32xf32> to vector<8x8x32xf32>
    %478 = arith.mulf %473, %477 : vector<8x8x32xf32>
    %479 = arith.addf %467, %478 : vector<8x8x32xf32>
    %480 = vector.extract_strided_slice %220 {offsets = [2, 0, 0], sizes = [6, 8, 32], strides = [1, 1, 1]} : vector<8x8x32xf32> to vector<6x8x32xf32>
    %cst_202 = arith.constant 0.000000e+00 : f32
    %481 = vector.broadcast %cst_202 : f32 to vector<2x8x32xf32>
    %482 = tpu.concatenate %480, %481 in 0 : vector<6x8x32xf32>, vector<2x8x32xf32> -> vector<8x8x32xf32>
    %483 = vector.extract_strided_slice %482 {offsets = [0, 2, 0], sizes = [8, 6, 32], strides = [1, 1, 1]} : vector<8x8x32xf32> to vector<8x6x32xf32>
    %cst_203 = arith.constant 0.000000e+00 : f32
    %484 = vector.broadcast %cst_203 : f32 to vector<8x2x32xf32>
    %485 = tpu.concatenate %483, %484 in 1 : vector<8x6x32xf32>, vector<8x2x32xf32> -> vector<8x8x32xf32>
    %c0_204 = arith.constant 0 : index
    %c24 = arith.constant 24 : index
    %c0_205 = arith.constant 0 : index
    %c0_206 = arith.constant 0 : index
    %486 = vector.load %arg14[%c0_204, %c24, %c0_205, %c0_206] : memref<1x25x1x32xf32, #tpu.memory_space<vmem>>, vector<1x1x1x32xf32>
    %487 = vector.shape_cast %486 : vector<1x1x1x32xf32> to vector<1x32xf32>
    %488 = vector.shape_cast %487 : vector<1x32xf32> to vector<1x1x32xf32>
    %489 = vector.broadcast %488 : vector<1x1x32xf32> to vector<8x8x32xf32>
    %490 = arith.mulf %485, %489 : vector<8x8x32xf32>
    %491 = arith.addf %479, %490 : vector<8x8x32xf32>
    %492 = vector.shape_cast %491 : vector<8x8x32xf32> to vector<64x32xf32>
    %c0_207 = arith.constant 0 : index
    %c0_208 = arith.constant 0 : index
    %c0_209 = arith.constant 0 : index
    %493 = vector.load %arg15[%c0_207, %c0_208, %c0_209] : memref<1x1x32xf32, #tpu.memory_space<vmem>>, vector<1x1x32xf32>
    %494 = vector.shape_cast %493 : vector<1x1x32xf32> to vector<1x32xf32>
    %495 = vector.broadcast %494 : vector<1x32xf32> to vector<64x32xf32>
    %496 = arith.addf %492, %495 : vector<64x32xf32>
    %cst_210 = arith.constant 5.000000e-01 : f32
    %497 = vector.broadcast %cst_210 : f32 to vector<64x32xf32>
    %498 = arith.mulf %497, %496 : vector<64x32xf32>
    %cst_211 = arith.constant 4.471500e-02 : f32
    %499 = vector.broadcast %cst_211 : f32 to vector<64x32xf32>
    %500 = arith.mulf %499, %496 : vector<64x32xf32>
    %501 = arith.mulf %500, %496 : vector<64x32xf32>
    %502 = arith.mulf %501, %496 : vector<64x32xf32>
    %503 = arith.addf %496, %502 : vector<64x32xf32>
    %cst_212 = arith.constant 0.797884583 : f32
    %504 = vector.broadcast %cst_212 : f32 to vector<64x32xf32>
    %505 = arith.mulf %504, %503 : vector<64x32xf32>
    %506 = math.tanh %505 : vector<64x32xf32>
    %cst_213 = arith.constant 1.000000e+00 : f32
    %507 = vector.broadcast %cst_213 : f32 to vector<64x32xf32>
    %508 = arith.addf %507, %506 : vector<64x32xf32>
    %509 = arith.mulf %498, %508 : vector<64x32xf32>
    %510 = arith.addf %219, %509 : vector<64x32xf32>
    %511 = arith.truncf %510 : vector<64x32xf32> to vector<64x32xbf16>
    %c0_214 = arith.constant 0 : index
    %c0_215 = arith.constant 0 : index
    %c0_216 = arith.constant 0 : index
    %512 = vector.load %arg16[%c0_214, %c0_215, %c0_216] : memref<1x32x16xbf16, #tpu.memory_space<vmem>>, vector<1x32x16xbf16>
    %513 = vector.shape_cast %512 : vector<1x32x16xbf16> to vector<32x16xbf16>
    %cst_217 = arith.constant dense<0.000000e+00> : vector<64x16xf32>
    %514 = tpu.matmul %511, %513, %cst_217 {dimension_numbers = #tpu.dot_dimension_numbers<[1], [0], [0], [1], [0, 0, 1, 1], [], []>} : vector<64x32xbf16>, vector<32x16xbf16>, vector<64x16xf32> -> vector<64x16xf32>
    %515 = arith.addf %172, %514 : vector<64x16xf32>
    %c0_218 = arith.constant 0 : index
    %c0_219 = arith.constant 0 : index
    %c0_220 = arith.constant 0 : index
    %516 = vector.load %arg17[%c0_218, %c0_219, %c0_220] : memref<1x1x16xf32, #tpu.memory_space<vmem>>, vector<1x1x16xf32>
    %517 = vector.shape_cast %516 : vector<1x1x16xf32> to vector<1x16xf32>
    %518 = vector.broadcast %517 : vector<1x16xf32> to vector<64x16xf32>
    %519 = arith.addf %515, %518 : vector<64x16xf32>
    %c0_221 = arith.constant 0 : index
    %c0_222 = arith.constant 0 : index
    %520 = vector.load %arg22[%c0_221, %c0_222] : memref<64x16xf32, #tpu.memory_space<vmem>>, vector<64x16xf32>
    tpu.vector_store %arg22[%c0_221, %c0_222], %519 {strides = array<i32>} : memref<64x16xf32, #tpu.memory_space<vmem>>, vector<64x16xf32>,
    %c1_i32_223 = arith.constant 1 : i32
    %521 = arith.cmpi eq, %arg1, %c1_i32_223 : i32
    %522 = arith.extui %521 : i1 to i32
    %c0_i32_224 = arith.constant 0 : i32
    %523 = arith.cmpi ne, %522, %c0_i32_224 : i32
    scf.if %523 {
      %524 = vector.shape_cast %519 : vector<64x16xf32> to vector<8x8x16xf32>
      %cst_225 = arith.constant 0.000000e+00 : f32
      %525 = vector.broadcast %cst_225 : f32 to vector<1x8x16xf32>
      %526 = vector.extract_strided_slice %524 {offsets = [0, 0, 0], sizes = [7, 8, 16], strides = [1, 1, 1]} : vector<8x8x16xf32> to vector<7x8x16xf32>
      %527 = tpu.concatenate %525, %526 in 0 : vector<1x8x16xf32>, vector<7x8x16xf32> -> vector<8x8x16xf32>
      %cst_226 = arith.constant 0.000000e+00 : f32
      %528 = vector.broadcast %cst_226 : f32 to vector<8x1x16xf32>
      %529 = vector.extract_strided_slice %527 {offsets = [0, 0, 0], sizes = [8, 7, 16], strides = [1, 1, 1]} : vector<8x8x16xf32> to vector<8x7x16xf32>
      %530 = tpu.concatenate %528, %529 in 1 : vector<8x1x16xf32>, vector<8x7x16xf32> -> vector<8x8x16xf32>
      %cst_227 = arith.constant 0.000000e+00 : f32
      %531 = vector.broadcast %cst_227 : f32 to vector<1x8x16xf32>
      %532 = vector.extract_strided_slice %524 {offsets = [0, 0, 0], sizes = [7, 8, 16], strides = [1, 1, 1]} : vector<8x8x16xf32> to vector<7x8x16xf32>
      %533 = tpu.concatenate %531, %532 in 0 : vector<1x8x16xf32>, vector<7x8x16xf32> -> vector<8x8x16xf32>
      %cst_228 = arith.constant 0.000000e+00 : f32
      %534 = vector.broadcast %cst_228 : f32 to vector<1x8x16xf32>
      %535 = vector.extract_strided_slice %524 {offsets = [0, 0, 0], sizes = [7, 8, 16], strides = [1, 1, 1]} : vector<8x8x16xf32> to vector<7x8x16xf32>
      %536 = tpu.concatenate %534, %535 in 0 : vector<1x8x16xf32>, vector<7x8x16xf32> -> vector<8x8x16xf32>
      %537 = vector.extract_strided_slice %536 {offsets = [0, 1, 0], sizes = [8, 7, 16], strides = [1, 1, 1]} : vector<8x8x16xf32> to vector<8x7x16xf32>
      %cst_229 = arith.constant 0.000000e+00 : f32
      %538 = vector.broadcast %cst_229 : f32 to vector<8x1x16xf32>
      %539 = tpu.concatenate %537, %538 in 1 : vector<8x7x16xf32>, vector<8x1x16xf32> -> vector<8x8x16xf32>
      %cst_230 = arith.constant 0.000000e+00 : f32
      %540 = vector.broadcast %cst_230 : f32 to vector<8x1x16xf32>
      %541 = vector.extract_strided_slice %524 {offsets = [0, 0, 0], sizes = [8, 7, 16], strides = [1, 1, 1]} : vector<8x8x16xf32> to vector<8x7x16xf32>
      %542 = tpu.concatenate %540, %541 in 1 : vector<8x1x16xf32>, vector<8x7x16xf32> -> vector<8x8x16xf32>
      %543 = vector.extract_strided_slice %524 {offsets = [0, 1, 0], sizes = [8, 7, 16], strides = [1, 1, 1]} : vector<8x8x16xf32> to vector<8x7x16xf32>
      %cst_231 = arith.constant 0.000000e+00 : f32
      %544 = vector.broadcast %cst_231 : f32 to vector<8x1x16xf32>
      %545 = tpu.concatenate %543, %544 in 1 : vector<8x7x16xf32>, vector<8x1x16xf32> -> vector<8x8x16xf32>
      %546 = vector.extract_strided_slice %524 {offsets = [1, 0, 0], sizes = [7, 8, 16], strides = [1, 1, 1]} : vector<8x8x16xf32> to vector<7x8x16xf32>
      %cst_232 = arith.constant 0.000000e+00 : f32
      %547 = vector.broadcast %cst_232 : f32 to vector<1x8x16xf32>
      %548 = tpu.concatenate %546, %547 in 0 : vector<7x8x16xf32>, vector<1x8x16xf32> -> vector<8x8x16xf32>
      %cst_233 = arith.constant 0.000000e+00 : f32
      %549 = vector.broadcast %cst_233 : f32 to vector<8x1x16xf32>
      %550 = vector.extract_strided_slice %548 {offsets = [0, 0, 0], sizes = [8, 7, 16], strides = [1, 1, 1]} : vector<8x8x16xf32> to vector<8x7x16xf32>
      %551 = tpu.concatenate %549, %550 in 1 : vector<8x1x16xf32>, vector<8x7x16xf32> -> vector<8x8x16xf32>
      %552 = vector.extract_strided_slice %524 {offsets = [1, 0, 0], sizes = [7, 8, 16], strides = [1, 1, 1]} : vector<8x8x16xf32> to vector<7x8x16xf32>
      %cst_234 = arith.constant 0.000000e+00 : f32
      %553 = vector.broadcast %cst_234 : f32 to vector<1x8x16xf32>
      %554 = tpu.concatenate %552, %553 in 0 : vector<7x8x16xf32>, vector<1x8x16xf32> -> vector<8x8x16xf32>
      %555 = vector.extract_strided_slice %524 {offsets = [1, 0, 0], sizes = [7, 8, 16], strides = [1, 1, 1]} : vector<8x8x16xf32> to vector<7x8x16xf32>
      %cst_235 = arith.constant 0.000000e+00 : f32
      %556 = vector.broadcast %cst_235 : f32 to vector<1x8x16xf32>
      %557 = tpu.concatenate %555, %556 in 0 : vector<7x8x16xf32>, vector<1x8x16xf32> -> vector<8x8x16xf32>
      %558 = vector.extract_strided_slice %557 {offsets = [0, 1, 0], sizes = [8, 7, 16], strides = [1, 1, 1]} : vector<8x8x16xf32> to vector<8x7x16xf32>
      %cst_236 = arith.constant 0.000000e+00 : f32
      %559 = vector.broadcast %cst_236 : f32 to vector<8x1x16xf32>
      %560 = tpu.concatenate %558, %559 in 1 : vector<8x7x16xf32>, vector<8x1x16xf32> -> vector<8x8x16xf32>
      %561 = tpu.concatenate %530, %533, %539, %542, %524, %545, %551, %554, %560 in 2 : vector<8x8x16xf32>, vector<8x8x16xf32>, vector<8x8x16xf32>, vector<8x8x16xf32>, vector<8x8x16xf32>, vector<8x8x16xf32>, vector<8x8x16xf32>, vector<8x8x16xf32>, vector<8x8x16xf32> -> vector<8x8x144xf32>
      %562 = vector.shape_cast %561 : vector<8x8x144xf32> to vector<64x144xf32>
      %563 = arith.truncf %562 : vector<64x144xf32> to vector<64x144xbf16>
      %c0_237 = arith.constant 0 : index
      %c0_238 = arith.constant 0 : index
      %564 = vector.load %arg19[%c0_237, %c0_238] : memref<144x16xbf16, #tpu.memory_space<vmem>>, vector<144x16xbf16>
      %cst_239 = arith.constant dense<0.000000e+00> : vector<64x16xf32>
      %565 = tpu.matmul %563, %564, %cst_239 {dimension_numbers = #tpu.dot_dimension_numbers<[1], [0], [0], [1], [0, 0, 1, 1], [], []>} : vector<64x144xbf16>, vector<144x16xbf16>, vector<64x16xf32> -> vector<64x16xf32>
      %c0_240 = arith.constant 0 : index
      %c0_241 = arith.constant 0 : index
      %566 = vector.load %arg20[%c0_240, %c0_241] : memref<1x16xf32, #tpu.memory_space<vmem>>, vector<1x16xf32>
      %567 = vector.broadcast %566 : vector<1x16xf32> to vector<64x16xf32>
      %568 = arith.addf %565, %567 : vector<64x16xf32>
      %c0_242 = arith.constant 0 : index
      %c0_243 = arith.constant 0 : index
      %c0_244 = arith.constant 0 : index
      %569 = vector.load %arg2[%c0_242, %c0_243, %c0_244] : memref<1x64x16xf32, #tpu.memory_space<vmem>>, vector<1x64x16xf32>
      %570 = vector.shape_cast %569 : vector<1x64x16xf32> to vector<64x16xf32>
      %571 = arith.addf %570, %568 : vector<64x16xf32>
      %c0_245 = arith.constant 0 : index
      %c0_246 = arith.constant 0 : index
      %c0_247 = arith.constant 0 : index
      %572 = vector.load %arg21[%c0_245, %c0_246, %c0_247] : memref<1x64x16xf32, #tpu.memory_space<vmem>>, vector<1x64x16xf32>
      %573 = vector.shape_cast %572 : vector<1x64x16xf32> to vector<64x16xf32>
      %574 = vector.shape_cast %571 : vector<64x16xf32> to vector<1x64x16xf32>
      tpu.vector_store %arg21[%c0_245, %c0_246, %c0_247], %574 {strides = array<i32>} : memref<1x64x16xf32, #tpu.memory_space<vmem>>, vector<1x64x16xf32>,
    } else {
    }
    return
  }
  func.func @transform_0(%arg0: i32, %arg1: i32) -> (i32, i32, i32) {
    %c0_i32 = arith.constant 0 : i32
    %c0_i32_0 = arith.constant 0 : i32
    %c0_i32_1 = arith.constant 0 : i32
    return %arg0, %c0_i32, %c0_i32_0 : i32, i32, i32
  }
  func.func @transform_1(%arg0: i32, %arg1: i32) -> (i32, i32, i32) {
    %c0_i32 = arith.constant 0 : i32
    %c0_i32_0 = arith.constant 0 : i32
    %c0_i32_1 = arith.constant 0 : i32
    return %arg1, %c0_i32, %c0_i32_0 : i32, i32, i32
  }
  func.func @transform_2(%arg0: i32, %arg1: i32) -> (i32, i32, i32) {
    %c0_i32 = arith.constant 0 : i32
    %c0_i32_0 = arith.constant 0 : i32
    %c0_i32_1 = arith.constant 0 : i32
    return %arg1, %c0_i32, %c0_i32_0 : i32, i32, i32
  }
  func.func @transform_3(%arg0: i32, %arg1: i32) -> (i32, i32, i32) {
    %c0_i32 = arith.constant 0 : i32
    %c0_i32_0 = arith.constant 0 : i32
    %c0_i32_1 = arith.constant 0 : i32
    return %arg1, %c0_i32, %c0_i32_0 : i32, i32, i32
  }
  func.func @transform_4(%arg0: i32, %arg1: i32) -> (i32, i32, i32) {
    %c0_i32 = arith.constant 0 : i32
    %c0_i32_0 = arith.constant 0 : i32
    %c0_i32_1 = arith.constant 0 : i32
    return %arg1, %c0_i32, %c0_i32_0 : i32, i32, i32
  }
  func.func @transform_5(%arg0: i32, %arg1: i32) -> (i32, i32, i32, i32) {
    %c0_i32 = arith.constant 0 : i32
    %c0_i32_0 = arith.constant 0 : i32
    %c0_i32_1 = arith.constant 0 : i32
    %c0_i32_2 = arith.constant 0 : i32
    return %arg1, %c0_i32, %c0_i32_0, %c0_i32_1 : i32, i32, i32, i32
  }
  func.func @transform_6(%arg0: i32, %arg1: i32) -> (i32, i32, i32) {
    %c0_i32 = arith.constant 0 : i32
    %c0_i32_0 = arith.constant 0 : i32
    %c0_i32_1 = arith.constant 0 : i32
    return %arg1, %c0_i32, %c0_i32_0 : i32, i32, i32
  }
  func.func @transform_7(%arg0: i32, %arg1: i32) -> (i32, i32, i32) {
    %c0_i32 = arith.constant 0 : i32
    %c0_i32_0 = arith.constant 0 : i32
    %c0_i32_1 = arith.constant 0 : i32
    return %arg1, %c0_i32, %c0_i32_0 : i32, i32, i32
  }
  func.func @transform_8(%arg0: i32, %arg1: i32) -> (i32, i32, i32) {
    %c0_i32 = arith.constant 0 : i32
    %c0_i32_0 = arith.constant 0 : i32
    %c0_i32_1 = arith.constant 0 : i32
    return %arg1, %c0_i32, %c0_i32_0 : i32, i32, i32
  }
  func.func @transform_9(%arg0: i32, %arg1: i32) -> (i32, i32, i32) {
    %c0_i32 = arith.constant 0 : i32
    %c0_i32_0 = arith.constant 0 : i32
    %c0_i32_1 = arith.constant 0 : i32
    return %arg1, %c0_i32, %c0_i32_0 : i32, i32, i32
  }
  func.func @transform_10(%arg0: i32, %arg1: i32) -> (i32, i32, i32) {
    %c0_i32 = arith.constant 0 : i32
    %c0_i32_0 = arith.constant 0 : i32
    %c0_i32_1 = arith.constant 0 : i32
    return %arg1, %c0_i32, %c0_i32_0 : i32, i32, i32
  }
  func.func @transform_11(%arg0: i32, %arg1: i32) -> (i32, i32, i32) {
    %c0_i32 = arith.constant 0 : i32
    %c0_i32_0 = arith.constant 0 : i32
    %c0_i32_1 = arith.constant 0 : i32
    return %arg1, %c0_i32, %c0_i32_0 : i32, i32, i32
  }
  func.func @transform_12(%arg0: i32, %arg1: i32) -> (i32, i32, i32, i32) {
    %c0_i32 = arith.constant 0 : i32
    %c0_i32_0 = arith.constant 0 : i32
    %c0_i32_1 = arith.constant 0 : i32
    %c0_i32_2 = arith.constant 0 : i32
    return %arg1, %c0_i32, %c0_i32_0, %c0_i32_1 : i32, i32, i32, i32
  }
  func.func @transform_13(%arg0: i32, %arg1: i32) -> (i32, i32, i32) {
    %c0_i32 = arith.constant 0 : i32
    %c0_i32_0 = arith.constant 0 : i32
    %c0_i32_1 = arith.constant 0 : i32
    return %arg1, %c0_i32, %c0_i32_0 : i32, i32, i32
  }
  func.func @transform_14(%arg0: i32, %arg1: i32) -> (i32, i32, i32) {
    %c0_i32 = arith.constant 0 : i32
    %c0_i32_0 = arith.constant 0 : i32
    %c0_i32_1 = arith.constant 0 : i32
    return %arg1, %c0_i32, %c0_i32_0 : i32, i32, i32
  }
  func.func @transform_15(%arg0: i32, %arg1: i32) -> (i32, i32, i32) {
    %c0_i32 = arith.constant 0 : i32
    %c0_i32_0 = arith.constant 0 : i32
    %c0_i32_1 = arith.constant 0 : i32
    return %arg1, %c0_i32, %c0_i32_0 : i32, i32, i32
  }
  func.func @transform_16(%arg0: i32, %arg1: i32) -> (i32, i32, i32) {
    %c0_i32 = arith.constant 0 : i32
    %c0_i32_0 = arith.constant 0 : i32
    %c0_i32_1 = arith.constant 0 : i32
    %c0_i32_2 = arith.constant 0 : i32
    return %c0_i32, %c0_i32_0, %c0_i32_1 : i32, i32, i32
  }
  func.func @transform_17(%arg0: i32, %arg1: i32) -> (i32, i32) {
    %c0_i32 = arith.constant 0 : i32
    %c0_i32_0 = arith.constant 0 : i32
    %c0_i32_1 = arith.constant 0 : i32
    return %c0_i32, %c0_i32_0 : i32, i32
  }
  func.func @transform_18(%arg0: i32, %arg1: i32) -> (i32, i32) {
    %c0_i32 = arith.constant 0 : i32
    %c0_i32_0 = arith.constant 0 : i32
    %c0_i32_1 = arith.constant 0 : i32
    return %c0_i32, %c0_i32_0 : i32, i32
  }
  func.func @transform_19(%arg0: i32, %arg1: i32) -> (i32, i32, i32) {
    %c0_i32 = arith.constant 0 : i32
    %c0_i32_0 = arith.constant 0 : i32
    %c0_i32_1 = arith.constant 0 : i32
    return %arg0, %c0_i32, %c0_i32_0 : i32, i32, i32
  }
}

</mosaic_0001>

<bundles_post_ra>
// kernel: tpu_custom_call.1
= control target key start
LH: loop header
LB: loop body
LE: loop exit
PB: predicated region body
PF: predicated region fallthrough
CT: control target
= control target key end

     0   :  { %s11183_s0 = inlined_call_operand.vmem [shape: f32[2,64,16], index: 0, kind: input, shape index: {}]   ;;  %s11184_s1 = inlined_call_operand.hbm [shape: f32[2,1,16], index: 1, kind: input, shape index: {}]   ;;  %s11185_s2 = inlined_call_operand.hbm [shape: f32[2,1,16], index: 2, kind: input, shape index: {}]   ;;  %s11186_s3 = inlined_call_operand.vmem [shape: bf16[2,16,48], index: 3, kind: input, shape index: {}]   ;;  %s11187_s4 = inlined_call_operand.vmem [shape: f32[2,1,48], index: 4, kind: input, shape index: {}]   ;;  %s11188_s5 = inlined_call_operand.vmem [shape: f32[2,4,16,16], index: 5, kind: input, shape index: {}]   ;;  %s11189_s6 = inlined_call_operand.vmem [shape: bf16[2,16,16], index: 6, kind: input, shape index: {}]   ;;  %s11190_s7 = inlined_call_operand.hbm [shape: f32[2,1,16], index: 7, kind: input, shape index: {}]   ;;  %s11191_s8 = inlined_call_operand.hbm [shape: f32[2,1,16], index: 8, kind: input, shape index: {}]   ;;  %s11192_s9 = inlined_call_operand.hbm [shape: f32[2,1,16], index: 9, kind: input, shape index: {}]   ;;  %s11193_s10 = inlined_call_operand.hbm [shape: bf16[2,16,32], index: 10, kind: input, shape index: {}]   ;;  %s11194_s11 = inlined_call_operand.hbm [shape: f32[2,1,32], index: 11, kind: input, shape index: {}]   ;;  %s11195_s12 = inlined_call_operand.vmem [shape: f32[2,25,1,32], index: 12, kind: input, shape index: {}]   ;;  %s11196_s13 = inlined_call_operand.vmem [shape: f32[2,1,32], index: 13, kind: input, shape index: {}]   ;;  %s11197_s14 = inlined_call_operand.vmem [shape: bf16[2,32,16], index: 14, kind: input, shape index: {}]   ;;  %s11198_s15 = inlined_call_operand.vmem [shape: f32[2,1,16], index: 15, kind: input, shape index: {}]   ;;  %s11199_s16 = inlined_call_operand.vmem [shape: f32[4,16,16], index: 16, kind: input, shape index: {}]   ;;  %s11200_s17 = inlined_call_operand.vmem [shape: bf16[144,16], index: 17, kind: input, shape index: {}]   ;;  %s11201_s18 = inlined_call_operand.vmem [shape: f32[1,16], index: 18, kind: input, shape index: {}]   ;;  %s11202_s19 = inlined_call_operand.vmem [shape: f32[2,64,16], index: 19, kind: output, shape index: {}]  }
   0x1   :  { %11241 = sst [smem:[#allocation43_spill]] %s11183_s0 }
   0x2   :  { %11242 = sst [smem:[#allocation44_spill]] %s11184_s1 }
   0x3   :  { %11243 = sst [smem:[#allocation45_spill]] %s11185_s2 }
   0x4   :  { %11244 = sst [smem:[#allocation46_spill]] %s11186_s3 }
   0x5   :  { %11245 = sst [smem:[#allocation47_spill]] %s11188_s5 }
   0x6   :  { %11246 = sst [smem:[#allocation48_spill]] %s11189_s6 }
   0x7   :  { %11247 = sst [smem:[#allocation49_spill]] %s11190_s7 }
   0x8   :  { %11248 = sst [smem:[#allocation50_spill]] %s11191_s8 }
   0x9   :  { %11249 = sst [smem:[#allocation51_spill]] %s11192_s9 }
   0xa   :  { %11250 = sst [smem:[#allocation52_spill]] %s11193_s10 }
   0xb   :  { %11251 = sst [smem:[#allocation53_spill]] %s11194_s11 }
   0xc   :  { %11252 = sst [smem:[#allocation54_spill]] %s11195_s12 }
   0xd   :  { %11253 = sst [smem:[#allocation55_spill]] %s11196_s13 }
   0xe   :  { %11254 = sst [smem:[#allocation56_spill]] %s11197_s14 }
   0xf   :  { %11255 = sst [smem:[#allocation57_spill]] %s11198_s15 }
  0x10   :  { %11256 = sst [smem:[#allocation58_spill]] %s11199_s16 }
  0x11   :  { %11257 = sst [smem:[#allocation59_spill]] %s11200_s17 }
  0x12   :  { %11258 = sst [smem:[#allocation60_spill]] %s11201_s18 }
  0x13   :  { %11259 = sst [smem:[#allocation61_spill]] %s11202_s19 }
  0x14   :  { %24 = vsyncpa [#allocation4], 0 }
  0x15   :  { %26 = vsyncpa [#allocation4 + $0x1], 0 }
  0x16   :  { %27 = vsyncpa [#allocation6], 0 }
  0x17   :  { %29 = vsyncpa [#allocation6 + $0x1], 0 }
  0x18   :  { %30 = vsyncpa [#allocation9], 0 }
  0x19   :  { %32 = vsyncpa [#allocation9 + $0x1], 0 }
  0x1a   :  { %33 = vsyncpa [#allocation12], 0 }
  0x1b   :  { %35 = vsyncpa [#allocation12 + $0x1], 0  ;;  %s8812_s0 = smov 0   ;;  %s8814_s30 = smov 0  }
  0x1c   :  { %s8816_s20 = smov 0   ;;  %s8818_s21 = smov 0  }
  0x1d   :  { %s8820_s1 = smov 0   ;;  %s8822_s22 = smov 0  }
  0x1e   :  { %s8824_s2 = smov 0   ;;  %s8826_s23 = smov 0  }
  0x1f LB: > { %11260 = sst [smem:[#allocation18_spill]] %s8653_s30  ;;  %s11206_s24 = sadd.s32 4294967295, %s8677_s23   ;;  %s8677_s23 = sphi %s8826_s23, %s41_s23   ;;  %s8673_s2 = sphi %s8824_s2, %s11360_s2   ;;  %s8669_s22 = sphi %s8822_s22, %s11359_s22   ;;  %s8665_s1 = sphi %s8820_s1, %s11358_s1   ;;  %s8661_s21 = sphi %s8818_s21, %s11357_s21   ;;  %s8657_s20 = sphi %s8816_s20, %s11356_s20   ;;  %s8653_s30 = sphi %s8814_s30, %s11355_s30   ;;  %s8649_s0 = sphi %s8812_s0, %s11354_s0  }
  0x20   : > { %11261 = sst [smem:[#allocation19_spill]] %s8657_s20  ;;  %s50_s25 = sadd.s32 1, %s8669_s22 }
  0x21   : > { %11262 = sst [smem:[#allocation20_spill]] %s8669_s22  ;;  %p51_p0 = scmp.ge.s32.totalorder %s50_s25, 2 }
  0x22   : > { %11263 = sst [smem:[#allocation21_spill]] %s8673_s2  ;;  %s53_s3 = sadd.s32 1, %s8673_s2 }
  0x23   : > { %11264 = sst [smem:[#allocation22_spill]] %s8677_s23  ;;  %s86_s26 = sadd.s32 1, %s8657_s20 }
  0x24   : > { %p93_p1 = scmp.ne.s32.totalorder %s8657_s20, %s8653_s30  ;;  %s11362_s25 = smov (%p51_p0, %s50_s25), 0 }
  0x25   : > { %11265 = sst [smem:[#allocation23_spill]] %s11362_s25  ;;  %s11364_s3 = smov (!%p51_p0, %s53_s3), %s8673_s2 }
  0x26   : > { %s83_s27 = ssub.s32 %s8669_s22, %s11362_s25  ;;  %p94_p2 = scmp.eq.s32.totalorder %s8677_s23, 0 }
  0x27   : > { %p55_p3 = scmp.ge.s32.totalorder %s11364_s3, 2  ;;  %p84_p4 = scmp.eq.s32.totalorder %s83_s27, 0 }
  0x28   : > { %p95_p5 = por %p94_p2, %p93_p1  ;;  %p99_p6 = scmp.ne.s32.totalorder %s8653_s30, %s8649_s0 }
  0x29   : > { %s11366_s3 = smov (%p55_p3, %s11364_s3), 0  ;;  %p100_p7 = scmp.eq.s32.totalorder %s11206_s24, 0 }
  0x2a   : > { %11266 = sst [smem:[#allocation24_spill]] %s11366_s3  ;;  %p7784_p8 = scmp.lt.s32.totalorder %s8677_s23, 4 }
  0x2b   : > { %s8866_s28 = scalar_select %p84_p4, %s8657_s20, %s86_s26  }
  0x2c   : > { %s8872_s29 = sand.u32 1, %s8657_s20   ;;  %p8874_p9 = por %p100_p7, %p99_p6 }
  0x2d   : > { %11267 = sst [smem:[#allocation25_spill]] %s8866_s28  ;;  %s8879_s25 = sshll.u32 %s8669_s22, 4 }
  0x2e   : > { %s11268_s18 = scalar_select %p8874_p9, 1, 0 }
  0x2f   : > { %p8881_p10 = pnand %p7784_p8, %p95_p5  ;;  %s8886_s0 = sand.u32 1, %s8677_s23  }
  0x30   : > { %s11270_s3 = sld [smem:[#allocation45_spill]]  ;;  %s613_s28 = scalar_lea.vmem [#allocation5], %s8872_s29 }
  0x31   : > { %s11269_s27 = scalar_select %p8881_p10, 1, 0 }
  0x32   : > { %s620_s20 = sshll.u32 %s613_s28, 4  ;;  %p8903_p13 = pneg %p8881_p10  ;;  %s8895_s20 = int_to_ptr.vmem [resolvable:$true] %s620_s20 }
  0x36   : > { %s8892_s2 = scalar_lea.hbm %s11270_s3, %s8879_s25  ;;  %s8394_s15 = scalar_lea.hbm %s11270_s3, 32 }
  0x37   : > { %s8389_s16 = scalar_lea.hbm %s8892_s2, 16  ;;  %p8395_p2 = scmp.lt.u32.totalorder %s8892_s2, %s11270_s3 }
  0x38   : > { %p8390_p12 = scmp.ne.s32.totalorder %s8892_s2, %s8389_s16  ;;  %p8396_p3 = scmp.lt.u32.totalorder %s8394_s15, %s8389_s16 }
  0x39   : > { %p8398_p5 = scmp.lt.u32.totalorder %s8389_s16, %s8892_s2 }
  0x3a   : > { %p8392_p0 = pnand %p8903_p13, %p8390_p12  ;;  %p8397_p4 = por %p8396_p3, %p8395_p2 }
  0x3c   : > { %p8393_p1 = pneg %p8392_p0  ;;  %p8399_p6 = por %p8398_p5, %p8397_p4 }
  0x3e   : > { %p8400_p7 = pnand %p8399_p6, %p8393_p1 }
  0x40   : > { %8403 = shalt.err (!%p8400_p7)
}
  0x41   : > { %s8404_s17 = scalar_lea.vmem %s8895_s20, 16  ;;  %s8679_s24 = smov [#allocation5]  }
  0x42   : > { %p8405_p8 = scmp.ne.s32.totalorder %s8895_s20, %s8404_s17  ;;  %s8409_s26 = sshll.u32 %s8679_s24, 4  ;;  %s8410_s26 = int_to_ptr.vmem [resolvable:$false] %s8409_s26 }
  0x43   : > { %s8411_s14 = scalar_lea.vmem %s8410_s26, 32  ;;  %p8412_p11 = scmp.lt.s32.totalorder %s8895_s20, %s8410_s26 }
  0x44   : > { %p8407_p12 = pnand %p8405_p8, %p8903_p13  ;;  %p8413_p9 = scmp.lt.s32.totalorder %s8411_s14, %s8404_s17 }
  0x46   : > { %p8408_p0 = pneg %p8407_p12  ;;  %p8414_p2 = por %p8413_p9, %p8412_p11 }
  0x48   : > { %p8415_p3 = pnand %p8414_p2, %p8408_p0 }
  0x4a   : > { %8418 = shalt.err (!%p8415_p3)
}
  0x4b   : > { %s11272_s15 = scalar_lea.sflag [#allocation6], %s8886_s0  ;;  %p771_p1 = scmp.lt.s32.totalorder %s8677_s23, 5 }
  0x4c   : > { %7768 = dma.hbm_to_vmem [thread:$0]  (!%p8881_p10), %s8892_s2, 16, %s8895_s20, %s11272_s15  }
  0x4d   : > { %s11273_s8 = sld [smem:[#allocation50_spill]]  ;;  %p11274_p9 = scmp.ge.s32.totalorder %s8677_s23, 1 }
  0x4e   : > { %s677_s26 = scalar_lea.vmem [#allocation8], %s8872_s29  ;;  %s6919_s20 = sshll.u32 %s8872_s29, 3 }
  0x4f   : > { %p8937_p11 = pnand %p11274_p9, %p771_p1  ;;  %s684_s14 = sshll.u32 %s677_s26, 4  ;;  %s8942_s14 = int_to_ptr.vmem [resolvable:$true] %s684_s14 }
  0x50   : > { %s11213_s2 = scalar_lea.sflag [#allocation9], %s8886_s0 }
  0x51   : > { %s11275_s24 = scalar_select %p8937_p11, 1, 0 }
  0x53   : > { %s8933_s28 = scalar_lea.hbm %s11273_s8, %s8879_s25  ;;  %s8424_s3 = scalar_lea.hbm %s11273_s8, 32 }
  0x54   : > { %s8419_s15 = scalar_lea.hbm %s8933_s28, 16  ;;  %p8425_p7 = scmp.lt.u32.totalorder %s8933_s28, %s11273_s8 }
  0x55   : > { %p8420_p4 = scmp.ne.s32.totalorder %s8933_s28, %s8419_s15  ;;  %p8426_p8 = scmp.lt.u32.totalorder %s8424_s3, %s8419_s15 }
  0x56   : > { %p8428_p0 = scmp.lt.u32.totalorder %s8419_s15, %s8933_s28 }
  0x57   : > { %p8422_p5 = pnand %p8420_p4, %p8903_p13  ;;  %p8427_p12 = por %p8426_p8, %p8425_p7 }
  0x59   : > { %p8423_p6 = pneg %p8422_p5  ;;  %p8429_p2 = por %p8428_p0, %p8427_p12 }
  0x5b   : > { %p8430_p3 = pnand %p8429_p2, %p8423_p6 }
  0x5d   : > { %8433 = shalt.err (!%p8430_p3)
}
  0x5e   : > { %s8434_s26 = scalar_lea.vmem %s8942_s14, 16  ;;  %s8680_s16 = smov [#allocation8]  }
  0x5f   : > { %p8435_p1 = scmp.ne.s32.totalorder %s8942_s14, %s8434_s26  ;;  %s8439_s17 = sshll.u32 %s8680_s16, 4  ;;  %s8440_s17 = int_to_ptr.vmem [resolvable:$false] %s8439_s17 }
  0x60   : > { %s8441_s12 = scalar_lea.vmem %s8440_s17, 32  ;;  %p8442_p5 = scmp.lt.s32.totalorder %s8942_s14, %s8440_s17 }
  0x61   : > { %p8437_p9 = pnand %p8435_p1, %p8903_p13  ;;  %p8443_p11 = scmp.lt.s32.totalorder %s8441_s12, %s8434_s26 }
  0x63   : > { %p8438_p4 = pneg %p8437_p9  ;;  %p8444_p7 = por %p8443_p11, %p8442_p5 }
  0x65   : > { %p8445_p8 = pnand %p8444_p7, %p8438_p4 }
  0x67   : > { %8448 = shalt.err (!%p8445_p8)
}
  0x68   : > { %7774 = dma.hbm_to_vmem [thread:$0]  (!%p8881_p10), %s8933_s28, 16, %s8942_s14, %s11213_s2  }
  0x69   : > { %s7147_s13 = sshll.u32 %s8669_s22, 7  ;;  %s11276_s10 = sld [smem:[#allocation52_spill]] }
  0x6a   : > { %s712_s26 = scalar_lea.vmem [#allocation11], %s6919_s20  ;;  %s11215_s12 = scalar_lea.sflag [#allocation12], %s8886_s0 }
  0x6b   : > { %s719_s17 = sshll.u32 %s712_s26, 4  ;;  %s8977_s17 = int_to_ptr.vmem [resolvable:$true] %s719_s17 }
  0x6f   : > { %s8973_s16 = scalar_lea.hbm %s11276_s10, %s7147_s13  ;;  %s8454_s13 = scalar_lea.hbm %s11276_s10, 256 }
  0x70   : > { %s8449_s8 = scalar_lea.hbm %s8973_s16, 128  ;;  %p8455_p0 = scmp.lt.u32.totalorder %s8973_s16, %s11276_s10 }
  0x71   : > { %p8450_p11 = scmp.ne.s32.totalorder %s8973_s16, %s8449_s8  ;;  %p8456_p2 = scmp.lt.u32.totalorder %s8454_s13, %s8449_s8 }
  0x72   : > { %p8458_p1 = scmp.lt.u32.totalorder %s8449_s8, %s8973_s16 }
  0x73   : > { %p8452_p6 = pnand %p8450_p11, %p8903_p13  ;;  %p8457_p3 = por %p8456_p2, %p8455_p0 }
  0x75   : > { %p8453_p12 = pneg %p8452_p6  ;;  %p8459_p9 = por %p8458_p1, %p8457_p3 }
  0x77   : > { %p8460_p4 = pnand %p8459_p9, %p8453_p12 }
  0x79   : > { %8463 = shalt.err (!%p8460_p4)
}
  0x7a   : > { %s8464_s20 = scalar_lea.vmem %s8977_s17, 128  ;;  %s8681_s26 = smov [#allocation11]  }
  0x7b   : > { %p8465_p5 = scmp.ne.s32.totalorder %s8977_s17, %s8464_s20  ;;  %s8469_s28 = sshll.u32 %s8681_s26, 4  ;;  %s8470_s28 = int_to_ptr.vmem [resolvable:$false] %s8469_s28 }
  0x7c   : > { %s8471_s14 = scalar_lea.vmem %s8470_s28, 256  ;;  %p8472_p11 = scmp.lt.s32.totalorder %s8977_s17, %s8470_s28 }
  0x7d   : > { %p8467_p7 = pnand %p8465_p5, %p8903_p13  ;;  %p8473_p6 = scmp.lt.s32.totalorder %s8471_s14, %s8464_s20 }
  0x7f   : > { %p8468_p8 = pneg %p8467_p7  ;;  %p8474_p0 = por %p8473_p6, %p8472_p11 }
  0x81   : > { %p8475_p2 = pnand %p8474_p0, %p8468_p8 }
  0x83   : > { %8478 = shalt.err (!%p8475_p2)
}
  0x84   : > { %s8682_s8 = smov 64   ;;  %s8683_s13 = smov 4  }
  0x85   : > { %7780 = dma.hbm_to_vmem [thread:$0]  (!%p8881_p10), %s8973_s16, 128, %s8977_s17, %s11215_s12, %s8682_s8, %s8682_s8, %s8683_s13  }
  0x86   : > { %s11277_s20 = sld [smem:[#allocation44_spill]]  ;;  %s596_s14 = scalar_lea.vmem [#allocation3], %s8872_s29 }
  0x87   : > { %s603_s2 = sshll.u32 %s596_s14, 4  ;;  %s11279_s7 = sld [smem:[#allocation49_spill]]  ;;  %s9010_s2 = int_to_ptr.vmem [resolvable:$true] %s603_s2 }
  0x88   : > { %s594_s6 = scalar_lea.sflag [#allocation4], %s8872_s29 }
  0x8c   : > { %s11278_s26 = smov %s11277_s20  ;;  %s9007_s28 = scalar_lea.hbm %s11277_s20, %s8879_s25 }
  0x8d   : > { %s9016_s5 = scalar_lea.hbm %s11279_s7, %s8879_s25  ;;  %s8479_s16 = scalar_lea.hbm %s9007_s28, 16 }
  0x8e   : > { %p8480_p12 = scmp.ne.s32.totalorder %s9007_s28, %s8479_s16  ;;  %s8484_s13 = scalar_lea.hbm %s11278_s26, 32 }
  0x8f   : > { %p8485_p9 = scmp.lt.u32.totalorder %s9007_s28, %s11278_s26  ;;  %p8486_p4 = scmp.lt.u32.totalorder %s8484_s13, %s8479_s16 }
  0x90   : > { %p8482_p3 = pnand %p8480_p12, %p8903_p13  ;;  %p8488_p7 = scmp.lt.u32.totalorder %s8479_s16, %s9007_s28 }
  0x91   : > { %p8487_p5 = por %p8486_p4, %p8485_p9 }
  0x92   : > { %p8483_p1 = pneg %p8482_p3 }
  0x93   : > { %p8489_p8 = por %p8488_p7, %p8487_p5 }
  0x95   : > { %p8490_p11 = pnand %p8489_p8, %p8483_p1 }
  0x97   : > { %8493 = shalt.err (!%p8490_p11)
}
  0x98   : > { %s8494_s10 = scalar_lea.vmem %s9010_s2, 16  ;;  %s8684_s22 = smov [#allocation3]  }
  0x99   : > { %p8495_p6 = scmp.ne.s32.totalorder %s9010_s2, %s8494_s10  ;;  %s8499_s20 = sshll.u32 %s8684_s22, 4  ;;  %s8500_s20 = int_to_ptr.vmem [resolvable:$false] %s8499_s20 }
  0x9a   : > { %s8501_s14 = scalar_lea.vmem %s8500_s20, 32  ;;  %p8502_p12 = scmp.lt.s32.totalorder %s9010_s2, %s8500_s20 }
  0x9b   : > { %p8497_p0 = pnand %p8495_p6, %p8903_p13  ;;  %p8503_p3 = scmp.lt.s32.totalorder %s8501_s14, %s8494_s10 }
  0x9d   : > { %p8498_p2 = pneg %p8497_p0  ;;  %p8504_p9 = por %p8503_p3, %p8502_p12 }
  0x9f   : > { %p8505_p4 = pnand %p8504_p9, %p8498_p2 }
  0xa1   : > { %8508 = shalt.err (!%p8505_p4)
}
  0xa2   : > { %7765 = dma.hbm_to_vmem [thread:$0]  (!%p8881_p10), %s9007_s28, 16, %s9010_s2, %s594_s6  }
  0xa3   : > { %s660_s16 = scalar_lea.vmem [#allocation7], %s8872_s29  ;;  %s11280_s9 = sld [smem:[#allocation51_spill]] }
  0xa4   : > { %s667_s17 = sshll.u32 %s660_s16, 4  ;;  %s8509_s15 = scalar_lea.hbm %s9016_s5, 16  ;;  %s668_s17 = int_to_ptr.vmem [resolvable:$true] %s667_s17 }
  0xa5   : > { %p8510_p1 = scmp.ne.s32.totalorder %s9016_s5, %s8509_s15  ;;  %s8514_s20 = scalar_lea.hbm %s11279_s7, 32 }
  0xa6   : > { %p8515_p8 = scmp.lt.u32.totalorder %s9016_s5, %s11279_s7  ;;  %p8516_p11 = scmp.lt.u32.totalorder %s8514_s20, %s8509_s15 }
  0xa7   : > { %p8512_p5 = pnand %p8510_p1, %p8903_p13  ;;  %p8518_p0 = scmp.lt.u32.totalorder %s8509_s15, %s9016_s5 }
  0xa8   : > { %p8517_p6 = por %p8516_p11, %p8515_p8 }
  0xa9   : > { %s9045_s3 = scalar_lea.hbm %s11280_s9, %s8879_s25  ;;  %p8513_p7 = pneg %p8512_p5 }
  0xaa   : > { %p8519_p2 = por %p8518_p0, %p8517_p6 }
  0xac   : > { %p8520_p12 = pnand %p8519_p2, %p8513_p7 }
  0xae   : > { %8523 = shalt.err (!%p8520_p12)
}
  0xaf   : > { %s8524_s6 = scalar_lea.vmem %s668_s17, 16  ;;  %s8685_s2 = smov [#allocation7]  }
  0xb0   : > { %p8525_p3 = scmp.ne.s32.totalorder %s668_s17, %s8524_s6  ;;  %s8529_s28 = sshll.u32 %s8685_s2, 4  ;;  %s8530_s28 = int_to_ptr.vmem [resolvable:$false] %s8529_s28 }
  0xb1   : > { %s8531_s16 = scalar_lea.vmem %s8530_s28, 32  ;;  %p8532_p1 = scmp.lt.s32.totalorder %s668_s17, %s8530_s28 }
  0xb2   : > { %p8527_p9 = pnand %p8525_p3, %p8903_p13  ;;  %p8533_p5 = scmp.lt.s32.totalorder %s8531_s16, %s8524_s6 }
  0xb4   : > { %p8528_p4 = pneg %p8527_p9  ;;  %p8534_p10 = por %p8533_p5, %p8532_p1 }
  0xb6   : > { %p8535_p8 = pnand %p8534_p10, %p8528_p4 }
  0xb8   : > { %8538 = shalt.err (!%p8535_p8)
}
  0xb9   : > { %p11281_p11 = scmp.ne.s32.totalorder %s11269_s27, 0  ;;  %s11282_s12 = scalar_lea.sflag [#allocation6], %s8886_s0 }
  0xba   : > { %s694_s8 = scalar_lea.vmem [#allocation10], %s8872_s29  ;;  %s11283_s11 = sld [smem:[#allocation53_spill]] }
  0xbb   : > { %7771 = dma.hbm_to_vmem [thread:$0]  (!%p11281_p11), %s9016_s5, 16, %s668_s17, %s11282_s12  }
  0xbc   : > { %s701_s13 = sshll.u32 %s694_s8, 4  ;;  %s8539_s20 = scalar_lea.hbm %s9045_s3, 16  ;;  %s702_s13 = int_to_ptr.vmem [resolvable:$true] %s701_s13 }
  0xbd   : > { %p8540_p10 = scmp.ne.s32.totalorder %s9045_s3, %s8539_s20  ;;  %s8544_s2 = scalar_lea.hbm %s11280_s9, 32 }
  0xbe   : > { %p8545_p0 = scmp.lt.u32.totalorder %s9045_s3, %s11280_s9  ;;  %p8546_p2 = scmp.lt.u32.totalorder %s8544_s2, %s8539_s20 }
  0xbf   : > { %p8542_p7 = pnand %p8540_p10, %p8903_p13  ;;  %p8548_p3 = scmp.lt.u32.totalorder %s8539_s20, %s9045_s3 }
  0xc0   : > { %s9071_s22 = scalar_lea.hbm %s11283_s11, %s8879_s25  ;;  %p8547_p12 = por %p8546_p2, %p8545_p0 }
  0xc1   : > { %p8543_p6 = pneg %p8542_p7 }
  0xc2   : > { %p8549_p9 = por %p8548_p3, %p8547_p12 }
  0xc4   : > { %p8550_p4 = pnand %p8549_p9, %p8543_p6 }
  0xc6   : > { %8553 = shalt.err (!%p8550_p4)
}
  0xc7   : > { %s8554_s5 = scalar_lea.vmem %s702_s13, 16  ;;  %s8686_s25 = smov [#allocation10]  }
  0xc8   : > { %p8555_p1 = scmp.ne.s32.totalorder %s702_s13, %s8554_s5  ;;  %s8559_s17 = sshll.u32 %s8686_s25, 4  ;;  %s8560_s17 = int_to_ptr.vmem [resolvable:$false] %s8559_s17 }
  0xc9   : > { %s8561_s12 = scalar_lea.vmem %s8560_s17, 32  ;;  %p8562_p10 = scmp.lt.s32.totalorder %s702_s13, %s8560_s17 }
  0xca   : > { %p8557_p5 = pnand %p8555_p1, %p8903_p13  ;;  %p8563_p7 = scmp.lt.s32.totalorder %s8561_s12, %s8554_s5 }
  0xcc   : > { %p8558_p8 = pneg %p8557_p5  ;;  %p8564_p11 = por %p8563_p7, %p8562_p10 }
  0xce   : > { %p8565_p0 = pnand %p8564_p11, %p8558_p8 }
  0xd0   : > { %8568 = shalt.err (!%p8565_p0)
}
  0xd1   : > { %p11284_p2 = scmp.ne.s32.totalorder %s11269_s27, 0  ;;  %s11285_s8 = scalar_lea.sflag [#allocation9], %s8886_s0 }
  0xd2   : > { %s732_s15 = scalar_lea.vmem [#allocation13], %s8872_s29  ;;  %s8569_s20 = scalar_lea.hbm %s9071_s22, 16 }
  0xd3   : > { %7777 = dma.hbm_to_vmem [thread:$0]  (!%p11284_p2), %s9045_s3, 16, %s702_s13, %s11285_s8  }
  0xd4   : > { %s739_s10 = sshll.u32 %s732_s15, 4  ;;  %p8570_p6 = scmp.ne.s32.totalorder %s9071_s22, %s8569_s20  ;;  %s740_s10 = int_to_ptr.vmem [resolvable:$true] %s739_s10 }
  0xd5   : > { %s8574_s2 = scalar_lea.hbm %s11283_s11, 32  ;;  %p8575_p3 = scmp.lt.u32.totalorder %s9071_s22, %s11283_s11 }
  0xd6   : > { %p8572_p11 = pnand %p8570_p6, %p8903_p13  ;;  %p8576_p9 = scmp.lt.u32.totalorder %s8574_s2, %s8569_s20 }
  0xd7   : > { %p8578_p1 = scmp.lt.u32.totalorder %s8569_s20, %s9071_s22 }
  0xd8   : > { %p8573_p12 = pneg %p8572_p11  ;;  %p8577_p4 = por %p8576_p9, %p8575_p3 }
  0xda   : > { %p8579_p5 = por %p8578_p1, %p8577_p4 }
  0xdc   : > { %p8580_p8 = pnand %p8579_p5, %p8573_p12 }
  0xde   : > { %8583 = shalt.err (!%p8580_p8)
}
  0xdf   : > { %s8584_s29 = scalar_lea.vmem %s740_s10, 16  ;;  %s8687_s3 = smov [#allocation13]  }
  0xe0   : > { %p8585_p10 = scmp.ne.s32.totalorder %s740_s10, %s8584_s29  ;;  %s8589_s13 = sshll.u32 %s8687_s3, 4  ;;  %s8590_s13 = int_to_ptr.vmem [resolvable:$false] %s8589_s13 }
  0xe1   : > { %s8591_s5 = scalar_lea.vmem %s8590_s13, 32  ;;  %p8592_p6 = scmp.lt.s32.totalorder %s740_s10, %s8590_s13 }
  0xe2   : > { %p8587_p7 = pnand %p8585_p10, %p8903_p13  ;;  %p8593_p11 = scmp.lt.s32.totalorder %s8591_s5, %s8584_s29 }
  0xe4   : > { %p8588_p0 = pneg %p8587_p7  ;;  %p8594_p2 = por %p8593_p11, %p8592_p6 }
  0xe6   : > { %p8595_p3 = pnand %p8594_p2, %p8588_p0 }
  0xe8   : > { %8598 = shalt.err (!%p8595_p3)
}
  0xe9   : > { %p11286_p9 = scmp.ne.s32.totalorder %s11269_s27, 0  ;;  %s11287_s25 = scalar_lea.sflag [#allocation12], %s8886_s0 }
  0xea   : > { %p11288_p12 = scmp.ne.s32.totalorder %s11275_s24, 0 }
  0xeb   : > { %7783 = dma.hbm_to_vmem [thread:$0]  (!%p11286_p9), %s9071_s22, 16, %s740_s10, %s11287_s25  }
  0xec   : > { %775 = sbr.rel (%p11288_p12) target bundleno = 5254 (0x1486), region = 96 }
  0xf3   : > { %s9115_s19 = sand.u32 1, %s8653_s30   ;;  %p11289_p13 = scmp.ne.s32.totalorder %s11268_s18, 0 }
  0xf4   : > { %s778_s17 = scalar_lea.sflag [#allocation4], %s9115_s19 }
  0xf5   : > { %8632 = dma.done.wait (%p11289_p13), %s778_s17, 16  }
  0xf6   : > { %8634 = vsyncadd (%p11289_p13), %s778_s17, 4294967280  ;;  %s11290_s27 = sadd.s32 4294967295, %s8677_s23  }
  0xf7   : > { %s785_s0 = sand.u32 1, %s11290_s27  }
  0xf8   : > { %s786_s24 = scalar_lea.sflag [#allocation6], %s785_s0 }
  0xf9   : > { %8636 = dma.done.wait (%p11289_p13), %s786_s24, 32  }
  0xfa   : > { %8638 = vsyncadd (%p11289_p13), %s786_s24, 4294967264  ;;  %s802_s15 = scalar_lea.sflag [#allocation9], %s785_s0 }
  0xfb   : > { %8640 = dma.done.wait (%p11289_p13), %s802_s15, 32  }
  0xfc   : > { %8642 = vsyncadd (%p11289_p13), %s802_s15, 4294967264  ;;  %s6924_s20 = sshll.u32 %s9115_s19, 3  ;;  %s818_s6 = scalar_lea.sflag [#allocation12], %s785_s0 }
  0xfd   : > { %s9138_s2 = scalar_lea.vmem [#allocation11], %s6924_s20 }
  0xfe   : > { %11291 = sst [smem:[#allocation26_spill]] %s9138_s2 }
  0xff   : > { %8644 = dma.done.wait (%p11289_p13), %s818_s6, 144  }
 0x100   : > { %8646 = vsyncadd (%p11289_p13), %s818_s6, 4294967152  ;;  %p946_p2 = scmp.lt.s32.totalorder %s8665_s1, 1  ;;  %p951_p4 = scmp.lt.s32.totalorder %s8661_s21, 1 }
 0x101   : > { %p990_p1 = scmp.lt.s32.totalorder %s8661_s21, 0  ;;  %s991_s16 = ssub.s32 0, %s8661_s21 }
 0x102   : > { %s11368_s1 = smov (!%p946_p2, %s8665_s1), 1  ;;  %s11292_s13 = sld [smem:[#allocation43_spill]] }
 0x103   : > { %s9149_s28 = scalar_select %p951_p4, %s8661_s21, 1 }
 0x104   : > { %s7148_s18 = sshll.u32 %s11368_s1, 6  ;;  %s11293_s0 = sld [smem:[#allocation46_spill]] }
 0x105   : > { %s7149_s25 = sshll.u32 %s9149_s28, 3  ;;  %s7150_s14 = sshll.u32 %s9149_s28, 6 }
 0x106   : > { %s11294_s8 = sld [smem:[#allocation48_spill]]  ;;  %s7747_s17 = smul.u32 25, %s9149_s28 }
 0x107   : > { %s7152_s11 = sshll.u32 %s9149_s28, 4  ;;  %s11297_s6 = sld [smem:[#allocation54_spill]] }
 0x108   : > { %s9155_s5 = scalar_lea.vmem %s11292_s13, %s7148_s18  ;;  %s11295_s13 = sld [smem:[#allocation47_spill]] }
 0x109   : > { %s11299_s3 = sld [smem:[#allocation57_spill]]  ;;  %s11300_s2 = sld [smem:[#allocation61_spill]] }
 0x10a   : > { %s9161_s24 = scalar_lea.vmem %s11293_s0, %s7149_s25  ;;  %s6937_s7 = smin.u32 %s8661_s21, %s991_s16 }
 0x10b   : > { %s993_s0 = sand.u32 1, %s6937_s7   ;;  %p6940_p10 = scmp.ne.s32.totalorder %s8661_s21, 0 }
 0x10c   : > { %s9171_s22 = scalar_lea.vmem %s11294_s8, %s7149_s25  ;;  %s11298_s25 = sld [smem:[#allocation56_spill]]  ;;  %v1007_v0 = vld [vmem:[%s9155_s5] sm:$0xff] (!%p6940_p10)  ;;  %vm1015_vm0 = vcmask (!%p6940_p10), 130048   ;;  %v1008_v1 = vld [vmem:[%s9155_s5 + $0x8] sm:$0xff] (!%p6940_p10)  ;;  %v1009_v2 = vld [vmem:[%s9155_s5 + $0x10] sm:$0xff] (!%p6940_p10) }
 0x10d   : > { %s9187_s26 = scalar_lea.vmem %s11297_s6, %s7747_s17  ;;  %s994_s9 = ssub.s32 0, %s993_s0  ;;  %1016 = vst.msk [vmem:[#allocation2] sm:$0xff] (!%p6940_p10), %vm1015_vm0, %v1007_v0  ;;  %1017 = vst.msk [vmem:[#allocation2 + $0x8] sm:$0xff] (!%p6940_p10), %vm1015_vm0, %v1008_v1  ;;  %v1010_v3 = vld [vmem:[%s9155_s5 + $0x18] sm:$0xff] (!%p6940_p10)  ;;  %v1011_v4 = vld [vmem:[%s9155_s5 + $0x20] sm:$0xff] (!%p6940_p10) }
 0x10e   : > { %s9176_s12 = scalar_lea.vmem %s11295_s13, %s7150_s14  ;;  %s11370_s9 = smov (!%p990_p1, %s994_s9), %s993_s0  ;;  %1018 = vst.msk [vmem:[#allocation2 + $0x10] sm:$0xff] (!%p6940_p10), %vm1015_vm0, %v1009_v2  ;;  %v1012_v5 = vld [vmem:[%s9155_s5 + $0x28] sm:$0xff] (!%p6940_p10)  ;;  %1019 = vst.msk [vmem:[#allocation2 + $0x18] sm:$0xff] (!%p6940_p10), %vm1015_vm0, %v1010_v3  ;;  %v1013_v6 = vld [vmem:[%s9155_s5 + $0x30] sm:$0xff] (!%p6940_p10) }
 0x10f   : > { %s983_s13 = scalar_lea.vmem %s11299_s3, %s9149_s28  ;;  %s9201_s27 = scalar_lea.vmem %s11300_s2, %s7148_s18  ;;  %1020 = vst.msk [vmem:[#allocation2 + $0x20] sm:$0xff] (!%p6940_p10), %vm1015_vm0, %v1011_v4  ;;  %1021 = vst.msk [vmem:[#allocation2 + $0x28] sm:$0xff] (!%p6940_p10), %vm1015_vm0, %v1012_v5  ;;  %v1014_v7 = vld [vmem:[%s9155_s5 + $0x38] sm:$0xff] (!%p6940_p10) }
 0x110   : > { %p6939_p5 = scmp.lt.s32.totalorder %s11370_s9, 0  ;;  %s1000_s6 = sadd.s32 2, %s11370_s9  ;;  %1022 = vst.msk [vmem:[#allocation2 + $0x30] sm:$0xff] (!%p6940_p10), %vm1015_vm0, %v1013_v6  ;;  %1023 = vst.msk [vmem:[#allocation2 + $0x38] sm:$0xff] (!%p6940_p10), %vm1015_vm0, %v1014_v7 }
 0x111   : > { %1006 = sbr.rel (%p6940_p10) target bundleno = 280 (0x118), region = 128 }
 0x112   : > { %s9192_s1 = scalar_lea.vmem %s11298_s25, %s7152_s11  ;;  %s11372_s6 = smov (!%p6939_p5, %s1000_s6), %s11370_s9 }
 0x113   : > { %p1002_p8 = scmp.eq.s32.totalorder %s11372_s6, 1  ;;  %s829_s11 = scalar_lea.vmem [#allocation13], %s9115_s19 }
 0x118 PF: > { %v1024_v8 = vld [vmem:[#allocation2] sm:$0xff]  ;;  %vm1034_vm1 = vcmask 130048   ;;  %v1026_v9 = vld [vmem:[#allocation2 + $0x10] sm:$0xff]  ;;  %v1025_v10 = vld [vmem:[#allocation2 + $0x8] sm:$0xff]  ;;  %s11301_s9 = scalar_lea.vmem [#allocation3], %s9115_s19  ;;  %s11302_s30 = scalar_lea.vmem [#allocation5], %s9115_s19 }
 0x119   : > { %v1035_v11 = vsel %vm1034_vm1, %v1024_v8, 0.0  ;;  %v1041_v12 = vsel %vm1034_vm1, %v1026_v9, 0.0  ;;  %v1027_v13 = vld [vmem:[#allocation2 + $0x18] sm:$0xff]  ;;  %v1038_v14 = vsel %vm1034_vm1, %v1025_v10, 0.0  ;;  %v1028_v15 = vld [vmem:[#allocation2 + $0x20] sm:$0xff]  ;;  %v1029_v17 = vld [vmem:[#allocation2 + $0x28] sm:$0xff]  ;;  %s11303_s16 = scalar_lea.vmem %s11187_s4, %s9149_s28 }
 0x11a   : > { %1036 = vadd.xlane.f32.xlu0 %v1035_v11  ;;  %1042 = vadd.xlane.f32.xlu1 %v1041_v12  ;;  %v1044_v16 = vsel %vm1034_vm1, %v1027_v13, 0.0  ;;  %v1047_v18 = vsel %vm1034_vm1, %v1028_v15, 0.0  ;;  %v1050_v19 = vsel %vm1034_vm1, %v1029_v17, 0.0  ;;  %v1030_v20 = vld [vmem:[#allocation2 + $0x30] sm:$0xff]  ;;  %v1031_v21 = vld [vmem:[#allocation2 + $0x38] sm:$0xff]  ;;  %v8035_v0 = vld [vmem:[%s9161_s24] sm:$0xff]  }
 0x11b   : > { %v1053_v22 = vsel %vm1034_vm1, %v1030_v20, 0.0  ;;  %v1056_v23 = vsel %vm1034_vm1, %v1031_v21, 0.0  ;;  %7303 = vmatprep.subr.bf16.mxu0 %v8035_v0  ;;  %s1297_s23 = scalar_select %p1002_p8, 1, 0  ;;  %vm1350_vm3 = vcmask 31744   ;;  %vm4691_vm5 = vcmask 97280  }
 0x11c   : > { %7304 = vmatpush3.bf16.msra.mxu0 %v8035_v0  ;;  %s8688_s24 = smov 112   ;;  %s8689_s17 = smov 96   ;;  %vm9357_vm4 = vmpackc.low %vm1350_vm3, %vm1350_vm3  ;;  %vm4682_vm6 = vcmask 64512   ;;  %vm4736_vm7 = vcmask 1043456   ;;  %vm4769_vm8 = vcmask 1041408   ;;  %vm5263_vm9 = vcmask 1040384  }
 0x11d   : > { %s1324_s15 = scalar_select %p1002_p8, 1.0, 0.0  ;;  %vm5329_vm10 = vcmask 1046528   ;;  %vm1288_vm11 = vcmask 1045504   ;;  %vm6018_vm12 = vcmask 261120  }
 0x11e   : > { %1039 = vadd.xlane.f32.xlu0 %v1038_v14  ;;  %1045 = vadd.xlane.f32.xlu1 %v1044_v16  ;;  %s11308_s8 = sld [smem:[#allocation58_spill]]  ;;  %s8692_s20 = smov 92  }
 0x11f   : > { %s8693_s10 = smov 104   ;;  %s8694_s25 = smov 120  }
 0x120   : > { %s8695_s29 = smov 88   ;;  %s8696_s14 = smov 100  }
 0x121   : > { %s8697_s3 = smov 116   ;;  %s8699_s7 = smov 4  }
 0x122   : > { %1048 = vadd.xlane.f32.xlu0 %v1047_v18  ;;  %1051 = vadd.xlane.f32.xlu1 %v1050_v19  ;;  %s8700_s0 = smov 8   ;;  %s8701_s6 = smov 12  }
 0x123   : > { %p7130_p7 = scmp.ne.s32.totalorder %s8661_s21, 1 }
 0x124   : > { %s8705_s21 = smov (!%p7130_p7), 32   ;;  %vm6389_vm13 = vcmask (!%p7130_p7), 392192   ;;  %vm6398_vm14 = vcmask (!%p7130_p7), 523264   ;;  %vm6407_vm15 = vcmask (!%p7130_p7), 654336   ;;  %vm6416_vm0 = vcmask (!%p7130_p7), 785408  }
 0x126   : > { %1054 = vadd.xlane.f32.xlu0 %v1053_v22  ;;  %1057 = vadd.xlane.f32.xlu1 %v1056_v23 }
 0x1a7   : > { %v1037_v24 = vpop.xlane.xlu0 %1036  ;;  %v1043_v25 = vpop.xlane.xlu1 %1042 }
 0x1a8   : > { %v1060_v26 = vmul.f32 0.0625, %v1037_v24  ;;  %v1062_v27 = vmul.f32 0.0625, %v1043_v25 }
 0x1aa   : > { %v9227_v28 = vsub.f32 %v1024_v8, %v1060_v26  ;;  %v9229_v29 = vsub.f32 %v1026_v9, %v1062_v27  ;;  %v6941_v26 = vld [vmem:[%s11301_s9] ss:$0 sm:$0xff]  ;;  %s11318_s9 = sld [smem:[#allocation26_spill]] }
 0x1ab   : > { %v1040_v30 = vpop.xlane.xlu0 %1039  ;;  %v1046_v31 = vpop.xlane.xlu1 %1045 }
 0x1ac   : > { %v1061_v32 = vmul.f32 0.0625, %v1040_v30  ;;  %v1063_v33 = vmul.f32 0.0625, %v1046_v31  ;;  %v1076_v34 = vmul.f32 %v9227_v28, %v9227_v28  ;;  %v1078_v35 = vmul.f32 %v9229_v29, %v9229_v29 }
 0x1ae   : > { %v9235_v36 = vsub.f32 %v1025_v10, %v1061_v32  ;;  %v9237_v37 = vsub.f32 %v1027_v13, %v1063_v33  ;;  %v1084_v38 = vsel %vm1034_vm1, %v1076_v34, 0.0  ;;  %v1090_v41 = vsel %vm1034_vm1, %v1078_v35, 0.0  ;;  %v6942_v34 = vld [vmem:[%s11302_s30] ss:$0 sm:$0xff]  ;;  %s11319_s30 = scalar_lea.vmem [#allocation8], %s9115_s19 }
 0x1af   : > { %1085 = vadd.xlane.f32.xlu0 %v1084_v38  ;;  %v1049_v39 = vpop.xlane.xlu0 %1048  ;;  %v1052_v40 = vpop.xlane.xlu1 %1051 }
 0x1b0   : > { %v1064_v42 = vmul.f32 0.0625, %v1049_v39  ;;  %v1065_v43 = vmul.f32 0.0625, %v1052_v40  ;;  %v1077_v44 = vmul.f32 %v9235_v36, %v9235_v36  ;;  %v1079_v45 = vmul.f32 %v9237_v37, %v9237_v37 }
 0x1b2   : > { %v9245_v46 = vsub.f32 %v1028_v15, %v1064_v42  ;;  %v9247_v47 = vsub.f32 %v1029_v17, %v1065_v43  ;;  %v1087_v48 = vsel %vm1034_vm1, %v1077_v44, 0.0  ;;  %v1093_v51 = vsel %vm1034_vm1, %v1079_v45, 0.0 }
 0x1b3   : > { %1091 = vadd.xlane.f32.xlu0 %v1090_v41  ;;  %1088 = vadd.xlane.f32.xlu1 %v1087_v48  ;;  %v1055_v49 = vpop.xlane.xlu0 %1054  ;;  %v1058_v50 = vpop.xlane.xlu1 %1057 }
 0x1b4   : > { %v1066_v52 = vmul.f32 0.0625, %v1055_v49  ;;  %v1067_v53 = vmul.f32 0.0625, %v1058_v50  ;;  %v1080_v54 = vmul.f32 %v9245_v46, %v9245_v46  ;;  %v1081_v55 = vmul.f32 %v9247_v47, %v9247_v47 }
 0x1b6   : > { %v9255_v56 = vsub.f32 %v1030_v20, %v1066_v52  ;;  %v9257_v57 = vsub.f32 %v1031_v21, %v1067_v53  ;;  %v1096_v58 = vsel %vm1034_vm1, %v1080_v54, 0.0  ;;  %v1099_v59 = vsel %vm1034_vm1, %v1081_v55, 0.0 }
 0x1b7   : > { %1094 = vadd.xlane.f32.xlu1 %v1093_v51  ;;  %1097 = vadd.xlane.f32.xlu0 %v1096_v58 }
 0x1b8   : > { %v1082_v60 = vmul.f32 %v9255_v56, %v9255_v56  ;;  %v1083_v61 = vmul.f32 %v9257_v57, %v9257_v57 }
 0x1ba   : > { %v1102_v62 = vsel %vm1034_vm1, %v1082_v60, 0.0  ;;  %v1105_v63 = vsel %vm1034_vm1, %v1083_v61, 0.0 }
 0x1bb   : > { %1100 = vadd.xlane.f32.xlu1 %v1099_v59  ;;  %1103 = vadd.xlane.f32.xlu0 %v1102_v62 }
 0x1bf   : > { %1106 = vadd.xlane.f32.xlu1 %v1105_v63 }
 0x23c   : > { %v1086_v1 = vpop.xlane.xlu0 %1085 }
 0x23d   : > { %v1108_v2 = vmul.f32 0.0625, %v1086_v1  ;;  %v1298_v1 = vstv %s1297_s23  ;;  %s11320_s23 = scalar_lea.vmem [#allocation10], %s9115_s19 }
 0x23e   : > { %vm9291_vm2 = vcmp.eq.s32.totalorder %v1298_v1, 1 }
 0x23f   : > { %v1116_v3 = vadd.f32 1e-05, %v1108_v2 }
 0x240   : > { %v1089_v4 = vpop.xlane.xlu1 %1088  ;;  %v1092_v5 = vpop.xlane.xlu0 %1091 }
 0x241   : > { %8040 = vrsqrt.f32 %v1116_v3  ;;  %v1109_v6 = vmul.f32 0.0625, %v1089_v4  ;;  %v1110_v7 = vmul.f32 0.0625, %v1092_v5 }
 0x243   : > { %v1117_v8 = vadd.f32 1e-05, %v1109_v6  ;;  %v1118_v9 = vadd.f32 1e-05, %v1110_v7 }
 0x244   : > { %v1095_v10 = vpop.xlane.xlu1 %1094  ;;  %v1098_v11 = vpop.xlane.xlu0 %1097 }
 0x245   : > { %8042 = vrsqrt.f32 %v1117_v8  ;;  %v1111_v12 = vmul.f32 0.0625, %v1095_v10  ;;  %v1112_v13 = vmul.f32 0.0625, %v1098_v11 }
 0x246   : > { %8044 = vrsqrt.f32 %v1118_v9 }
 0x247   : > { %v1119_v14 = vadd.f32 1e-05, %v1111_v12  ;;  %v1120_v15 = vadd.f32 1e-05, %v1112_v13 }
 0x248   : > { %v1101_v16 = vpop.xlane.xlu1 %1100  ;;  %v1104_v17 = vpop.xlane.xlu0 %1103 }
 0x249   : > { %8046 = vrsqrt.f32 %v1119_v14  ;;  %v1113_v18 = vmul.f32 0.0625, %v1101_v16  ;;  %v1114_v19 = vmul.f32 0.0625, %v1104_v17 }
 0x24a   : > { %8048 = vrsqrt.f32 %v1120_v15 }
 0x24b   : > { %v8041_v20 = vpop.eup %8040  ;;  %v1121_v21 = vadd.f32 1e-05, %v1113_v18  ;;  %v1122_v22 = vadd.f32 1e-05, %v1114_v19 }
 0x24c   : > { %v1107_v23 = vpop.xlane.xlu1 %1106  ;;  %v1132_v24 = vmul.f32 %v8041_v20, %v9227_v28 }
 0x24d   : > { %8050 = vrsqrt.f32 %v1121_v21  ;;  %v1115_v25 = vmul.f32 0.0625, %v1107_v23 }
 0x24e   : > { %8052 = vrsqrt.f32 %v1122_v22  ;;  %v1146_v33 = vmul.f32 %v6941_v26, %v1132_v24 }
 0x24f   : > { %v8043_v27 = vpop.eup %8042  ;;  %v1123_v30 = vadd.f32 1e-05, %v1115_v25 }
 0x250   : > { %v8045_v31 = vpop.eup %8044  ;;  %v1133_v32 = vmul.f32 %v8043_v27, %v9235_v36  ;;  %v1160_v28 = vadd.f32 %v6942_v34, %v1146_v33 }
 0x251   : > { %8054 = vrsqrt.f32 %v1123_v30  ;;  %v1134_v35 = vmul.f32 %v8045_v31, %v9229_v29 }
 0x252   : > { %v1147_v38 = vmul.f32 %v6941_v26, %v1133_v32 }
 0x253   : > { %v8047_v39 = vpop.eup %8046  ;;  %v1148_v43 = vmul.f32 %v6941_v26, %v1134_v35 }
 0x254   : > { %v8049_v40 = vpop.eup %8048  ;;  %v1161_v41 = vadd.f32 %v6942_v34, %v1147_v38  ;;  %v1135_v42 = vmul.f32 %v8047_v39, %v9237_v37 }
 0x255   : > { %v1136_v44 = vmul.f32 %v8049_v40, %v9245_v46  ;;  %v1162_v50 = vadd.f32 %v6942_v34, %v1148_v43 }
 0x256   : > { %v1168_v45 = vpack.c.bf16 %v1161_v41, %v1160_v28  ;;  %v1149_v48 = vmul.f32 %v6941_v26, %v1135_v42 }
 0x257   : > { %v8051_v49 = vpop.eup %8050  ;;  %v1150_v52 = vmul.f32 %v6941_v26, %v1136_v44 }
 0x258   : > { %v8053_v36 = vpop.eup %8052  ;;  %7305 = vmatprep.mubr.msk.bf16.mxu0 %vm1034_vm1, %v1168_v45  ;;  %v1163_v51 = vadd.f32 %v6942_v34, %v1149_v48  ;;  %v1137_v29 = vmul.f32 %v8051_v49, %v9247_v47 }
 0x259   : > { %v1138_v53 = vmul.f32 %v8053_v36, %v9255_v56  ;;  %v1164_v46 = vadd.f32 %v6942_v34, %v1150_v52  ;;  %v6943_v56 = vld [vmem:[%s11303_s16] ss:$0 sm:$0xff] }
 0x25a   : > { %v1169_v54 = vpack.c.bf16 %v1163_v51, %v1162_v50  ;;  %v1151_v37 = vmul.f32 %v6941_v26, %v1137_v29 }
 0x25b   : > { %v8055_v55 = vpop.eup %8054  ;;  %v1152_v60 = vmul.f32 %v6941_v26, %v1138_v53 }
 0x25c   : > { %7306 = vmatmul.mubr.msk.bf16.vlgmr.msra.gmra.mrb[0].mxu0 %vm1034_vm1, %v1169_v54  ;;  %v1165_v58 = vadd.f32 %v6942_v34, %v1151_v37  ;;  %v1139_v59 = vmul.f32 %v8055_v55, %v9257_v57  ;;  %v7029_v37 = vld [vmem:[%s9176_s12 + $0x30] sm:$0xff] }
 0x25d   : > { %v1166_v47 = vadd.f32 %v6942_v34, %v1152_v60 }
 0x25e   : > { %v1170_v61 = vpack.c.bf16 %v1165_v58, %v1164_v46  ;;  %v1153_v62 = vmul.f32 %v6941_v26, %v1139_v59 }
 0x260   : > { %7309 = vmatprep.mubr.msk.bf16.mxu0 %vm1034_vm1, %v1170_v61  ;;  %v1167_v63 = vadd.f32 %v6942_v34, %v1153_v62 }
 0x262   : > { %v1171_v0 = vpack.c.bf16 %v1167_v63, %v1166_v47 }
 0x264   : > { %7310 = vmatmul.mubr.msk.bf16.gmra.mrb[4].mxu0 %vm1034_vm1, %v1171_v0 }
 0x32f   : > { %v7307_v2 = vpop.f32.mrb[0].mxu0 }
 0x330   : > { %v1242_v57 = vadd.f32 %v7307_v2, %v6943_v56  ;;  %v1233_v3 = vpop.f32.mrb[1].mxu0 }
 0x331   : > { %v1234_v4 = vadd.f32 %v6943_v56, %v1233_v3  ;;  %v7308_v6 = vpop.f32.mrb[2].mxu0 }
 0x332   : > { %v1272_v7 = vrot.slane %v1242_v57, 2  ;;  %v1245_v8 = vadd.f32 %v7308_v6, %v6943_v56  ;;  %v1236_v9 = vpop.f32.mrb[3].mxu0 }
 0x333   : > { %v1237_v10 = vadd.f32 %v6943_v56, %v1236_v9  ;;  %v1278_v17 = vrot.slane %v1234_v4, 2 }
 0x334   : > { %v1300_v11 = vsel %vm9291_vm2, %v1272_v7, %v1234_v4  ;;  %v1273_v12 = vrot.slane %v1245_v8, 2 }
 0x335   : > { %v1279_v22 = vrot.slane %v1237_v10, 2 }
 0x336   : > { %v1301_v13 = vsel %vm9291_vm2, %v1273_v12, %v1237_v10 }
 0x337   : > { %v9299_v14 = vcombine.low %v1300_v11, %v1301_v13  ;;  %v9301_v15 = vcombine.high %v1300_v11, %v1301_v13  ;;  %v7311_v16 = vpop.f32.mrb[4].mxu0  ;;  %v1328_v13 = vld [vmem:[%s11308_s8 + $0x18] sm:$0xff] }
 0x338   : > { %v1258_v18 = vadd.f32 %v7311_v16, %v6943_v56  ;;  %v1249_v19 = vpop.f32.mrb[5].mxu0  ;;  %v1333_v16 = vstv %s1324_s15  ;;  %s8691_s15 = smov 124  }
 0x339   : > { %v1250_v20 = vadd.f32 %v6943_v56, %v1249_v19  ;;  %v7312_v21 = vpop.f32.mrb[6].mxu0  ;;  %7317 = vmatprep.mubr.msk.f32.mxu0 %vm1350_vm3, %v9299_v14  ;;  %v1327_v19 = vld [vmem:[%s11308_s8 + $0x10] sm:$0xff] }
 0x33a   : > { %v1276_v23 = vrot.slane %v1258_v18, 2  ;;  %v1306_v24 = vsel %vm9291_vm2, %v1278_v17, %v1258_v18  ;;  %v1261_v25 = vadd.f32 %v7312_v21, %v6943_v56  ;;  %v1252_v26 = vpop.f32.mrb[7].mxu0  ;;  %v1326_v17 = vld [vmem:[%s11308_s8 + $0x8] sm:$0xff]  ;;  %v9407_v21 = vmul.f32 %v1333_v16, %v1328_v13 }
 0x33b   : > { %v1274_v27 = vrot.slane %v1250_v20, 2  ;;  %v1253_v30 = vadd.f32 %v6943_v56, %v1252_v26  ;;  %v1343_v18 = vld [vmem:[%s9176_s12 + $0x8] sm:$0xff] }
 0x33c   : > { %v1304_v31 = vsel %vm9291_vm2, %v1276_v23, %v1250_v20  ;;  %v1277_v32 = vrot.slane %v1261_v25, 2  ;;  %v1307_v33 = vsel %vm9291_vm2, %v1279_v22, %v1261_v25  ;;  %v1342_v20 = vld [vmem:[%s9176_s12] sm:$0xff]  ;;  %v9409_v23 = vmul.f32 %v1333_v16, %v1326_v17 }
 0x33d   : > { %v1302_v34 = vsel %vm9291_vm2, %v1274_v27, %v1242_v57  ;;  %v9313_v35 = vcombine.low %v1306_v24, %v1307_v33  ;;  %v9315_v38 = vcombine.high %v1306_v24, %v1307_v33  ;;  %v1275_v39 = vrot.slane %v1253_v30, 2 }
 0x33e   : > { %v1305_v40 = vsel %vm9291_vm2, %v1277_v32, %v1253_v30  ;;  %v9411_v27 = vmul.f32 %v1333_v16, %v1327_v19  ;;  %v1325_v30 = vld [vmem:[%s11308_s8] sm:$0xff] }
 0x33f   : > { %v1303_v28 = vsel %vm9291_vm2, %v1275_v39, %v1245_v8  ;;  %v9321_v41 = vcombine.low %v1304_v31, %v1305_v40  ;;  %v9323_v42 = vcombine.high %v1304_v31, %v1305_v40 }
 0x340   : > { %v9325_v43 = vcombine.low %v1302_v34, %v1303_v28  ;;  %v9327_v44 = vcombine.high %v1302_v34, %v1303_v28  ;;  %v1332_v28 = vld [vmem:[%s11308_s8 + $0x38] sm:$0xff] }
 0x341   : > { %7324 = vmatprep.mubr.msk.f32.mxu1 %vm1350_vm3, %v9321_v41  ;;  %v9333_v45 = vpack.i.bf16 %v9313_v35, %v9321_v41  ;;  %v9349_v36 = vpack.i.bf16 %v9315_v38, %v9323_v42 }
 0x342   : > { %v9337_v48 = vpack.i.bf16 %v9325_v43, %v9299_v14  ;;  %v9343_v49 = vpack.i.bf16 %v9327_v44, %v9301_v15 }
 0x343   : > { %7881 = vrot.lane.b32.xlu1 %v9333_v45, %s8688_s24 }
 0x344   : > { %7876 = vrot.lane.b32.xlu0 %v9337_v48, %s8688_s24 }
 0x347   : > { %7886 = vrot.lane.b32.xlu1 %v9343_v49, %s8688_s24 }
 0x348   : > { %7906 = vrot.lane.b32.xlu0 %v9337_v48, %s8689_s17 }
 0x34b   : > { %7891 = vrot.lane.b32.xlu1 %v9349_v36, %s8688_s24 }
 0x34f   : > { %7896 = vrot.lane.b32.xlu1 %v9333_v45, %s8689_s17 }
 0x353   : > { %7901 = vrot.lane.b32.xlu1 %v9349_v36, %s8689_s17 }
 0x357   : > { %7911 = vrot.lane.b32.xlu1 %v9343_v49, %s8689_s17  ;;  %s8690_s17 = smov 108  }
 0x3b5   : > { %v7882_v50 = vpop.permute.xlu1 %7881 }
 0x3b6   : > { %v7877_v51 = vpop.permute.xlu0 %7876  ;;  %v7884_v29 = vunpack.i.h.bf16 %v7882_v50  ;;  %v7883_v52 = vunpack.i.l.bf16 %v7882_v50  ;;  %v9421_v50 = vmul.f32 %v1333_v16, %v1325_v30 }
 0x3b7   : > { %v7879_v53 = vunpack.i.h.bf16 %v7877_v51  ;;  %v7878_v54 = vunpack.i.l.bf16 %v7877_v51 }
 0x3b8   : > { %v7575_v55 = vpack.c.bf16 %v7884_v29, %v7883_v52 }
 0x3b9   : > { %v7569_v46 = vpack.c.bf16 %v7879_v53, %v7878_v54  ;;  %v7887_v58 = vpop.permute.xlu1 %7886  ;;  %v1331_v53 = vld [vmem:[%s11308_s8 + $0x30] sm:$0xff]  ;;  %v1330_v54 = vld [vmem:[%s11308_s8 + $0x28] sm:$0xff] }
 0x3ba   : > { %v7889_v59 = vunpack.i.h.bf16 %v7887_v58  ;;  %v7888_v60 = vunpack.i.l.bf16 %v7887_v58  ;;  %7577 = vmatprep.subr.msk.bf16.mxu1 %vm9357_vm4, %v7575_v55  ;;  %v7907_v62 = vpop.permute.xlu0 %7906 }
 0x3bb   : > { %7571 = vmatprep.subr.msk.bf16.mxu0 %vm9357_vm4, %v7569_v46  ;;  %7580 = vmatpush3.bf16.xpose.msk.msra.mxu1 %vm9357_vm4, %v7575_v55  ;;  %v7909_v56 = vunpack.i.h.bf16 %v7907_v62  ;;  %v7908_v1 = vunpack.i.l.bf16 %v7907_v62  ;;  %v9432_v55 = vmul.f32 %v1333_v16, %v1332_v28 }
 0x3bc   : > { %v7581_v61 = vpack.c.bf16 %v7889_v59, %v7888_v60  ;;  %7574 = vmatpush3.bf16.xpose.msk.msra.mxu0 %vm9357_vm4, %v7569_v46 }
 0x3bd   : > { %v7892_v47 = vpop.permute.xlu1 %7891  ;;  %v7593_v3 = vpack.c.bf16 %v7909_v56, %v7908_v1 }
 0x3be   : > { %v7894_v63 = vunpack.i.h.bf16 %v7892_v47  ;;  %v7893_v0 = vunpack.i.l.bf16 %v7892_v47  ;;  %7583 = vmatprep.subr.msk.bf16.mxu0 %vm9357_vm4, %v7581_v61  ;;  %v9436_v47 = vmul.f32 %v1333_v16, %v1331_v53 }
 0x3c0   : > { %v7587_v2 = vpack.c.bf16 %v7894_v63, %v7893_v0  ;;  %v9438_v63 = vmul.f32 %v1333_v16, %v1330_v54  ;;  %v1329_v0 = vld [vmem:[%s11308_s8 + $0x20] sm:$0xff] }
 0x3c1   : > { %v7897_v57 = vpop.permute.xlu1 %7896 }
 0x3c2   : > { %7325 = vmatmul.mubr.msk.f32.vlgmr.msra.gmra.mrb[0].mxu1 %vm1350_vm3, %v9313_v35  ;;  %7589 = vmatprep.subr.msk.bf16.mxu1 %vm9357_vm4, %v7587_v2  ;;  %v7899_v6 = vunpack.i.h.bf16 %v7897_v57  ;;  %v7898_v7 = vunpack.i.l.bf16 %v7897_v57 }
 0x3c3   : > { %7318 = vmatmul.mubr.msk.f32.vlgmr.msra.gmra.mrb[8].mxu0 %vm1350_vm3, %v9325_v43  ;;  %7592 = vmatpush3.bf16.xpose.msk.msra.mxu1 %vm9357_vm4, %v7587_v2 }
 0x3c4   : > { %7338 = vmatprep.mubr.msk.f32.mxu1 %vm1350_vm3, %v9323_v42  ;;  %7586 = vmatpush3.bf16.xpose.msk.msra.mxu0 %vm9357_vm4, %v7581_v61  ;;  %v9391_v11 = vpack.c.bf16 %v7899_v6, %v7898_v7  ;;  %v9445_v6 = vmul.f32 %v1333_v16, %v1329_v0 }
 0x3c5   : > { %7331 = vmatprep.mubr.msk.f32.mxu0 %vm1350_vm3, %v9301_v15  ;;  %v9385_v4 = vpop.permute.xlu1 %7901  ;;  %7594 = vmatprep.subr.bf16.mxu0 %v7593_v3 }
 0x3c9   : > { %v7912_v8 = vpop.permute.xlu1 %7911 }
 0x3ca   : > { %v7914_v9 = vunpack.i.h.bf16 %v7912_v8  ;;  %v7913_v10 = vunpack.i.l.bf16 %v7912_v8  ;;  %7339 = vmatmul.mubr.msk.f32.vlgmr.msra.gmra.mrb[2].mxu1 %vm1350_vm3, %v9315_v38 }
 0x3cb   : > { %7332 = vmatmul.mubr.msk.f32.vlgmr.msra.gmra.mrb[10].mxu0 %vm1350_vm3, %v9327_v44 }
 0x3cc   : > { %7596 = vmatpush3.bf16.msra.mxu0 %v7593_v3  ;;  %v7601_v12 = vpack.c.bf16 %v7914_v9, %v7913_v10 }
 0x3cd   : > { %7598 = vmatprep.subr.bf16.mxu0 %v9391_v11 }
 0x3ce   : > { %7602 = vmatprep.subr.bf16.mxu1 %v7601_v12 }
 0x3cf   : > { %7604 = vmatpush3.bf16.msra.mxu1 %v7601_v12 }
 0x495   : > { %v7326_v22 = vpop.f32.mrb[0].mxu1 }
 0x496   : > { %v1520_v24 = vadd.f32 %v7326_v22, %v1343_v18  ;;  %v7319_v25 = vpop.f32.mrb[8].mxu0  ;;  %v1514_v26 = vpop.f32.mrb[1].mxu1 }
 0x497   : > { %v1431_v31 = vadd.f32 %v7319_v25, %v1343_v18  ;;  %v1515_v32 = vadd.f32 %v1514_v26, %v1342_v20  ;;  %v1425_v33 = vpop.f32.mrb[9].mxu0 }
 0x498   : > { %v1704_v34 = vadd.f32 %v1520_v24, %v9407_v21  ;;  %v1426_v39 = vadd.f32 %v1425_v33, %v1342_v20 }
 0x499   : > { %v1702_v40 = vadd.f32 %v1431_v31, %v9409_v23  ;;  %v1703_v29 = vadd.f32 %v1515_v32, %v9411_v27 }
 0x49a   : > { %v1718_v51 = vsel %vm1034_vm1, %v1704_v34, -inf  ;;  %v1701_v58 = vadd.f32 %v1426_v39, %v9421_v50 }
 0x49b   : > { %1719 = vmax.xlane.f32.xlu0 %v1718_v51  ;;  %v1712_v52 = vsel %vm1034_vm1, %v1702_v40, -inf  ;;  %v1715_v62 = vsel %vm1034_vm1, %v1703_v29, -inf }
 0x49c   : > { %1713 = vmax.xlane.f32.xlu1 %v1712_v52  ;;  %v1709_v3 = vsel %vm1034_vm1, %v1701_v58, -inf }
 0x49d   : > { %v7340_v46 = vpop.f32.mrb[2].mxu1 }
 0x49e   : > { %v1698_v59 = vadd.f32 %v7340_v46, %v1343_v18  ;;  %v7333_v60 = vpop.f32.mrb[10].mxu0  ;;  %v1692_v61 = vpop.f32.mrb[3].mxu1 }
 0x49f   : > { %v1609_v56 = vadd.f32 %v7333_v60, %v1343_v18  ;;  %v1693_v1 = vadd.f32 %v1692_v61, %v1342_v20  ;;  %1716 = vmax.xlane.f32.xlu0 %v1715_v62  ;;  %v1603_v2 = vpop.f32.mrb[11].mxu0 }
 0x4a0   : > { %v1708_v57 = vadd.f32 %v1698_v59, %v9432_v55  ;;  %v1604_v7 = vadd.f32 %v1603_v2, %v1342_v20 }
 0x4a1   : > { %v1707_v9 = vadd.f32 %v1693_v1, %v9436_v47  ;;  %v1706_v10 = vadd.f32 %v1609_v56, %v9438_v63 }
 0x4a2   : > { %v1730_v8 = vsel %vm1034_vm1, %v1708_v57, -inf  ;;  %v1705_v17 = vadd.f32 %v1604_v7, %v9445_v6 }
 0x4a3   : > { %1731 = vmax.xlane.f32.xlu1 %v1730_v8  ;;  %1710 = vmax.xlane.f32.xlu0 %v1709_v3  ;;  %v1727_v12 = vsel %vm1034_vm1, %v1707_v9, -inf  ;;  %v1724_v13 = vsel %vm1034_vm1, %v1706_v10, -inf }
 0x4a4   : > { %v1721_v16 = vsel %vm1034_vm1, %v1705_v17, -inf }
 0x4a7   : > { %1728 = vmax.xlane.f32.xlu1 %v1727_v12  ;;  %1725 = vmax.xlane.f32.xlu0 %v1724_v13 }
 0x4ab   : > { %1722 = vmax.xlane.f32.xlu0 %v1721_v16 }
 0x4b8   : > { %7921 = vrot.lane.b32.xlu1 %v9333_v45, %s8690_s17 }
 0x4c1   : > { %7916 = vrot.lane.b32.xlu0 %v9337_v48, %s8690_s17 }
 0x528   : > { %v1720_v18 = vpop.xlane.xlu0 %1719 }
 0x529   : > { %v1736_v19 = vsub.f32 %v1704_v34, %v1720_v18  ;;  %v1714_v20 = vpop.xlane.xlu1 %1713 }
 0x52a   : > { %v1734_v22 = vsub.f32 %v1702_v40, %v1714_v20 }
 0x52b   : > { %v1747_v24 = vmul.f32 1.442695, %v1736_v19 }
 0x52c   : > { %v1743_v25 = vmul.f32 1.442695, %v1734_v22  ;;  %v1717_v26 = vpop.xlane.xlu0 %1716 }
 0x52d   : > { %8056 = vpow2.f32 %v1747_v24  ;;  %v1735_v30 = vsub.f32 %v1703_v29, %v1717_v26 }
 0x52e   : > { %8058 = vpow2.f32 %v1743_v25 }
 0x52f   : > { %v1745_v31 = vmul.f32 1.442695, %v1735_v30 }
 0x530   : > { %v1711_v32 = vpop.xlane.xlu0 %1710  ;;  %v1732_v0 = vpop.xlane.xlu1 %1731 }
 0x531   : > { %8060 = vpow2.f32 %v1745_v31  ;;  %v1733_v33 = vsub.f32 %v1701_v58, %v1711_v32  ;;  %v1740_v56 = vsub.f32 %v1708_v57, %v1732_v0 }
 0x533   : > { %v1741_v39 = vmul.f32 1.442695, %v1733_v33  ;;  %v1755_v2 = vmul.f32 1.442695, %v1740_v56 }
 0x534   : > { %v1726_v28 = vpop.xlane.xlu0 %1725  ;;  %v1729_v1 = vpop.xlane.xlu1 %1728 }
 0x535   : > { %8062 = vpow2.f32 %v1741_v39  ;;  %v1739_v3 = vsub.f32 %v1707_v9, %v1729_v1  ;;  %v1738_v7 = vsub.f32 %v1706_v10, %v1726_v28  ;;  %v7904_v28 = vunpack.i.h.bf16 %v9385_v4 }
 0x536   : > { %8064 = vpow2.f32 %v1755_v2 }
 0x537   : > { %v9458_v51 = vpop.eup %8056  ;;  %v1753_v8 = vmul.f32 1.442695, %v1739_v3  ;;  %v1751_v12 = vmul.f32 1.442695, %v1738_v7 }
 0x538   : > { %v1723_v52 = vpop.xlane.xlu0 %1722  ;;  %v1766_v34 = vsel %vm1034_vm1, %v9458_v51, 0.0  ;;  %v9462_v40 = vpop.eup %8058 }
 0x539   : > { %1767 = vadd.xlane.f32.xlu1 %v1766_v34  ;;  %v1760_v54 = vsel %vm1034_vm1, %v9462_v40, 0.0  ;;  %v1737_v13 = vsub.f32 %v1705_v17, %v1723_v52  ;;  %8066 = vpow2.f32 %v1753_v8  ;;  %v7922_v24 = vpop.permute.xlu1 %7921  ;;  %v7903_v52 = vunpack.i.l.bf16 %v9385_v4 }
 0x53a   : > { %8068 = vpow2.f32 %v1751_v12 }
 0x53b   : > { %v9464_v53 = vpop.eup %8060  ;;  %v1749_v16 = vmul.f32 1.442695, %v1737_v13 }
 0x53c   : > { %v7917_v29 = vpop.permute.xlu0 %7916  ;;  %v1763_v46 = vsel %vm1034_vm1, %v9464_v53, 0.0 }
 0x53d   : > { %v7919_v58 = vunpack.i.h.bf16 %v7917_v29  ;;  %v7918_v59 = vunpack.i.l.bf16 %v7917_v29  ;;  %1761 = vadd.xlane.f32.xlu1 %v1760_v54  ;;  %1764 = vadd.xlane.f32.xlu0 %v1763_v46  ;;  %8070 = vpow2.f32 %v1749_v16 }
 0x53f   : > { %v9470_v60 = vpack.c.bf16 %v7919_v58, %v7918_v59  ;;  %v8063_v61 = vpop.eup %8062  ;;  %v7924_v58 = vunpack.i.h.bf16 %v7922_v24  ;;  %v7923_v59 = vunpack.i.l.bf16 %v7922_v24 }
 0x540   : > { %v1757_v62 = vsel %vm1034_vm1, %v8063_v61, 0.0  ;;  %v9480_v18 = vpop.eup %8064 }
 0x541   : > { %7611 = vmatprep.subr.msk.bf16.mxu1 %vm9357_vm4, %v9470_v60  ;;  %1758 = vadd.xlane.f32.xlu0 %v1757_v62  ;;  %v1778_v19 = vsel %vm1034_vm1, %v9480_v18, 0.0  ;;  %v7605_v62 = vpack.c.bf16 %v7904_v28, %v7903_v52 }
 0x543   : > { %v9484_v20 = vpop.eup %8066 }
 0x544   : > { %v9486_v57 = vpop.eup %8068  ;;  %v1775_v9 = vsel %vm1034_vm1, %v9484_v20, 0.0 }
 0x545   : > { %v1772_v10 = vsel %vm1034_vm1, %v9486_v57, 0.0 }
 0x547   : > { %v9492_v17 = vpop.eup %8070 }
 0x548   : > { %v1769_v22 = vsel %vm1034_vm1, %v9492_v17, 0.0 }
 0x54e   : > { %2239 = vrot.lane.b32.xlu1 %v9321_v41, %s8691_s15 }
 0x557   : > { %2148 = vrot.lane.b32.xlu0 %v9299_v14, %s8691_s15 }
 0x572   : > { %1779 = vadd.xlane.f32.xlu1 %v1778_v19 }
 0x576   : > { %1776 = vadd.xlane.f32.xlu1 %v1775_v9  ;;  %1773 = vadd.xlane.f32.xlu0 %v1772_v10 }
 0x57a   : > { %1770 = vadd.xlane.f32.xlu0 %v1769_v22 }
 0x587   : > { %7931 = vrot.lane.b32.xlu1 %v9349_v36, %s8690_s17 }
 0x58b   : > { %2241 = vrot.lane.b32.xlu1 %v9313_v35, %s8691_s15 }
 0x58f   : > { %2421 = vrot.lane.b32.xlu1 %v9323_v42, %s8691_s15 }
 0x590   : > { %7926 = vrot.lane.b32.xlu0 %v9343_v49, %s8690_s17 }
 0x593   : > { %2423 = vrot.lane.b32.xlu1 %v9315_v38, %s8691_s15 }
 0x594   : > { %2150 = vrot.lane.b32.xlu0 %v9325_v43, %s8691_s15 }
 0x597   : > { %7941 = vrot.lane.b32.xlu1 %v9333_v45, %s8692_s20 }
 0x598   : > { %2330 = vrot.lane.b32.xlu0 %v9301_v15, %s8691_s15 }
 0x59b   : > { %7946 = vrot.lane.b32.xlu1 %v9343_v49, %s8692_s20 }
 0x59c   : > { %2332 = vrot.lane.b32.xlu0 %v9327_v44, %s8691_s15  ;;  %s11350_s15 = sld [smem:[#allocation59_spill]] (!%p7130_p7) }
 0x59f   : > { %7951 = vrot.lane.b32.xlu1 %v9349_v36, %s8692_s20 }
 0x5a0   : > { %7936 = vrot.lane.b32.xlu0 %v9337_v48, %s8692_s20  ;;  %s8707_s20 = smov (!%p7130_p7), 64  }
 0x5c6   : > { %v1768_v25 = vpop.xlane.xlu1 %1767 }
 0x5ca   : > { %v1765_v26 = vpop.xlane.xlu0 %1764  ;;  %v1762_v30 = vpop.xlane.xlu1 %1761 }
 0x5cb   : > { %8072 = vrcp.f32 %v1762_v30 }
 0x5cc   : > { %8074 = vrcp.f32 %v1765_v26 }
 0x5ce   : > { %v1759_v31 = vpop.xlane.xlu0 %1758 }
 0x5cf   : > { %8076 = vrcp.f32 %v1759_v31 }
 0x5d0   : > { %8078 = vrcp.f32 %v1768_v25 }
 0x5d2   : > { %v2149_v0 = vpop.permute.xlu0 %2148 }
 0x5d5   : > { %v8073_v32 = vpop.eup %8072 }
 0x5d6   : > { %v8075_v33 = vpop.eup %8074  ;;  %v1790_v29 = vmul.f32 %v8073_v32, %v9462_v40  ;;  %v2240_v40 = vpop.permute.xlu1 %2239 }
 0x5d7   : > { %v1791_v46 = vmul.f32 %v8075_v33, %v9464_v53 }
 0x5d9   : > { %v8077_v39 = vpop.eup %8076 }
 0x5da   : > { %v1789_v34 = vmul.f32 %v8077_v39, %v8063_v61  ;;  %v8079_v54 = vpop.eup %8078  ;;  %v7615_v61 = vpack.c.bf16 %v7924_v58, %v7923_v59 }
 0x5db   : > { %v1792_v4 = vmul.f32 %v8079_v54, %v9458_v51 }
 0x5dc   : > { %7345 = vmatprep.mubr.msk.f32.mxu0 %vm1034_vm1, %v1789_v34 }
 0x5dd   : > { %7346 = vmatmul.mubr.msk.f32.vlgmr.msra.gmra.mrb[12].mxu0 %vm1034_vm1, %v1790_v29 }
 0x5de   : > { %7600 = vmatpush3.bf16.msra.mxu0 %v9391_v11  ;;  %7352 = vmatprep.mubr.msk.f32.mxu0 %vm1034_vm1, %v1791_v46 }
 0x5df   : > { %7606 = vmatprep.subr.bf16.mxu0 %v7605_v62 }
 0x5e1   : > { %7353 = vmatmul.mubr.msk.f32.vlgmr.msra.gmra.mrb[14].mxu0 %vm1034_vm1, %v1792_v4 }
 0x5e2   : > { %7608 = vmatpush3.bf16.msra.mxu0 %v7605_v62 }
 0x5e3   : > { %7617 = vmatprep.subr.msk.bf16.mxu0 %vm9357_vm4, %v7615_v61 }
 0x5ff   : > { %v1780_v53 = vpop.xlane.xlu1 %1779 }
 0x600   : > { %8080 = vrcp.f32 %v1780_v53 }
 0x603   : > { %v1777_v56 = vpop.xlane.xlu1 %1776  ;;  %v1774_v1 = vpop.xlane.xlu0 %1773 }
 0x604   : > { %8082 = vrcp.f32 %v1777_v56 }
 0x605   : > { %8084 = vrcp.f32 %v1774_v1 }
 0x607   : > { %v7932_v11 = vpop.permute.xlu1 %7931  ;;  %v1771_v2 = vpop.xlane.xlu0 %1770 }
 0x608   : > { %8086 = vrcp.f32 %v1771_v2  ;;  %v7934_v12 = vunpack.i.h.bf16 %v7932_v11  ;;  %v7933_v13 = vunpack.i.l.bf16 %v7932_v11 }
 0x60a   : > { %v8081_v7 = vpop.eup %8080  ;;  %v7627_v24 = vpack.c.bf16 %v7934_v12, %v7933_v13 }
 0x60b   : > { %v2242_v3 = vpop.permute.xlu1 %2241  ;;  %v7927_v51 = vpop.permute.xlu0 %7926  ;;  %v1796_v10 = vmul.f32 %v8081_v7, %v9480_v18 }
 0x60c   : > { %v7929_v26 = vunpack.i.h.bf16 %v7927_v51  ;;  %v7928_v30 = vunpack.i.l.bf16 %v7927_v51 }
 0x60e   : > { %v8083_v8 = vpop.eup %8082  ;;  %v7621_v33 = vpack.c.bf16 %v7929_v26, %v7928_v30 }
 0x60f   : > { %v2422_v16 = vpop.permute.xlu1 %2421  ;;  %v1795_v19 = vmul.f32 %v8083_v8, %v9484_v20  ;;  %v2151_v9 = vpop.permute.xlu0 %2150  ;;  %v6977_v8 = vld [vmem:[%s9176_s12 + $0x10] sm:$0xff] }
 0x610   : > { %v8085_v22 = vpop.eup %8084 }
 0x611   : > { %7366 = vmatprep.mubr.msk.f32.mxu0 %vm1034_vm1, %v1795_v19  ;;  %v1794_v32 = vmul.f32 %v8085_v22, %v9486_v57 }
 0x612   : > { %7367 = vmatmul.mubr.msk.f32.vlgmr.msra.gmra.mrb[16].mxu0 %vm1034_vm1, %v1796_v10  ;;  %v8087_v25 = vpop.eup %8086 }
 0x613   : > { %7620 = vmatpush3.bf16.xpose.msk.msra.mxu0 %vm9357_vm4, %v7615_v61  ;;  %v2424_v31 = vpop.permute.xlu1 %2423  ;;  %7380 = vmatprep.mubr.msk.f32.mxu0 %vm1350_vm3, %v2240_v40  ;;  %v2331_v20 = vpop.permute.xlu0 %2330  ;;  %v1793_v18 = vmul.f32 %v8087_v25, %v9492_v17 }
 0x614   : > { %7629 = vmatprep.subr.msk.bf16.mxu0 %vm9357_vm4, %v7627_v24 }
 0x615   : > { %7359 = vmatprep.mubr.msk.f32.mxu1 %vm1034_vm1, %v1793_v18 }
 0x616   : > { %7360 = vmatmul.mubr.msk.f32.vlgmr.msra.gmra.mrb[4].mxu1 %vm1034_vm1, %v1794_v32 }
 0x617   : > { %v7942_v39 = vpop.permute.xlu1 %7941  ;;  %7614 = vmatpush3.bf16.xpose.msk.msra.mxu1 %vm9357_vm4, %v9470_v60  ;;  %7373 = vmatprep.mubr.msk.f32.mxu1 %vm1350_vm3, %v2149_v0  ;;  %v2333_v34 = vpop.permute.xlu0 %2332 }
 0x618   : > { %v7944_v28 = vunpack.i.h.bf16 %v7942_v39  ;;  %v7943_v52 = vunpack.i.l.bf16 %v7942_v39  ;;  %7623 = vmatprep.subr.msk.bf16.mxu1 %vm9357_vm4, %v7621_v33 }
 0x61a   : > { %7381 = vmatmul.mubr.msk.f32.vlgmr.msra.gmra.mrb[18].mxu0 %vm1350_vm3, %v2242_v3  ;;  %v7637_v57 = vpack.c.bf16 %v7944_v28, %v7943_v52 }
 0x61b   : > { %7632 = vmatpush3.bf16.xpose.msk.msra.mxu0 %vm9357_vm4, %v7627_v24  ;;  %7394 = vmatprep.mubr.msk.f32.mxu0 %vm1350_vm3, %v2422_v16  ;;  %v7947_v17 = vpop.permute.xlu1 %7946  ;;  %v7937_v29 = vpop.permute.xlu0 %7936 }
 0x61c   : > { %7638 = vmatprep.subr.bf16.mxu0 %v7637_v57  ;;  %v7939_v60 = vunpack.i.h.bf16 %v7937_v29  ;;  %v7938_v54 = vunpack.i.l.bf16 %v7937_v29  ;;  %v7949_v61 = vunpack.i.h.bf16 %v7947_v17  ;;  %v7948_v40 = vunpack.i.l.bf16 %v7947_v17 }
 0x61e   : > { %7374 = vmatmul.mubr.msk.f32.vlgmr.msra.gmra.mrb[6].mxu1 %vm1350_vm3, %v2151_v9  ;;  %v7633_v58 = vpack.c.bf16 %v7939_v60, %v7938_v54  ;;  %v9560_v53 = vpack.c.bf16 %v7949_v61, %v7948_v40  ;;  %v6978_v9 = vld [vmem:[%s9176_s12 + $0x18] sm:$0xff] }
 0x61f   : > { %v7952_v46 = vpop.permute.xlu1 %7951  ;;  %7626 = vmatpush3.bf16.xpose.msk.msra.mxu1 %vm9357_vm4, %v7621_v33  ;;  %7387 = vmatprep.mubr.msk.f32.mxu1 %vm1350_vm3, %v2331_v20 }
 0x620   : > { %v7954_v59 = vunpack.i.h.bf16 %v7952_v46  ;;  %v7953_v62 = vunpack.i.l.bf16 %v7952_v46  ;;  %7634 = vmatprep.subr.bf16.mxu1 %v7633_v58 }
 0x622   : > { %7395 = vmatmul.mubr.msk.f32.vlgmr.msra.gmra.mrb[20].mxu0 %vm1350_vm3, %v2424_v31  ;;  %v9556_v4 = vpack.c.bf16 %v7954_v59, %v7953_v62 }
 0x623   : > { %7640 = vmatpush3.bf16.msra.mxu0 %v7637_v57 }
 0x624   : > { %7646 = vmatprep.subr.bf16.mxu0 %v9556_v4 }
 0x626   : > { %7388 = vmatmul.mubr.msk.f32.vlgmr.msra.gmra.mrb[8].mxu1 %vm1350_vm3, %v2333_v34 }
 0x627   : > { %7636 = vmatpush3.bf16.msra.mxu1 %v7633_v58 }
 0x628   : > { %7642 = vmatprep.subr.bf16.mxu1 %v9560_v53 }
 0x6b0   : > { %v9563_v0 = vpop.f32.mrb[12].mxu0 }
 0x6b1   : > { %v9565_v56 = vpop.f32.mrb[13].mxu0 }
 0x6b4   : > { %v9567_v1 = vpop.f32.mrb[14].mxu0 }
 0x6b5   : > { %v9569_v11 = vpop.f32.mrb[15].mxu0 }
 0x6e5   : > { %v9571_v2 = vpop.f32.mrb[16].mxu0 }
 0x6e6   : > { %v9573_v3 = vpop.f32.mrb[17].mxu0 }
 0x6e9   : > { %v9575_v51 = vpop.f32.mrb[4].mxu1 }
 0x6ea   : > { %v9577_v7 = vpop.f32.mrb[5].mxu1 }
 0x6ed   : > { %v7382_v12 = vpop.f32.mrb[18].mxu0 }
 0x6ee   : > { %v2321_v13 = vpop.f32.mrb[19].mxu0  ;;  %v2327_v18 = vadd.f32 %v7382_v12, %v6978_v9 }
 0x6ef   : > { %v2322_v16 = vadd.f32 %v6977_v8, %v2321_v13 }
 0x6f0   : > { %v2515_v57 = vadd.f32 %v2327_v18, %v9407_v21 }
 0x6f1   : > { %v2514_v19 = vadd.f32 %v2322_v16, %v9411_v27  ;;  %v7375_v10 = vpop.f32.mrb[6].mxu1 }
 0x6f2   : > { %v2236_v22 = vadd.f32 %v7375_v10, %v6978_v9  ;;  %v2230_v24 = vpop.f32.mrb[7].mxu1  ;;  %v2529_v29 = vsel %vm1034_vm1, %v2515_v57, -inf }
 0x6f3   : > { %v2526_v25 = vsel %vm1034_vm1, %v2514_v19, -inf  ;;  %v2231_v26 = vadd.f32 %v6977_v8, %v2230_v24 }
 0x6f4   : > { %2527 = vmax.xlane.f32.xlu1 %v2526_v25  ;;  %v2513_v31 = vadd.f32 %v2236_v22, %v9409_v23 }
 0x6f5   : > { %v7396_v30 = vpop.f32.mrb[20].mxu0  ;;  %v2512_v33 = vadd.f32 %v2231_v26, %v9421_v50 }
 0x6f6   : > { %v2503_v20 = vpop.f32.mrb[21].mxu0  ;;  %v2523_v32 = vsel %vm1034_vm1, %v2513_v31, -inf  ;;  %v2509_v59 = vadd.f32 %v7396_v30, %v6978_v9 }
 0x6f7   : > { %2524 = vmax.xlane.f32.xlu0 %v2523_v32  ;;  %v2520_v34 = vsel %vm1034_vm1, %v2512_v33, -inf  ;;  %v2504_v62 = vadd.f32 %v6977_v8, %v2503_v20 }
 0x6f8   : > { %v2519_v61 = vadd.f32 %v2509_v59, %v9432_v55 }
 0x6f9   : > { %v7389_v39 = vpop.f32.mrb[8].mxu1  ;;  %v2518_v12 = vadd.f32 %v2504_v62, %v9436_v47 }
 0x6fa   : > { %v2418_v28 = vadd.f32 %v7389_v39, %v6978_v9  ;;  %v2412_v52 = vpop.f32.mrb[9].mxu1  ;;  %v2541_v40 = vsel %vm1034_vm1, %v2519_v61, -inf }
 0x6fb   : > { %2521 = vmax.xlane.f32.xlu0 %v2520_v34  ;;  %v2413_v17 = vadd.f32 %v6977_v8, %v2412_v52  ;;  %v2538_v13 = vsel %vm1034_vm1, %v2518_v12, -inf }
 0x6fc   : > { %v2517_v60 = vadd.f32 %v2418_v28, %v9438_v63 }
 0x6fd   : > { %v2516_v46 = vadd.f32 %v2413_v17, %v9445_v6 }
 0x6fe   : > { %v2535_v54 = vsel %vm1034_vm1, %v2517_v60, -inf }
 0x6ff   : > { %2530 = vmax.xlane.f32.xlu0 %v2529_v29  ;;  %v2532_v58 = vsel %vm1034_vm1, %v2516_v46, -inf }
 0x703   : > { %2536 = vmax.xlane.f32.xlu0 %v2535_v54 }
 0x705   : > { %7961 = vrot.lane.b32.xlu1 %v9333_v45, %s8693_s10 }
 0x707   : > { %2533 = vmax.xlane.f32.xlu0 %v2532_v58 }
 0x71d   : > { %7956 = vrot.lane.b32.xlu0 %v9337_v48, %s8693_s10 }
 0x729   : > { %2542 = vmax.xlane.f32.xlu1 %v2541_v40 }
 0x72d   : > { %2539 = vmax.xlane.f32.xlu1 %v2538_v13 }
 0x73e   : > { %3050 = vrot.lane.b32.xlu1 %v9321_v41, %s8694_s25 }
 0x781   : > { %v2528_v24 = vpop.xlane.xlu1 %2527 }
 0x782   : > { %v2546_v25 = vsub.f32 %v2514_v19, %v2528_v24 }
 0x784   : > { %v2525_v16 = vpop.xlane.xlu0 %2524  ;;  %v2556_v18 = vmul.f32 1.442695, %v2546_v25 }
 0x785   : > { %v2545_v10 = vsub.f32 %v2513_v31, %v2525_v16  ;;  %v9623_v29 = vpop.permute.xlu1 %7961 }
 0x787   : > { %v2554_v22 = vmul.f32 1.442695, %v2545_v10 }
 0x788   : > { %v2522_v9 = vpop.xlane.xlu0 %2521 }
 0x789   : > { %8088 = vpow2.f32 %v2554_v22  ;;  %v2544_v8 = vsub.f32 %v2512_v33, %v2522_v9 }
 0x78b   : > { %v2552_v26 = vmul.f32 1.442695, %v2544_v8 }
 0x78c   : > { %v2531_v30 = vpop.xlane.xlu0 %2530 }
 0x78d   : > { %8090 = vpow2.f32 %v2552_v26  ;;  %v2547_v20 = vsub.f32 %v2515_v57, %v2531_v30 }
 0x78f   : > { %v2558_v32 = vmul.f32 1.442695, %v2547_v20 }
 0x790   : > { %v2537_v17 = vpop.xlane.xlu0 %2536 }
 0x791   : > { %8092 = vpow2.f32 %v2558_v32  ;;  %v2549_v54 = vsub.f32 %v2517_v60, %v2537_v17 }
 0x792   : > { %8094 = vpow2.f32 %v2556_v18 }
 0x793   : > { %v9603_v39 = vpop.eup %8088  ;;  %v2562_v62 = vmul.f32 1.442695, %v2549_v54 }
 0x794   : > { %v2571_v28 = vsel %vm1034_vm1, %v9603_v39, 0.0  ;;  %v2534_v58 = vpop.xlane.xlu0 %2533 }
 0x795   : > { %2572 = vadd.xlane.f32.xlu0 %v2571_v28  ;;  %v2548_v40 = vsub.f32 %v2516_v46, %v2534_v58  ;;  %8096 = vpow2.f32 %v2562_v62 }
 0x797   : > { %v9607_v31 = vpop.eup %8090  ;;  %v2560_v13 = vmul.f32 1.442695, %v2548_v40 }
 0x798   : > { %v2568_v33 = vsel %vm1034_vm1, %v9607_v31, 0.0  ;;  %v7957_v20 = vpop.permute.xlu0 %7956 }
 0x799   : > { %2569 = vadd.xlane.f32.xlu0 %v2568_v33  ;;  %8098 = vpow2.f32 %v2560_v13  ;;  %v7959_v54 = vunpack.i.h.bf16 %v7957_v20  ;;  %v7958_v58 = vunpack.i.l.bf16 %v7957_v20 }
 0x79b   : > { %v9611_v19 = vpop.eup %8092  ;;  %v7649_v40 = vpack.c.bf16 %v7959_v54, %v7958_v58 }
 0x79c   : > { %v2577_v52 = vsel %vm1034_vm1, %v9611_v19, 0.0  ;;  %v9615_v34 = vpop.eup %8094 }
 0x79d   : > { %2578 = vadd.xlane.f32.xlu1 %v2577_v52  ;;  %v2574_v57 = vsel %vm1034_vm1, %v9615_v34, 0.0 }
 0x79f   : > { %v9625_v8 = vpop.eup %8096 }
 0x7a0   : > { %v2583_v25 = vsel %vm1034_vm1, %v9625_v8, 0.0 }
 0x7a1   : > { %2575 = vadd.xlane.f32.xlu1 %v2574_v57 }
 0x7a3   : > { %v9629_v60 = vpop.eup %8098 }
 0x7a4   : > { %v2580_v46 = vsel %vm1034_vm1, %v9629_v60, 0.0 }
 0x7af   : > { %2959 = vrot.lane.b32.xlu0 %v9299_v14, %s8694_s25 }
 0x7b2   : > { %7971 = vrot.lane.b32.xlu1 %v9349_v36, %s8693_s10 }
 0x7b6   : > { %v2543_v59 = vpop.xlane.xlu1 %2542 }
 0x7b7   : > { %v2551_v16 = vsub.f32 %v2519_v61, %v2543_v59 }
 0x7b9   : > { %v2566_v22 = vmul.f32 1.442695, %v2551_v16 }
 0x7ba   : > { %v2540_v10 = vpop.xlane.xlu1 %2539 }
 0x7bb   : > { %v2550_v24 = vsub.f32 %v2518_v12, %v2540_v10  ;;  %8100 = vpow2.f32 %v2566_v22  ;;  %v7964_v10 = vunpack.i.h.bf16 %v9623_v29  ;;  %v7963_v22 = vunpack.i.l.bf16 %v9623_v29 }
 0x7bd   : > { %v2564_v9 = vmul.f32 1.442695, %v2550_v24  ;;  %v7655_v24 = vpack.c.bf16 %v7964_v10, %v7963_v22 }
 0x7be   : > { %v9659_v32 = vpop.permute.xlu1 %3050 }
 0x7bf   : > { %8102 = vpow2.f32 %v2564_v9 }
 0x7c5   : > { %v9633_v26 = vpop.eup %8100 }
 0x7c6   : > { %v2589_v61 = vsel %vm1034_vm1, %v9633_v26, 0.0 }
 0x7c9   : > { %v9637_v12 = vpop.eup %8102 }
 0x7ca   : > { %v2586_v30 = vsel %vm1034_vm1, %v9637_v12, 0.0 }
 0x7ce   : > { %2584 = vadd.xlane.f32.xlu0 %v2583_v25 }
 0x7d2   : > { %2581 = vadd.xlane.f32.xlu0 %v2580_v46 }
 0x7d6   : > { %2590 = vadd.xlane.f32.xlu1 %v2589_v61 }
 0x7da   : > { %2587 = vadd.xlane.f32.xlu1 %v2586_v30 }
 0x7e8   : > { %7966 = vrot.lane.b32.xlu0 %v9343_v49, %s8693_s10 }
 0x7eb   : > { %3052 = vrot.lane.b32.xlu1 %v9313_v35, %s8694_s25 }
 0x7ec   : > { %2961 = vrot.lane.b32.xlu0 %v9325_v43, %s8694_s25 }
 0x7ef   : > { %3232 = vrot.lane.b32.xlu1 %v9323_v42, %s8694_s25 }
 0x7f0   : > { %3141 = vrot.lane.b32.xlu0 %v9301_v15, %s8694_s25 }
 0x7f3   : > { %3234 = vrot.lane.b32.xlu1 %v9315_v38, %s8694_s25 }
 0x7f4   : > { %3143 = vrot.lane.b32.xlu0 %v9327_v44, %s8694_s25 }
 0x7f7   : > { %7981 = vrot.lane.b32.xlu1 %v9333_v45, %s8695_s29 }
 0x7f8   : > { %7976 = vrot.lane.b32.xlu0 %v9337_v48, %s8695_s29 }
 0x7fb   : > { %7986 = vrot.lane.b32.xlu1 %v9343_v49, %s8695_s29 }
 0x7ff   : > { %7991 = vrot.lane.b32.xlu1 %v9349_v36, %s8695_s29  ;;  %s8709_s29 = smov (!%p7130_p7), 80  }
 0x822   : > { %v2573_v18 = vpop.xlane.xlu0 %2572 }
 0x823   : > { %8104 = vrcp.f32 %v2573_v18 }
 0x826   : > { %v2570_v28 = vpop.xlane.xlu0 %2569 }
 0x827   : > { %8106 = vrcp.f32 %v2570_v28 }
 0x82a   : > { %v2579_v33 = vpop.xlane.xlu1 %2578 }
 0x82b   : > { %8108 = vrcp.f32 %v2579_v33 }
 0x82d   : > { %v8105_v57 = vpop.eup %8104 }
 0x82e   : > { %v2576_v52 = vpop.xlane.xlu1 %2575  ;;  %v2601_v62 = vmul.f32 %v8105_v57, %v9603_v39 }
 0x82f   : > { %8110 = vrcp.f32 %v2576_v52 }
 0x831   : > { %v8107_v17 = vpop.eup %8106 }
 0x832   : > { %v2600_v59 = vmul.f32 %v8107_v17, %v9607_v31  ;;  %v7972_v25 = vpop.permute.xlu1 %7971 }
 0x834   : > { %7401 = vmatprep.mubr.msk.f32.mxu1 %vm1034_vm1, %v2600_v59 }
 0x835   : > { %7402 = vmatmul.mubr.msk.f32.vlgmr.msra.gmra.mrb[10].mxu1 %vm1034_vm1, %v2601_v62  ;;  %v8109_v13 = vpop.eup %8108 }
 0x836   : > { %7644 = vmatpush3.bf16.msra.mxu1 %v9560_v53  ;;  %v2603_v39 = vmul.f32 %v8109_v13, %v9611_v19  ;;  %v2960_v53 = vpop.permute.xlu0 %2959  ;;  %v7973_v13 = vunpack.i.l.bf16 %v7972_v25 }
 0x837   : > { %7651 = vmatprep.subr.msk.bf16.mxu1 %vm9357_vm4, %v7649_v40 }
 0x839   : > { %v8111_v16 = vpop.eup %8110 }
 0x83a   : > { %v2602_v31 = vmul.f32 %v8111_v16, %v9615_v34 }
 0x83c   : > { %7408 = vmatprep.mubr.msk.f32.mxu0 %vm1034_vm1, %v2602_v31 }
 0x83d   : > { %7409 = vmatmul.mubr.msk.f32.vlgmr.msra.gmra.mrb[22].mxu0 %vm1034_vm1, %v2603_v39 }
 0x83e   : > { %7648 = vmatpush3.bf16.msra.mxu0 %v9556_v4 }
 0x83f   : > { %7657 = vmatprep.subr.msk.bf16.mxu0 %vm9357_vm4, %v7655_v24 }
 0x85b   : > { %v2585_v9 = vpop.xlane.xlu0 %2584 }
 0x85c   : > { %8112 = vrcp.f32 %v2585_v9 }
 0x85f   : > { %v2582_v46 = vpop.xlane.xlu0 %2581 }
 0x860   : > { %8114 = vrcp.f32 %v2582_v46 }
 0x863   : > { %v2591_v29 = vpop.xlane.xlu1 %2590  ;;  %v7967_v34 = vpop.permute.xlu0 %7966 }
 0x864   : > { %8116 = vrcp.f32 %v2591_v29  ;;  %v7969_v18 = vunpack.i.h.bf16 %v7967_v34  ;;  %v7968_v28 = vunpack.i.l.bf16 %v7967_v34 }
 0x866   : > { %v8113_v30 = vpop.eup %8112  ;;  %v7661_v17 = vpack.c.bf16 %v7969_v18, %v7968_v28 }
 0x867   : > { %v2588_v19 = vpop.xlane.xlu1 %2587  ;;  %v2962_v61 = vpop.permute.xlu0 %2961  ;;  %v2605_v57 = vmul.f32 %v8113_v30, %v9625_v8 }
 0x868   : > { %8118 = vrcp.f32 %v2588_v19 }
 0x86a   : > { %v8115_v20 = vpop.eup %8114 }
 0x86b   : > { %v3053_v4 = vpop.permute.xlu1 %3052  ;;  %v3142_v33 = vpop.permute.xlu0 %3141  ;;  %v2604_v52 = vmul.f32 %v8115_v20, %v9629_v60  ;;  %v7974_v60 = vunpack.i.h.bf16 %v7972_v25 }
 0x86d   : > { %7415 = vmatprep.mubr.msk.f32.mxu1 %vm1034_vm1, %v2604_v52 }
 0x86e   : > { %7416 = vmatmul.mubr.msk.f32.vlgmr.msra.gmra.mrb[12].mxu1 %vm1034_vm1, %v2605_v57  ;;  %v8117_v59 = vpop.eup %8116  ;;  %v7004_v57 = vld [vmem:[%s9176_s12 + $0x28] sm:$0xff] }
 0x86f   : > { %7654 = vmatpush3.bf16.xpose.msk.msra.mxu1 %vm9357_vm4, %v7649_v40  ;;  %v3233_v54 = vpop.permute.xlu1 %3232  ;;  %7429 = vmatprep.mubr.msk.f32.mxu1 %vm1350_vm3, %v2960_v53  ;;  %v3144_v58 = vpop.permute.xlu0 %3143  ;;  %v2607_v39 = vmul.f32 %v8117_v59, %v9633_v26  ;;  %v7667_v53 = vpack.c.bf16 %v7974_v60, %v7973_v13 }
 0x870   : > { %7663 = vmatprep.subr.msk.bf16.mxu1 %vm9357_vm4, %v7661_v17 }
 0x872   : > { %v8119_v62 = vpop.eup %8118 }
 0x873   : > { %v3235_v8 = vpop.permute.xlu1 %3234  ;;  %v7977_v16 = vpop.permute.xlu0 %7976  ;;  %v2606_v10 = vmul.f32 %v8119_v62, %v9637_v12 }
 0x874   : > { %v7979_v22 = vunpack.i.h.bf16 %v7977_v16  ;;  %v7978_v31 = vunpack.i.l.bf16 %v7977_v16 }
 0x875   : > { %7422 = vmatprep.mubr.msk.f32.mxu0 %vm1034_vm1, %v2606_v10 }
 0x876   : > { %v7673_v40 = vpack.c.bf16 %v7979_v22, %v7978_v31  ;;  %7430 = vmatmul.mubr.msk.f32.vlgmr.msra.gmra.mrb[14].mxu1 %vm1350_vm3, %v2962_v61  ;;  %7423 = vmatmul.mubr.msk.f32.vlgmr.msra.gmra.mrb[24].mxu0 %vm1034_vm1, %v2607_v39 }
 0x877   : > { %7660 = vmatpush3.bf16.xpose.msk.msra.mxu0 %vm9357_vm4, %v7655_v24  ;;  %7666 = vmatpush3.bf16.xpose.msk.msra.mxu1 %vm9357_vm4, %v7661_v17  ;;  %v7982_v9 = vpop.permute.xlu1 %7981  ;;  %v7003_v17 = vld [vmem:[%s9176_s12 + $0x20] sm:$0xff] }
 0x878   : > { %7443 = vmatprep.mubr.msk.f32.mxu1 %vm1350_vm3, %v3142_v33  ;;  %7436 = vmatprep.mubr.msk.f32.mxu0 %vm1350_vm3, %v9659_v32  ;;  %v7984_v26 = vunpack.i.h.bf16 %v7982_v9  ;;  %v7983_v12 = vunpack.i.l.bf16 %v7982_v9 }
 0x879   : > { %7669 = vmatprep.subr.msk.bf16.mxu0 %vm9357_vm4, %v7667_v53  ;;  %7674 = vmatprep.subr.bf16.mxu1 %v7673_v40 }
 0x87a   : > { %v7677_v34 = vpack.c.bf16 %v7984_v26, %v7983_v12 }
 0x87b   : > { %v7987_v25 = vpop.permute.xlu1 %7986 }
 0x87c   : > { %v7989_v46 = vunpack.i.h.bf16 %v7987_v25  ;;  %v7988_v29 = vunpack.i.l.bf16 %v7987_v25 }
 0x87e   : > { %v9700_v24 = vpack.c.bf16 %v7989_v46, %v7988_v29  ;;  %7437 = vmatmul.mubr.msk.f32.vlgmr.msra.gmra.mrb[26].mxu0 %vm1350_vm3, %v3053_v4  ;;  %7444 = vmatmul.mubr.msk.f32.vlgmr.msra.gmra.mrb[16].mxu1 %vm1350_vm3, %v3144_v58 }
 0x87f   : > { %7672 = vmatpush3.bf16.xpose.msk.msra.mxu0 %vm9357_vm4, %v7667_v53  ;;  %7450 = vmatprep.mubr.msk.f32.mxu0 %vm1350_vm3, %v3233_v54  ;;  %v7992_v32 = vpop.permute.xlu1 %7991 }
 0x880   : > { %7676 = vmatpush3.bf16.msra.mxu1 %v7673_v40  ;;  %7678 = vmatprep.subr.bf16.mxu0 %v7677_v34  ;;  %v7994_v19 = vunpack.i.h.bf16 %v7992_v32  ;;  %v7993_v61 = vunpack.i.l.bf16 %v7992_v32 }
 0x881   : > { %7682 = vmatprep.subr.bf16.mxu1 %v9700_v24 }
 0x882   : > { %v9708_v30 = vpack.c.bf16 %v7994_v19, %v7993_v61 }
 0x886   : > { %7451 = vmatmul.mubr.msk.f32.vlgmr.msra.gmra.mrb[28].mxu0 %vm1350_vm3, %v3235_v8 }
 0x887   : > { %7680 = vmatpush3.bf16.msra.mxu0 %v7677_v34 }
 0x888   : > { %7686 = vmatprep.subr.bf16.mxu0 %v9708_v30 }
 0x908   : > { %v9712_v20 = vpop.f32.mrb[10].mxu1 }
 0x909   : > { %v9714_v18 = vpop.f32.mrb[11].mxu1 }
 0x910   : > { %v9716_v28 = vpop.f32.mrb[22].mxu0 }
 0x911   : > { %v9718_v4 = vpop.f32.mrb[23].mxu0 }
 0x941   : > { %v9720_v33 = vpop.f32.mrb[12].mxu1 }
 0x942   : > { %v9722_v52 = vpop.f32.mrb[13].mxu1 }
 0x949   : > { %v7431_v54 = vpop.f32.mrb[14].mxu1  ;;  %v9726_v58 = vpop.f32.mrb[24].mxu0 }
 0x94a   : > { %v3047_v59 = vadd.f32 %v7431_v54, %v7004_v57  ;;  %v3041_v62 = vpop.f32.mrb[15].mxu1  ;;  %v9728_v60 = vpop.f32.mrb[25].mxu0 }
 0x94b   : > { %v3042_v13 = vadd.f32 %v7003_v17, %v3041_v62 }
 0x94c   : > { %v3324_v8 = vadd.f32 %v3047_v59, %v9409_v23 }
 0x94d   : > { %v3323_v10 = vadd.f32 %v3042_v13, %v9421_v50 }
 0x94e   : > { %v3334_v16 = vsel %vm1034_vm1, %v3324_v8, -inf }
 0x94f   : > { %3335 = vmax.xlane.f32.xlu0 %v3334_v16  ;;  %v3331_v26 = vsel %vm1034_vm1, %v3323_v10, -inf }
 0x951   : > { %v7438_v22 = vpop.f32.mrb[26].mxu0  ;;  %v7445_v31 = vpop.f32.mrb[16].mxu1 }
 0x952   : > { %v3138_v39 = vadd.f32 %v7438_v22, %v7004_v57  ;;  %v3229_v40 = vadd.f32 %v7445_v31, %v7004_v57  ;;  %v3132_v53 = vpop.f32.mrb[27].mxu0  ;;  %v3223_v9 = vpop.f32.mrb[17].mxu1 }
 0x953   : > { %v3133_v12 = vadd.f32 %v7003_v17, %v3132_v53  ;;  %3332 = vmax.xlane.f32.xlu0 %v3331_v26  ;;  %v3224_v29 = vadd.f32 %v7003_v17, %v3223_v9 }
 0x954   : > { %v3326_v25 = vadd.f32 %v3138_v39, %v9407_v21  ;;  %v3328_v32 = vadd.f32 %v3229_v40, %v9438_v63 }
 0x955   : > { %v3325_v46 = vadd.f32 %v3133_v12, %v9411_v27  ;;  %v3327_v62 = vadd.f32 %v3224_v29, %v9445_v6 }
 0x956   : > { %v3340_v34 = vsel %vm1034_vm1, %v3326_v25, -inf  ;;  %v3346_v59 = vsel %vm1034_vm1, %v3328_v32, -inf }
 0x957   : > { %3341 = vmax.xlane.f32.xlu0 %v3340_v34  ;;  %v3337_v19 = vsel %vm1034_vm1, %v3325_v46, -inf  ;;  %v3343_v13 = vsel %vm1034_vm1, %v3327_v62, -inf }
 0x958   : > { %3338 = vmax.xlane.f32.xlu1 %v3337_v19 }
 0x959   : > { %v7452_v61 = vpop.f32.mrb[28].mxu0 }
 0x95a   : > { %v3314_v54 = vpop.f32.mrb[29].mxu0  ;;  %v3320_v16 = vadd.f32 %v7452_v61, %v7004_v57 }
 0x95b   : > { %3347 = vmax.xlane.f32.xlu0 %v3346_v59  ;;  %v3315_v22 = vadd.f32 %v7003_v17, %v3314_v54 }
 0x95c   : > { %v3330_v31 = vadd.f32 %v3320_v16, %v9432_v55 }
 0x95d   : > { %v3329_v39 = vadd.f32 %v3315_v22, %v9436_v47 }
 0x95e   : > { %v3352_v40 = vsel %vm1034_vm1, %v3330_v31, -inf }
 0x95f   : > { %3344 = vmax.xlane.f32.xlu0 %v3343_v13  ;;  %v3349_v53 = vsel %vm1034_vm1, %v3329_v39, -inf }
 0x969   : > { %8001 = vrot.lane.b32.xlu1 %v9333_v45, %s8696_s14 }
 0x975   : > { %7996 = vrot.lane.b32.xlu0 %v9337_v48, %s8696_s14 }
 0x98d   : > { %3353 = vmax.xlane.f32.xlu1 %v3352_v40 }
 0x991   : > { %3350 = vmax.xlane.f32.xlu1 %v3349_v53 }
 0x9a2   : > { %8011 = vrot.lane.b32.xlu1 %v9349_v36, %s8696_s14 }
 0x9dc   : > { %v3336_v9 = vpop.xlane.xlu0 %3335 }
 0x9dd   : > { %v3356_v26 = vsub.f32 %v3324_v8, %v3336_v9 }
 0x9df   : > { %v3365_v12 = vmul.f32 1.442695, %v3356_v26 }
 0x9e0   : > { %v3333_v29 = vpop.xlane.xlu0 %3332 }
 0x9e1   : > { %8120 = vpow2.f32 %v3365_v12  ;;  %v3355_v57 = vsub.f32 %v3323_v10, %v3333_v29 }
 0x9e3   : > { %v3363_v17 = vmul.f32 1.442695, %v3355_v57 }
 0x9e4   : > { %v3342_v34 = vpop.xlane.xlu0 %3341 }
 0x9e5   : > { %8122 = vpow2.f32 %v3363_v17  ;;  %v3358_v19 = vsub.f32 %v3326_v25, %v3342_v34  ;;  %v3339_v61 = vpop.xlane.xlu1 %3338 }
 0x9e6   : > { %v3357_v54 = vsub.f32 %v3325_v46, %v3339_v61 }
 0x9e7   : > { %v3369_v59 = vmul.f32 1.442695, %v3358_v19 }
 0x9e8   : > { %v3367_v13 = vmul.f32 1.442695, %v3357_v54  ;;  %v3348_v9 = vpop.xlane.xlu0 %3347 }
 0x9e9   : > { %8124 = vpow2.f32 %v3369_v59  ;;  %v3360_v26 = vsub.f32 %v3328_v32, %v3348_v9  ;;  %v8002_v17 = vpop.permute.xlu1 %8001 }
 0x9ea   : > { %8126 = vpow2.f32 %v3367_v13 }
 0x9eb   : > { %v9752_v16 = vpop.eup %8120  ;;  %v3373_v29 = vmul.f32 1.442695, %v3360_v26 }
 0x9ec   : > { %v3382_v22 = vsel %vm1034_vm1, %v9752_v16, 0.0  ;;  %v3345_v12 = vpop.xlane.xlu0 %3344 }
 0x9ed   : > { %3383 = vadd.xlane.f32.xlu0 %v3382_v22  ;;  %v3359_v57 = vsub.f32 %v3327_v62, %v3345_v12  ;;  %8128 = vpow2.f32 %v3373_v29 }
 0x9ef   : > { %v8123_v8 = vpop.eup %8122  ;;  %v3371_v34 = vmul.f32 1.442695, %v3359_v57 }
 0x9f0   : > { %v3379_v40 = vsel %vm1034_vm1, %v8123_v8, 0.0  ;;  %v7997_v9 = vpop.permute.xlu0 %7996 }
 0x9f1   : > { %3380 = vadd.xlane.f32.xlu0 %v3379_v40  ;;  %8130 = vpow2.f32 %v3371_v34  ;;  %v7998_v57 = vunpack.i.l.bf16 %v7997_v9 }
 0x9f3   : > { %v9757_v10 = vpop.eup %8124 }
 0x9f4   : > { %v3388_v25 = vsel %vm1034_vm1, %v9757_v10, 0.0  ;;  %v9761_v46 = vpop.eup %8126 }
 0x9f5   : > { %3389 = vadd.xlane.f32.xlu1 %v3388_v25  ;;  %v3385_v53 = vsel %vm1034_vm1, %v9761_v46, 0.0 }
 0x9f7   : > { %v9769_v40 = vpop.eup %8128 }
 0x9f9   : > { %3386 = vadd.xlane.f32.xlu1 %v3385_v53 }
 0x9fb   : > { %v9773_v32 = vpop.eup %8130 }
 0x9fc   : > { %v3391_v62 = vsel %vm1034_vm1, %v9773_v32, 0.0 }
 0xa07   : > { %8006 = vrot.lane.b32.xlu0 %v9343_v49, %s8696_s14 }
 0xa0a   : > { %3861 = vrot.lane.b32.xlu1 %v9321_v41, %s8697_s3  ;;  %v3394_v41 = vsel %vm1034_vm1, %v9769_v40, 0.0 }
 0xa1a   : > { %v3354_v19 = vpop.xlane.xlu1 %3353 }
 0xa1b   : > { %v3362_v61 = vsub.f32 %v3330_v31, %v3354_v19 }
 0xa1d   : > { %v3377_v54 = vmul.f32 1.442695, %v3362_v61 }
 0xa1e   : > { %v3351_v59 = vpop.xlane.xlu1 %3350 }
 0xa1f   : > { %v3361_v13 = vsub.f32 %v3329_v39, %v3351_v59  ;;  %8132 = vpow2.f32 %v3377_v54  ;;  %v8004_v54 = vunpack.i.h.bf16 %v8002_v17  ;;  %v8003_v59 = vunpack.i.l.bf16 %v8002_v17 }
 0xa21   : > { %v3375_v22 = vmul.f32 1.442695, %v3361_v13 }
 0xa22   : > { %v9799_v26 = vpop.permute.xlu1 %8011 }
 0xa23   : > { %8134 = vpow2.f32 %v3375_v22 }
 0xa26   : > { %3395 = vadd.xlane.f32.xlu0 %v3394_v41 }
 0xa29   : > { %v9777_v25 = vpop.eup %8132 }
 0xa2a   : > { %3392 = vadd.xlane.f32.xlu0 %v3391_v62  ;;  %v3400_v31 = vsel %vm1034_vm1, %v9777_v25, 0.0 }
 0xa2d   : > { %v9781_v39 = vpop.eup %8134 }
 0xa2e   : > { %3401 = vadd.xlane.f32.xlu1 %v3400_v31  ;;  %v3397_v53 = vsel %vm1034_vm1, %v9781_v39, 0.0 }
 0xa32   : > { %3398 = vadd.xlane.f32.xlu1 %v3397_v53 }
 0xa40   : > { %3770 = vrot.lane.b32.xlu0 %v9299_v14, %s8697_s3 }
 0xa43   : > { %3863 = vrot.lane.b32.xlu1 %v9313_v35, %s8697_s3 }
 0xa44   : > { %3772 = vrot.lane.b32.xlu0 %v9325_v43, %s8697_s3 }
 0xa47   : > { %4043 = vrot.lane.b32.xlu1 %v9323_v42, %s8697_s3 }
 0xa48   : > { %3952 = vrot.lane.b32.xlu0 %v9301_v15, %s8697_s3  ;;  %v7999_v15 = vunpack.i.h.bf16 %v7997_v9 }
 0xa4b   : > { %4045 = vrot.lane.b32.xlu1 %v9315_v38, %s8697_s3 }
 0xa4c   : > { %3954 = vrot.lane.b32.xlu0 %v9327_v44, %s8697_s3  ;;  %v7689_v44 = vpack.c.bf16 %v7999_v15, %v7998_v57 }
 0xa7a   : > { %v3384_v14 = vpop.xlane.xlu0 %3383 }
 0xa7b   : > { %8136 = vrcp.f32 %v3384_v14 }
 0xa7e   : > { %v3381_v35 = vpop.xlane.xlu0 %3380 }
 0xa7f   : > { %8138 = vrcp.f32 %v3381_v35 }
 0xa82   : > { %v3390_v43 = vpop.xlane.xlu1 %3389 }
 0xa83   : > { %8140 = vrcp.f32 %v3390_v43 }
 0xa85   : > { %v8137_v42 = vpop.eup %8136 }
 0xa86   : > { %v3387_v12 = vpop.xlane.xlu1 %3386  ;;  %v3412_v38 = vmul.f32 %v8137_v42, %v9752_v16  ;;  %v7695_v16 = vpack.c.bf16 %v8004_v54, %v8003_v59 }
 0xa87   : > { %8142 = vrcp.f32 %v3387_v12 }
 0xa89   : > { %v8139_v29 = vpop.eup %8138 }
 0xa8a   : > { %v3411_v34 = vmul.f32 %v8139_v29, %v8123_v8  ;;  %v3862_v41 = vpop.permute.xlu1 %3861 }
 0xa8c   : > { %7457 = vmatprep.mubr.msk.f32.mxu1 %vm1034_vm1, %v3411_v34 }
 0xa8d   : > { %7458 = vmatmul.mubr.msk.f32.vlgmr.msra.gmra.mrb[18].mxu1 %vm1034_vm1, %v3412_v38  ;;  %v8141_v19 = vpop.eup %8140 }
 0xa8e   : > { %7684 = vmatpush3.bf16.msra.mxu1 %v9700_v24  ;;  %v3414_v8 = vmul.f32 %v8141_v19, %v9757_v10  ;;  %v8007_v24 = vpop.permute.xlu0 %8006 }
 0xa8f   : > { %7691 = vmatprep.subr.msk.bf16.mxu1 %vm9357_vm4, %v7689_v44  ;;  %v8009_v53 = vunpack.i.h.bf16 %v8007_v24  ;;  %v8008_v9 = vunpack.i.l.bf16 %v8007_v24 }
 0xa91   : > { %v8143_v61 = vpop.eup %8142  ;;  %v7701_v43 = vpack.c.bf16 %v8009_v53, %v8008_v9 }
 0xa92   : > { %v3413_v13 = vmul.f32 %v8143_v61, %v9761_v46 }
 0xa94   : > { %7464 = vmatprep.mubr.msk.f32.mxu0 %vm1034_vm1, %v3413_v13 }
 0xa95   : > { %7465 = vmatmul.mubr.msk.f32.vlgmr.msra.gmra.mrb[30].mxu0 %vm1034_vm1, %v3414_v8 }
 0xa96   : > { %7688 = vmatpush3.bf16.msra.mxu0 %v9708_v30 }
 0xa97   : > { %7697 = vmatprep.subr.msk.bf16.mxu0 %vm9357_vm4, %v7695_v16 }
 0xab3   : > { %v3396_v22 = vpop.xlane.xlu0 %3395 }
 0xab4   : > { %8144 = vrcp.f32 %v3396_v22 }
 0xab7   : > { %v3393_v62 = vpop.xlane.xlu0 %3392 }
 0xab8   : > { %8146 = vrcp.f32 %v3393_v62 }
 0xabb   : > { %v3402_v17 = vpop.xlane.xlu1 %3401  ;;  %v3771_v14 = vpop.permute.xlu0 %3770 }
 0xabc   : > { %8148 = vrcp.f32 %v3402_v17 }
 0xabe   : > { %v8145_v10 = vpop.eup %8144 }
 0xabf   : > { %v3399_v46 = vpop.xlane.xlu1 %3398  ;;  %v3416_v35 = vmul.f32 %v8145_v10, %v9769_v40  ;;  %v3773_v42 = vpop.permute.xlu0 %3772  ;;  %v8013_v40 = vunpack.i.l.bf16 %v9799_v26 }
 0xac0   : > { %8150 = vrcp.f32 %v3399_v46 }
 0xac2   : > { %v8147_v31 = vpop.eup %8146 }
 0xac3   : > { %v3415_v30 = vmul.f32 %v8147_v31, %v9773_v32  ;;  %v8014_v32 = vunpack.i.h.bf16 %v9799_v26  ;;  %v3953_v38 = vpop.permute.xlu0 %3952 }
 0xac5   : > { %7471 = vmatprep.mubr.msk.f32.mxu1 %vm1034_vm1, %v3415_v30  ;;  %v7707_v34 = vpack.c.bf16 %v8014_v32, %v8013_v40 }
 0xac6   : > { %7472 = vmatmul.mubr.msk.f32.vlgmr.msra.gmra.mrb[20].mxu1 %vm1034_vm1, %v3416_v35  ;;  %v8149_v12 = vpop.eup %8148 }
 0xac7   : > { %7694 = vmatpush3.bf16.xpose.msk.msra.mxu1 %vm9357_vm4, %v7689_v44  ;;  %7485 = vmatprep.mubr.msk.f32.mxu1 %vm1350_vm3, %v3771_v14  ;;  %v3418_v57 = vmul.f32 %v8149_v12, %v9777_v25  ;;  %v3864_v44 = vpop.permute.xlu1 %3863  ;;  %v3955_v25 = vpop.permute.xlu0 %3954 }
 0xac8   : > { %7703 = vmatprep.subr.msk.bf16.mxu1 %vm9357_vm4, %v7701_v43 }
 0xaca   : > { %v8151_v29 = vpop.eup %8150 }
 0xacb   : > { %v3417_v15 = vmul.f32 %v8151_v29, %v9781_v39  ;;  %v4044_v39 = vpop.permute.xlu1 %4043 }
 0xacd   : > { %7478 = vmatprep.mubr.msk.f32.mxu0 %vm1034_vm1, %v3417_v15 }
 0xace   : > { %7486 = vmatmul.mubr.msk.f32.vlgmr.msra.gmra.mrb[22].mxu1 %vm1350_vm3, %v3773_v42  ;;  %7479 = vmatmul.mubr.msk.f32.vlgmr.msra.gmra.mrb[32].mxu0 %vm1034_vm1, %v3418_v57 }
 0xacf   : > { %7700 = vmatpush3.bf16.xpose.msk.msra.mxu0 %vm9357_vm4, %v7695_v16  ;;  %7706 = vmatpush3.bf16.xpose.msk.msra.mxu1 %vm9357_vm4, %v7701_v43  ;;  %v4046_v26 = vpop.permute.xlu1 %4045  ;;  %v7030_v16 = vld [vmem:[%s9176_s12 + $0x38] sm:$0xff]  ;;  %s8698_s12 = smov 84  }
 0xad0   : > { %7499 = vmatprep.mubr.msk.f32.mxu1 %vm1350_vm3, %v3953_v38  ;;  %7492 = vmatprep.mubr.msk.f32.mxu0 %vm1350_vm3, %v3862_v41 }
 0xad1   : > { %7709 = vmatprep.subr.msk.bf16.mxu0 %vm9357_vm4, %v7707_v34 }
 0xad6   : > { %7493 = vmatmul.mubr.msk.f32.vlgmr.msra.gmra.mrb[34].mxu0 %vm1350_vm3, %v3864_v44  ;;  %7500 = vmatmul.mubr.msk.f32.vlgmr.msra.gmra.mrb[24].mxu1 %vm1350_vm3, %v3955_v25 }
 0xad7   : > { %7712 = vmatpush3.bf16.xpose.msk.msra.mxu0 %vm9357_vm4, %v7707_v34  ;;  %7506 = vmatprep.mubr.msk.f32.mxu0 %vm1350_vm3, %v4044_v39 }
 0xade   : > { %7507 = vmatmul.mubr.msk.f32.vlgmr.msra.gmra.mrb[36].mxu0 %vm1350_vm3, %v4046_v26 }
 0xb60   : > { %v9844_v19 = vpop.f32.mrb[18].mxu1 }
 0xb61   : > { %v9846_v61 = vpop.f32.mrb[19].mxu1 }
 0xb68   : > { %v9848_v54 = vpop.f32.mrb[30].mxu0 }
 0xb69   : > { %v9850_v59 = vpop.f32.mrb[31].mxu0 }
 0xb99   : > { %v9852_v13 = vpop.f32.mrb[20].mxu1 }
 0xb9a   : > { %v9854_v8 = vpop.f32.mrb[21].mxu1 }
 0xba1   : > { %v7487_v24 = vpop.f32.mrb[22].mxu1  ;;  %v9858_v22 = vpop.f32.mrb[32].mxu0 }
 0xba2   : > { %v3858_v41 = vadd.f32 %v7487_v24, %v7030_v16  ;;  %v3852_v62 = vpop.f32.mrb[23].mxu1  ;;  %v9860_v17 = vpop.f32.mrb[33].mxu0 }
 0xba3   : > { %v3853_v46 = vadd.f32 %v7029_v37, %v3852_v62 }
 0xba4   : > { %v4135_v10 = vadd.f32 %v3858_v41, %v9409_v23 }
 0xba5   : > { %v4134_v31 = vadd.f32 %v3853_v46, %v9421_v50 }
 0xba6   : > { %v4145_v53 = vsel %vm1034_vm1, %v4135_v10, -inf }
 0xba7   : > { %4146 = vmax.xlane.f32.xlu0 %v4145_v53  ;;  %v4142_v12 = vsel %vm1034_vm1, %v4134_v31, -inf }
 0xba9   : > { %v7494_v9 = vpop.f32.mrb[34].mxu0  ;;  %v7501_v14 = vpop.f32.mrb[24].mxu1 }
 0xbaa   : > { %v3949_v30 = vadd.f32 %v7494_v9, %v7030_v16  ;;  %v3943_v35 = vpop.f32.mrb[35].mxu0  ;;  %v4034_v43 = vpop.f32.mrb[25].mxu1  ;;  %v4040_v23 = vadd.f32 %v7501_v14, %v7030_v16 }
 0xbab   : > { %v3944_v42 = vadd.f32 %v7029_v37, %v3943_v35  ;;  %v4035_v29 = vadd.f32 %v7029_v37, %v4034_v43  ;;  %4143 = vmax.xlane.f32.xlu0 %v4142_v12 }
 0xbac   : > { %v4137_v32 = vadd.f32 %v3949_v30, %v9407_v21  ;;  %v4139_v38 = vadd.f32 %v4040_v23, %v9438_v63 }
 0xbad   : > { %v4136_v40 = vadd.f32 %v3944_v42, %v9411_v27  ;;  %v4138_v50 = vadd.f32 %v4035_v29, %v9445_v6 }
 0xbae   : > { %v4151_v15 = vsel %vm1034_vm1, %v4137_v32, -inf  ;;  %v4157_v27 = vsel %vm1034_vm1, %v4139_v38, -inf }
 0xbaf   : > { %4152 = vmax.xlane.f32.xlu0 %v4151_v15  ;;  %v4148_v57 = vsel %vm1034_vm1, %v4136_v40, -inf  ;;  %v4154_v25 = vsel %vm1034_vm1, %v4138_v50, -inf }
 0xbb0   : > { %4149 = vmax.xlane.f32.xlu1 %v4148_v57 }
 0xbb1   : > { %v7508_v34 = vpop.f32.mrb[36].mxu0 }
 0xbb2   : > { %v4125_v44 = vpop.f32.mrb[37].mxu0  ;;  %v4131_v39 = vadd.f32 %v7508_v34, %v7030_v16 }
 0xbb3   : > { %v4126_v26 = vadd.f32 %v7029_v37, %v4125_v44  ;;  %4155 = vmax.xlane.f32.xlu0 %v4154_v25 }
 0xbb4   : > { %v4141_v6 = vadd.f32 %v4131_v39, %v9432_v55 }
 0xbb5   : > { %v9874_v21 = vadd.f32 %v4126_v26, %v9436_v47 }
 0xbb6   : > { %v4163_v63 = vsel %vm1034_vm1, %v4141_v6, -inf }
 0xbb7   : > { %4158 = vmax.xlane.f32.xlu0 %v4157_v27  ;;  %v4160_v24 = vsel %vm1034_vm1, %v9874_v21, -inf }
 0xbb8   : > { %4161 = vmax.xlane.f32.xlu1 %v4160_v24 }
 0xbbc   : > { %4164 = vmax.xlane.f32.xlu1 %v4163_v63 }
 0xc34   : > { %v4147_v41 = vpop.xlane.xlu0 %4146 }
 0xc35   : > { %v4167_v62 = vsub.f32 %v4135_v10, %v4147_v41 }
 0xc37   : > { %v4176_v16 = vmul.f32 1.442695, %v4167_v62 }
 0xc38   : > { %v4144_v37 = vpop.xlane.xlu0 %4143 }
 0xc39   : > { %8152 = vpow2.f32 %v4176_v16  ;;  %v4166_v46 = vsub.f32 %v4134_v31, %v4144_v37 }
 0xc3b   : > { %v4174_v47 = vmul.f32 1.442695, %v4166_v46 }
 0xc3c   : > { %v4153_v53 = vpop.xlane.xlu0 %4152 }
 0xc3d   : > { %8154 = vpow2.f32 %v4174_v47  ;;  %v4169_v9 = vsub.f32 %v4137_v32, %v4153_v53  ;;  %v4150_v14 = vpop.xlane.xlu1 %4149 }
 0xc3e   : > { %v4168_v55 = vsub.f32 %v4136_v40, %v4150_v14 }
 0xc3f   : > { %v4180_v30 = vmul.f32 1.442695, %v4169_v9 }
 0xc40   : > { %v4178_v35 = vmul.f32 1.442695, %v4168_v55  ;;  %v4156_v43 = vpop.xlane.xlu0 %4155 }
 0xc41   : > { %8156 = vpow2.f32 %v4180_v30  ;;  %v4170_v42 = vsub.f32 %v4138_v50, %v4156_v43 }
 0xc42   : > { %8158 = vpow2.f32 %v4178_v35 }
 0xc43   : > { %v9881_v12 = vpop.eup %8152  ;;  %v4182_v15 = vmul.f32 1.442695, %v4170_v42 }
 0xc44   : > { %v4159_v29 = vpop.xlane.xlu0 %4158  ;;  %v4193_v10 = vsel %vm1034_vm1, %v9881_v12, 0.0 }
 0xc45   : > { %v4171_v23 = vsub.f32 %v4139_v38, %v4159_v29  ;;  %4194 = vadd.xlane.f32.xlu0 %v4193_v10  ;;  %v4162_v27 = vpop.xlane.xlu1 %4161 }
 0xc46   : > { %v4172_v41 = vsub.f32 %v9874_v21, %v4162_v27 }
 0xc47   : > { %v8155_v31 = vpop.eup %8154  ;;  %v4184_v57 = vmul.f32 1.442695, %v4171_v23 }
 0xc48   : > { %v4190_v32 = vsel %vm1034_vm1, %v8155_v31, 0.0 }
 0xc49   : > { %8160 = vpow2.f32 %v4184_v57  ;;  %4191 = vadd.xlane.f32.xlu0 %v4190_v32  ;;  %v4165_v24 = vpop.xlane.xlu1 %4164 }
 0xc4a   : > { %8162 = vpow2.f32 %v4182_v15  ;;  %v4173_v63 = vsub.f32 %v4141_v6, %v4165_v24 }
 0xc4b   : > { %v9886_v40 = vpop.eup %8156 }
 0xc4c   : > { %v4199_v34 = vsel %vm1034_vm1, %v9886_v40, 0.0  ;;  %v9890_v50 = vpop.eup %8158  ;;  %v4188_v62 = vmul.f32 1.442695, %v4173_v63 }
 0xc4d   : > { %4200 = vadd.xlane.f32.xlu1 %v4199_v34  ;;  %v4196_v38 = vsel %vm1034_vm1, %v9890_v50, 0.0 }
 0xc4e   : > { %8164 = vpow2.f32 %v4188_v62 }
 0xc51   : > { %4197 = vadd.xlane.f32.xlu1 %v4196_v38 }
 0xc53   : > { %v9894_v44 = vpop.eup %8160 }
 0xc54   : > { %v4205_v25 = vsel %vm1034_vm1, %v9894_v44, 0.0  ;;  %v9898_v39 = vpop.eup %8162 }
 0xc55   : > { %4206 = vadd.xlane.f32.xlu0 %v4205_v25  ;;  %v4202_v26 = vsel %vm1034_vm1, %v9898_v39, 0.0 }
 0xc59   : > { %4203 = vadd.xlane.f32.xlu0 %v4202_v26 }
 0xc62   : > { %8021 = vrot.lane.b32.xlu1 %v9333_v45, %s8698_s12  ;;  %v4186_v45 = vmul.f32 1.442695, %v4172_v41 }
 0xc64   : > { %8166 = vpow2.f32 %v4186_v45  ;;  %v8036_v45 = vld [vmem:[%s9171_s22] sm:$0xff]   ;;  %s11309_s22 = scalar_lea.vmem [#allocation7], %s9115_s19 }
 0xc66   : > { %8026 = vrot.lane.b32.xlu1 %v9343_v49, %s8698_s12 }
 0xc6f   : > { %8016 = vrot.lane.b32.xlu0 %v9337_v48, %s8698_s12  ;;  %v9916_v48 = vpop.eup %8164 }
 0xc70   : > { %v4211_v49 = vsel %vm1034_vm1, %v9916_v48, 0.0 }
 0xc73   : > { %4592 = vrot.lane.b32.xlu0 %v9716_v28, %s8699_s7 }
 0xc77   : > { %4586 = vrot.lane.b32.xlu0 %v9714_v18, %s8699_s7  ;;  %v9922_v18 = vpop.eup %8166 }
 0xc78   : > { %v4208_v28 = vsel %vm1034_vm1, %v9922_v18, 0.0 }
 0xc7b   : > { %4624 = vrot.lane.b32.xlu0 %v9848_v54, %s8700_s0 }
 0xc7f   : > { %4618 = vrot.lane.b32.xlu0 %v9846_v61, %s8700_s0 }
 0xc83   : > { %4588 = vrot.lane.b32.xlu0 %v9712_v20, %s8699_s7 }
 0xc87   : > { %4620 = vrot.lane.b32.xlu0 %v9844_v19, %s8700_s0 }
 0xc8a   : > { %4212 = vadd.xlane.f32.xlu1 %v4211_v49 }
 0xc8e   : > { %4209 = vadd.xlane.f32.xlu1 %v4208_v28 }
 0xc9f   : > { %8031 = vrot.lane.b32.xlu1 %v9349_v36, %s8698_s12  ;;  %s8710_s12 = smov (!%p7130_p7), 96  }
 0xca3   : > { %4600 = vrot.lane.b32.xlu1 %v9726_v58, %s8699_s7 }
 0xca7   : > { %4594 = vrot.lane.b32.xlu1 %v9722_v52, %s8699_s7 }
 0xcab   : > { %4632 = vrot.lane.b32.xlu1 %v9858_v22, %s8700_s0 }
 0xcaf   : > { %4626 = vrot.lane.b32.xlu1 %v9854_v8, %s8700_s0 }
 0xcb3   : > { %4596 = vrot.lane.b32.xlu1 %v9720_v33, %s8699_s7 }
 0xcb7   : > { %4628 = vrot.lane.b32.xlu1 %v9852_v13, %s8700_s0 }
 0xcd2   : > { %v4195_v20 = vpop.xlane.xlu0 %4194 }
 0xcd6   : > { %v4192_v36 = vpop.xlane.xlu0 %4191 }
 0xcd7   : > { %8168 = vrcp.f32 %v4192_v36 }
 0xcda   : > { %v4201_v19 = vpop.xlane.xlu1 %4200 }
 0xcdb   : > { %8170 = vrcp.f32 %v4201_v19 }
 0xcde   : > { %v4198_v58 = vpop.xlane.xlu1 %4197 }
 0xcdf   : > { %8172 = vrcp.f32 %v4198_v58 }
 0xce0   : > { %8174 = vrcp.f32 %v4195_v20 }
 0xce1   : > { %v8169_v52 = vpop.eup %8168 }
 0xce2   : > { %v8022_v61 = vpop.permute.xlu1 %8021  ;;  %v4207_v54 = vpop.xlane.xlu0 %4206  ;;  %v4222_v22 = vmul.f32 %v8169_v52, %v8155_v31 }
 0xce3   : > { %v8024_v21 = vunpack.i.h.bf16 %v8022_v61  ;;  %v8023_v6 = vunpack.i.l.bf16 %v8022_v61 }
 0xce4   : > { %7513 = vmatprep.mubr.msk.f32.mxu1 %vm1034_vm1, %v4222_v22 }
 0xce5   : > { %v7717_v33 = vpack.c.bf16 %v8024_v21, %v8023_v6  ;;  %v8171_v16 = vpop.eup %8170 }
 0xce6   : > { %v4204_v8 = vpop.xlane.xlu0 %4203  ;;  %v8027_v13 = vpop.permute.xlu1 %8026  ;;  %v4225_v46 = vmul.f32 %v8171_v16, %v9886_v40 }
 0xce7   : > { %8176 = vrcp.f32 %v4204_v8  ;;  %7718 = vmatprep.subr.bf16.mxu0 %v7717_v33  ;;  %v8029_v9 = vunpack.i.h.bf16 %v8027_v13  ;;  %v8028_v14 = vunpack.i.l.bf16 %v8027_v13 }
 0xce8   : > { %8178 = vrcp.f32 %v4207_v54  ;;  %7720 = vmatpush3.bf16.msra.mxu0 %v7717_v33 }
 0xce9   : > { %v8173_v37 = vpop.eup %8172  ;;  %v7721_v42 = vpack.c.bf16 %v8029_v9, %v8028_v14 }
 0xcea   : > { %v8017_v47 = vpop.permute.xlu0 %8016  ;;  %v4224_v53 = vmul.f32 %v8173_v37, %v9890_v50  ;;  %v8175_v43 = vpop.eup %8174 }
 0xceb   : > { %v8019_v55 = vunpack.i.h.bf16 %v8017_v47  ;;  %v8018_v30 = vunpack.i.l.bf16 %v8017_v47  ;;  %v4223_v10 = vmul.f32 %v8175_v43, %v9881_v12 }
 0xcec   : > { %7520 = vmatprep.mubr.msk.f32.mxu0 %vm1034_vm1, %v4224_v53 }
 0xced   : > { %v7713_v35 = vpack.c.bf16 %v8019_v55, %v8018_v30  ;;  %7521 = vmatmul.mubr.msk.f32.vlgmr.msra.gmra.mrb[38].mxu0 %vm1034_vm1, %v4225_v46 }
 0xcef   : > { %7714 = vmatprep.subr.bf16.mxu1 %v7713_v35 }
 0xcf0   : > { %7716 = vmatpush3.bf16.msra.mxu1 %v7713_v35 }
 0xcf1   : > { %v8177_v29 = vpop.eup %8176  ;;  %7722 = vmatprep.subr.bf16.mxu1 %v7721_v42 }
 0xcf2   : > { %v8179_v23 = vpop.eup %8178  ;;  %v4226_v31 = vmul.f32 %v8177_v29, %v9898_v39 }
 0xcf3   : > { %7514 = vmatmul.mubr.msk.f32.vlgmr.msra.gmra.mrb[26].mxu1 %vm1034_vm1, %v4223_v10  ;;  %v4227_v15 = vmul.f32 %v8179_v23, %v9894_v44 }
 0xcf4   : > { %7724 = vmatpush3.bf16.msra.mxu1 %v7721_v42  ;;  %7527 = vmatprep.mubr.msk.f32.mxu1 %vm1034_vm1, %v4226_v31 }
 0xcf5   : > { %7537 = vmatprep.subr.bf16.mxu1 %v8036_v45 }
 0xcf7   : > { %7528 = vmatmul.mubr.msk.f32.vlgmr.msra.gmra.mrb[28].mxu1 %vm1034_vm1, %v4227_v15 }
 0xcf8   : > { %7538 = vmatpush3.bf16.msra.mxu1 %v8036_v45 }
 0xd17   : > { %v4213_v57 = vpop.xlane.xlu1 %4212 }
 0xd18   : > { %8180 = vrcp.f32 %v4213_v57 }
 0xd1b   : > { %v4210_v32 = vpop.xlane.xlu1 %4209 }
 0xd1c   : > { %8182 = vrcp.f32 %v4210_v32 }
 0xd1f   : > { %v8032_v40 = vpop.permute.xlu1 %8031 }
 0xd20   : > { %v8034_v34 = vunpack.i.h.bf16 %v8032_v40  ;;  %v8033_v12 = vunpack.i.l.bf16 %v8032_v40 }
 0xd22   : > { %v7725_v50 = vpack.c.bf16 %v8034_v34, %v8033_v12  ;;  %v8181_v38 = vpop.eup %8180 }
 0xd23   : > { %v4229_v26 = vmul.f32 %v8181_v38, %v9916_v48  ;;  %v4601_v28 = vpop.permute.xlu1 %4600 }
 0xd24   : > { %7726 = vmatprep.subr.bf16.mxu0 %v7725_v50 }
 0xd25   : > { %7728 = vmatpush3.bf16.msra.mxu0 %v7725_v50 }
 0xd26   : > { %v8183_v25 = vpop.eup %8182 }
 0xd27   : > { %v4228_v39 = vmul.f32 %v8183_v25, %v9922_v18  ;;  %v4593_v18 = vpop.permute.xlu0 %4592  ;;  %v4595_v20 = vpop.permute.xlu1 %4594  ;;  %v4681_v25 = vsel %vm1350_vm3, %v9571_v2, %v4601_v28 }
 0xd28   : > { %v4677_v50 = vsel %vm1350_vm3, %v9567_v1, %v4593_v18 }
 0xd29   : > { %7534 = vmatprep.mubr.msk.f32.mxu0 %vm1034_vm1, %v4228_v39 }
 0xd2a   : > { %7535 = vmatmul.mubr.msk.f32.vlgmr.msra.gmra.mrb[40].mxu0 %vm1034_vm1, %v4229_v26 }
 0xdc0   : > { %v7522_v44 = vpop.f32.mrb[38].mxu0 }
 0xdc1   : > { %v4395_v27 = vpop.f32.mrb[39].mxu0 }
 0xdc6   : > { %v7515_v24 = vpop.f32.mrb[26].mxu1 }
 0xdc7   : > { %4652 = vrot.lane.b32.xlu0 %v7515_v24, %s8701_s6  ;;  %v4308_v63 = vpop.f32.mrb[27].mxu1 }
 0xdca   : > { %v7529_v41 = vpop.f32.mrb[28].mxu1 }
 0xdcb   : > { %4650 = vrot.lane.b32.xlu0 %v4308_v63, %s8701_s6  ;;  %4660 = vrot.lane.b32.xlu1 %v7529_v41, %s8701_s6  ;;  %v4482_v62 = vpop.f32.mrb[29].mxu1 }
 0xdcf   : > { %4656 = vrot.lane.b32.xlu0 %v7522_v44, %s8701_s6  ;;  %4658 = vrot.lane.b32.xlu1 %v4482_v62, %s8701_s6 }
 0xdd3   : > { %4590 = vrot.lane.b32.xlu0 %v9718_v4, %s8699_s7  ;;  %v4587_v4 = vpop.permute.xlu0 %4586 }
 0xdd4   : > { %v4674_v37 = vsel %vm1350_vm3, %v9565_v56, %v4587_v4 }
 0xdd7   : > { %4622 = vrot.lane.b32.xlu0 %v9850_v59, %s8700_s0  ;;  %v4625_v36 = vpop.permute.xlu0 %4624  ;;  %v4633_v59 = vpop.permute.xlu1 %4632 }
 0xdd8   : > { %v4686_v38 = vsel %vm4682_vm6, %v4677_v50, %v4625_v36  ;;  %v4690_v26 = vsel %vm4682_vm6, %v4681_v25, %v4633_v59 }
 0xddb   : > { %4654 = vrot.lane.b32.xlu0 %v4395_v27, %s8701_s6  ;;  %v4619_v19 = vpop.permute.xlu0 %4618  ;;  %v4627_v58 = vpop.permute.xlu1 %4626 }
 0xddc   : > { %v4683_v47 = vsel %vm4682_vm6, %v4674_v37, %v4619_v19 }
 0xddf   : > { %v4589_v52 = vpop.permute.xlu0 %4588  ;;  %v4597_v61 = vpop.permute.xlu1 %4596 }
 0xde0   : > { %v4679_v6 = vsel %vm1350_vm3, %v9575_v51, %v4597_v61  ;;  %v4678_v51 = vsel %vm1350_vm3, %v9577_v7, %v4595_v20 }
 0xde1   : > { %v4687_v55 = vsel %vm4682_vm6, %v4678_v51, %v4627_v58  ;;  %v7064_v51 = vld [vmem:[%s11309_s22] ss:$0 sm:$0xff] }
 0xde3   : > { %v4621_v54 = vpop.permute.xlu0 %4620  ;;  %v4629_v22 = vpop.permute.xlu1 %4628 }
 0xde4   : > { %v4688_v8 = vsel %vm4682_vm6, %v4679_v6, %v4629_v22 }
 0xdfd   : > { %v7536_v48 = vpop.f32.mrb[40].mxu0 }
 0xdfe   : > { %v4569_v49 = vpop.f32.mrb[41].mxu0  ;;  %4664 = vrot.lane.b32.xlu1 %v7536_v48, %s8701_s6 }
 0xe02   : > { %4598 = vrot.lane.b32.xlu1 %v9728_v60, %s8699_s7  ;;  %v4675_v60 = vsel %vm1350_vm3, %v9563_v0, %v4589_v52 }
 0xe06   : > { %4630 = vrot.lane.b32.xlu1 %v9860_v17, %s8700_s0  ;;  %v4684_v17 = vsel %vm4682_vm6, %v4675_v60, %v4621_v54 }
 0xe0a   : > { %4662 = vrot.lane.b32.xlu1 %v4569_v49, %s8701_s6  ;;  %s8711_s6 = smov (!%p7130_p7), 112  }
 0xe39   : > { %v4653_v21 = vpop.permute.xlu0 %4652 }
 0xe3a   : > { %v4693_v33 = vsel %vm4691_vm5, %v4684_v17, %v4653_v21 }
 0xe3b   : > { %v4705_v0 = vcombine.high %v4693_v33, %v4693_v33 }
 0xe3d   : > { %v4651_v16 = vpop.permute.xlu0 %4650  ;;  %v4661_v13 = vpop.permute.xlu1 %4660 }
 0xe3e   : > { %v4697_v46 = vsel %vm4691_vm5, %v4688_v8, %v4661_v13  ;;  %v4692_v14 = vsel %vm4691_vm5, %v4683_v47, %v4651_v16 }
 0xe3f   : > { %v4722_v53 = vcombine.low %v4697_v46, %v4697_v46  ;;  %v7056_v9 = vcombine.high %v4697_v46, %v4697_v46  ;;  %v4704_v42 = vcombine.high %v4692_v14, %v4692_v14 }
 0xe41   : > { %v4739_v30 = vsel %vm4736_vm7, %v4693_v33, %v4722_v53  ;;  %v4740_v35 = vsel %vm4736_vm7, %v4705_v0, %v7056_v9  ;;  %v4659_v56 = vpop.permute.xlu1 %4658  ;;  %v4657_v34 = vpop.permute.xlu0 %4656 }
 0xe42   : > { %v4696_v43 = vsel %vm4691_vm5, %v4687_v55, %v4659_v56  ;;  %v4695_v39 = vsel %vm4691_vm5, %v4686_v38, %v4657_v34  ;;  %v4758_v6 = vrot.slane %v4740_v35, 6  ;;  %v8232_v55 = vld [vmem:[#allocation2 + $0x10] sm:$0xff]  ;;  %v8236_v38 = vld [vmem:[#allocation2 + $0x20] sm:$0xff] }
 0xe43   : > { %v4720_v29 = vcombine.low %v4696_v43, %v4696_v43  ;;  %v7055_v10 = vcombine.high %v4696_v43, %v4696_v43  ;;  %v4707_v24 = vcombine.high %v4695_v39, %v4695_v39 }
 0xe45   : > { %v4737_v23 = vsel %vm4736_vm7, %v4692_v14, %v4720_v29  ;;  %v4738_v31 = vsel %vm4736_vm7, %v4704_v42, %v7055_v10  ;;  %v4591_v12 = vpop.permute.xlu0 %4590  ;;  %v8234_v10 = vld [vmem:[#allocation2 + $0x8] sm:$0xff] }
 0xe46   : > { %v4755_v15 = vrot.slane %v4737_v23, 6  ;;  %v4756_v7 = vrot.slane %v4738_v31, 6  ;;  %v4676_v59 = vsel %vm1350_vm3, %v9569_v11, %v4591_v12  ;;  %v4757_v11 = vrot.slane %v4739_v30, 6 }
 0xe48   : > { %v4780_v57 = vsel %vm9291_vm2, %v4755_v15, %v4739_v30  ;;  %v4781_v32 = vsel %vm9291_vm2, %v4756_v7, %v4740_v35  ;;  %v8233_v35 = vld [vmem:[#allocation2] sm:$0xff] }
 0xe49   : > { %v4787_v40 = vpack.c.bf16 %v4781_v32, %v4780_v57  ;;  %v4623_v63 = vpop.permute.xlu0 %4622 }
 0xe4a   : > { %v4685_v19 = vsel %vm4682_vm6, %v4676_v59, %v4623_v63 }
 0xe4d   : > { %v4655_v4 = vpop.permute.xlu0 %4654 }
 0xe4e   : > { %v4694_v58 = vsel %vm4691_vm5, %v4685_v19, %v4655_v4 }
 0xe4f   : > { %v4706_v21 = vcombine.high %v4694_v58, %v4694_v58 }
 0xe70   : > { %v4665_v44 = vpop.permute.xlu1 %4664 }
 0xe71   : > { %v4699_v27 = vsel %vm4691_vm5, %v4690_v26, %v4665_v44  ;;  %v8237_v26 = vld [vmem:[#allocation2 + $0x30] sm:$0xff] }
 0xe72   : > { %v4726_v41 = vcombine.low %v4699_v27, %v4699_v27  ;;  %v7058_v62 = vcombine.high %v4699_v27, %v4699_v27 }
 0xe74   : > { %v4743_v45 = vsel %vm4736_vm7, %v4695_v39, %v4726_v41  ;;  %v4744_v1 = vsel %vm4736_vm7, %v4707_v24, %v7058_v62  ;;  %v4599_v48 = vpop.permute.xlu1 %4598  ;;  %v8238_v41 = vld [vmem:[#allocation2 + $0x38] sm:$0xff] }
 0xe75   : > { %v4753_v49 = vrot.slane %v4743_v45, 6  ;;  %v4754_v18 = vrot.slane %v4744_v1, 6  ;;  %v4680_v52 = vsel %vm1350_vm3, %v9573_v3, %v4599_v48 }
 0xe77   : > { %v4778_v2 = vsel %vm9291_vm2, %v4753_v49, %v4737_v23  ;;  %v4779_v28 = vsel %vm9291_vm2, %v4754_v18, %v4738_v31  ;;  %v8235_v31 = vld [vmem:[#allocation2 + $0x18] sm:$0xff] }
 0xe78   : > { %v4631_v20 = vpop.permute.xlu1 %4630  ;;  %v4786_v36 = vpack.c.bf16 %v4779_v28, %v4778_v2 }
 0xe79   : > { %v4689_v61 = vsel %vm4682_vm6, %v4680_v52, %v4631_v20 }
 0xe7a   : > { %7539 = vmatprep.mubr.msk.bf16.mxu1 %vm1034_vm1, %v4786_v36 }
 0xe7b   : > { %7540 = vmatmul.mubr.msk.bf16.vlgmr.msra.gmra.mrb[32].mxu1 %vm1034_vm1, %v4787_v40 }
 0xe7c   : > { %v4663_v54 = vpop.permute.xlu1 %4662 }
 0xe7d   : > { %v4698_v22 = vsel %vm4691_vm5, %v4689_v61, %v4663_v54 }
 0xe7e   : > { %v4724_v60 = vcombine.low %v4698_v22, %v4698_v22  ;;  %v7057_v17 = vcombine.high %v4698_v22, %v4698_v22 }
 0xe80   : > { %v4741_v33 = vsel %vm4736_vm7, %v4694_v58, %v4724_v60  ;;  %v4742_v8 = vsel %vm4736_vm7, %v4706_v21, %v7057_v17 }
 0xe81   : > { %v4759_v16 = vrot.slane %v4741_v33, 6  ;;  %v4760_v13 = vrot.slane %v4742_v8, 6  ;;  %v4782_v3 = vsel %vm9291_vm2, %v4757_v11, %v4741_v33  ;;  %v4783_v37 = vsel %vm9291_vm2, %v4758_v6, %v4742_v8 }
 0xe82   : > { %v4788_v46 = vpack.c.bf16 %v4783_v37, %v4782_v3 }
 0xe83   : > { %v4784_v47 = vsel %vm9291_vm2, %v4759_v16, %v4743_v45  ;;  %v4785_v0 = vsel %vm9291_vm2, %v4760_v13, %v4744_v1  ;;  %v8239_v45 = vld [vmem:[#allocation2 + $0x28] sm:$0xff]  ;;  %vm6425_vm2 = vcmask (!%p7130_p7), 916480  }
 0xe84   : > { %7543 = vmatprep.mubr.msk.bf16.mxu1 %vm1034_vm1, %v4788_v46  ;;  %v4789_v53 = vpack.c.bf16 %v4785_v0, %v4784_v47 }
 0xe86   : > { %7544 = vmatmul.mubr.msk.bf16.gmra.mrb[36].mxu1 %vm1034_vm1, %v4789_v53 }
 0xf4e   : > { %v7541_v9 = vpop.f32.mrb[32].mxu1 }
 0xf4f   : > { %v4844_v14 = vpop.f32.mrb[33].mxu1  ;;  %v4877_v30 = vadd.f32 %v8232_v55, %v7541_v9 }
 0xf50   : > { %v4875_v56 = vadd.f32 %v8233_v35, %v4844_v14  ;;  %v7542_v43 = vpop.f32.mrb[34].mxu1 }
 0xf51   : > { %v4847_v42 = vpop.f32.mrb[35].mxu1  ;;  %v10027_v23 = vadd.f32 %v7064_v51, %v4877_v30  ;;  %v4878_v15 = vadd.f32 %v8235_v31, %v7542_v43 }
 0xf52   : > { %v10025_v29 = vadd.f32 %v7064_v51, %v4875_v56  ;;  %v4876_v5 = vadd.f32 %v8234_v10, %v4847_v42 }
 0xf53   : > { %11311 = vst [vmem:[#allocation28_spill] sm:$0xff] %v10027_v23  ;;  %v10035_v40 = vadd.f32 %v7064_v51, %v4878_v15  ;;  %v4906_v34 = vsel %vm1034_vm1, %v10027_v23, 0.0 }
 0xf54   : > { %11310 = vst [vmem:[#allocation27_spill] sm:$0xff] %v10025_v29  ;;  %v10029_v7 = vadd.f32 %v7064_v51, %v4876_v5  ;;  %v4900_v57 = vsel %vm1034_vm1, %v10025_v29, 0.0 }
 0xf55   : > { %4901 = vadd.xlane.f32.xlu0 %v4900_v57  ;;  %11313 = vst [vmem:[#allocation30_spill] sm:$0xff] %v10035_v40  ;;  %v4909_v24 = vsel %vm1034_vm1, %v10035_v40, 0.0 }
 0xf56   : > { %11312 = vst [vmem:[#allocation29_spill] sm:$0xff] %v10029_v7  ;;  %v4903_v32 = vsel %vm1034_vm1, %v10029_v7, 0.0 }
 0xf57   : > { %4904 = vadd.xlane.f32.xlu1 %v4903_v32 }
 0xf59   : > { %4907 = vadd.xlane.f32.xlu0 %v4906_v34  ;;  %v7545_v12 = vpop.f32.mrb[36].mxu1 }
 0xf5a   : > { %v4860_v50 = vpop.f32.mrb[37].mxu1  ;;  %v4881_v44 = vadd.f32 %v8237_v26, %v7545_v12 }
 0xf5b   : > { %v4879_v25 = vadd.f32 %v8236_v38, %v4860_v50  ;;  %v7546_v39 = vpop.f32.mrb[38].mxu1  ;;  %v8037_v50 = vld [vmem:[%s11318_s9] sm:$0xff]  }
 0xf5c   : > { %v4863_v27 = vpop.f32.mrb[39].mxu1  ;;  %v4882_v62 = vadd.f32 %v8238_v41, %v7546_v39  ;;  %v10047_v18 = vadd.f32 %v7064_v51, %v4881_v44  ;;  %7547 = vmatprep.subr.bf16.mxu0 %v8037_v50 }
 0xf5d   : > { %v10041_v63 = vadd.f32 %v7064_v51, %v4879_v25  ;;  %v4880_v1 = vadd.f32 %v8239_v45, %v4863_v27  ;;  %4910 = vadd.xlane.f32.xlu0 %v4909_v24  ;;  %7548 = vmatpush3.bf16.msra.mxu0 %v8037_v50 }
 0xf5e   : > { %11316 = vst [vmem:[#allocation33_spill] sm:$0xff] %v10047_v18  ;;  %v10049_v2 = vadd.f32 %v7064_v51, %v4882_v62  ;;  %v4918_v4 = vsel %vm1034_vm1, %v10047_v18, 0.0 }
 0xf5f   : > { %11314 = vst [vmem:[#allocation31_spill] sm:$0xff] %v10041_v63  ;;  %v10043_v48 = vadd.f32 %v7064_v51, %v4880_v1  ;;  %v4912_v49 = vsel %vm1034_vm1, %v10041_v63, 0.0 }
 0xf60   : > { %11317 = vst [vmem:[#allocation34_spill] sm:$0xff] %v10049_v2  ;;  %v4921_v20 = vsel %vm1034_vm1, %v10049_v2, 0.0 }
 0xf61   : > { %11315 = vst [vmem:[#allocation32_spill] sm:$0xff] %v10043_v48  ;;  %4913 = vadd.xlane.f32.xlu0 %v4912_v49  ;;  %v4915_v28 = vsel %vm1034_vm1, %v10043_v48, 0.0 }
 0xf62   : > { %4916 = vadd.xlane.f32.xlu1 %v4915_v28 }
 0xf65   : > { %4919 = vadd.xlane.f32.xlu0 %v4918_v4 }
 0xf66   : > { %4922 = vadd.xlane.f32.xlu1 %v4921_v20 }
 0xfe2   : > { %v4902_v36 = vpop.xlane.xlu0 %4901 }
 0xfe3   : > { %v4924_v59 = vmul.f32 0.0625, %v4902_v36 }
 0xfe4   : > { %v4905_v19 = vpop.xlane.xlu1 %4904 }
 0xfe5   : > { %v10058_v58 = vsub.f32 %v10025_v29, %v4924_v59  ;;  %v4925_v52 = vmul.f32 0.0625, %v4905_v19  ;;  %v7065_v19 = vld [vmem:[%s11319_s30] ss:$0 sm:$0xff] }
 0xfe6   : > { %v4908_v61 = vpop.xlane.xlu0 %4907 }
 0xfe7   : > { %v10061_v54 = vsub.f32 %v10029_v7, %v4925_v52  ;;  %v4926_v22 = vmul.f32 0.0625, %v4908_v61  ;;  %v4940_v21 = vmul.f32 %v10058_v58, %v10058_v58 }
 0xfe9   : > { %v10066_v60 = vsub.f32 %v10027_v23, %v4926_v22  ;;  %v4948_v17 = vsel %vm1034_vm1, %v4940_v21, 0.0  ;;  %v4941_v11 = vmul.f32 %v10061_v54, %v10061_v54 }
 0xfea   : > { %v4911_v6 = vpop.xlane.xlu0 %4910  ;;  %4949 = vadd.xlane.f32.xlu0 %v4948_v17 }
 0xfeb   : > { %v4927_v33 = vmul.f32 0.0625, %v4911_v6  ;;  %v4951_v8 = vsel %vm1034_vm1, %v4941_v11, 0.0  ;;  %v4942_v16 = vmul.f32 %v10066_v60, %v10066_v60 }
 0xfec   : > { %4952 = vadd.xlane.f32.xlu1 %v4951_v8 }
 0xfed   : > { %v10075_v13 = vsub.f32 %v10035_v40, %v4927_v33  ;;  %v4954_v3 = vsel %vm1034_vm1, %v4942_v16, 0.0 }
 0xfee   : > { %4955 = vadd.xlane.f32.xlu0 %v4954_v3  ;;  %v4914_v37 = vpop.xlane.xlu0 %4913 }
 0xfef   : > { %v4928_v46 = vmul.f32 0.0625, %v4914_v37  ;;  %v4917_v47 = vpop.xlane.xlu1 %4916  ;;  %v4943_v0 = vmul.f32 %v10075_v13, %v10075_v13 }
 0xff0   : > { %v4929_v53 = vmul.f32 0.0625, %v4917_v47 }
 0xff1   : > { %v10081_v9 = vsub.f32 %v10041_v63, %v4928_v46  ;;  %v4957_v51 = vsel %vm1034_vm1, %v4943_v0, 0.0  ;;  %v7066_v46 = vld [vmem:[%s11320_s23] ss:$0 sm:$0xff] }
 0xff2   : > { %v10085_v14 = vsub.f32 %v10043_v48, %v4929_v53  ;;  %v4920_v55 = vpop.xlane.xlu0 %4919  ;;  %4958 = vadd.xlane.f32.xlu1 %v4957_v51 }
 0xff3   : > { %v4930_v30 = vmul.f32 0.0625, %v4920_v55  ;;  %v4923_v35 = vpop.xlane.xlu1 %4922  ;;  %v4944_v56 = vmul.f32 %v10081_v9, %v10081_v9 }
 0xff4   : > { %v4931_v43 = vmul.f32 0.0625, %v4923_v35  ;;  %v4945_v42 = vmul.f32 %v10085_v14, %v10085_v14 }
 0xff5   : > { %v10092_v10 = vsub.f32 %v10047_v18, %v4930_v30  ;;  %v4960_v5 = vsel %vm1034_vm1, %v4944_v56, 0.0 }
 0xff6   : > { %v10096_v31 = vsub.f32 %v10049_v2, %v4931_v43  ;;  %4961 = vadd.xlane.f32.xlu0 %v4960_v5  ;;  %v4963_v15 = vsel %vm1034_vm1, %v4945_v42, 0.0 }
 0xff7   : > { %4964 = vadd.xlane.f32.xlu1 %v4963_v15  ;;  %v4946_v57 = vmul.f32 %v10092_v10, %v10092_v10 }
 0xff8   : > { %v4947_v32 = vmul.f32 %v10096_v31, %v10096_v31 }
 0xff9   : > { %v4966_v34 = vsel %vm1034_vm1, %v4946_v57, 0.0 }
 0xffa   : > { %4967 = vadd.xlane.f32.xlu0 %v4966_v34  ;;  %v4969_v12 = vsel %vm1034_vm1, %v4947_v32, 0.0 }
 0xffb   : > { %4970 = vadd.xlane.f32.xlu1 %v4969_v12 }
0x1077   : > { %v4950_v38 = vpop.xlane.xlu0 %4949 }
0x1078   : > { %v4972_v25 = vmul.f32 0.0625, %v4950_v38 }
0x1079   : > { %v4953_v39 = vpop.xlane.xlu1 %4952 }
0x107a   : > { %v4980_v26 = vadd.f32 1e-05, %v4972_v25  ;;  %v4973_v44 = vmul.f32 0.0625, %v4953_v39 }
0x107b   : > { %v4956_v27 = vpop.xlane.xlu0 %4955 }
0x107c   : > { %8184 = vrsqrt.f32 %v4980_v26  ;;  %v4981_v24 = vadd.f32 1e-05, %v4973_v44  ;;  %v4974_v41 = vmul.f32 0.0625, %v4956_v27 }
0x107e   : > { %8186 = vrsqrt.f32 %v4981_v24  ;;  %v4982_v62 = vadd.f32 1e-05, %v4974_v41 }
0x107f   : > { %v4959_v45 = vpop.xlane.xlu1 %4958 }
0x1080   : > { %8188 = vrsqrt.f32 %v4982_v62  ;;  %v4975_v1 = vmul.f32 0.0625, %v4959_v45  ;;  %v8702_v62 = vmov 0.0  }
0x1081   : > { %v5207_v45 = vrot.slane %v8702_v62, 6 }
0x1082   : > { %v4983_v49 = vadd.f32 1e-05, %v4975_v1 }
0x1083   : > { %v4962_v28 = vpop.xlane.xlu0 %4961  ;;  %v10124_v1 = vsel %vm4769_vm8, 0.0, %v5207_v45 }
0x1084   : > { %8190 = vrsqrt.f32 %v4983_v49  ;;  %v4976_v4 = vmul.f32 0.0625, %v4962_v28  ;;  %v4965_v20 = vpop.xlane.xlu1 %4964  ;;  %11321 = vst [vmem:[#allocation35_spill] sm:$0xff] %v10124_v1  ;;  %v10127_v49 = vld [vmem:[%s9187_s26] ss:$0 sm:$0xff] }
0x1085   : > { %v4977_v36 = vmul.f32 0.0625, %v4965_v20  ;;  %v5235_v20 = vmul.f32 %v10127_v49, %v10124_v1 }
0x1086   : > { %v8185_v59 = vpop.eup %8184  ;;  %v4984_v52 = vadd.f32 1e-05, %v4976_v4  ;;  %v10133_v4 = vld [vmem:[%s9187_s26 + $0x1] ss:$0 sm:$0xff] }
0x1087   : > { %v4996_v61 = vmul.f32 %v8185_v59, %v10058_v58  ;;  %v4985_v22 = vadd.f32 1e-05, %v4977_v36  ;;  %v4968_v21 = vpop.xlane.xlu0 %4967  ;;  %v10140_v59 = vld [vmem:[%s9187_s26 + $0x2] ss:$0 sm:$0xff] }
0x1088   : > { %v8187_v17 = vpop.eup %8186  ;;  %8192 = vrsqrt.f32 %v4984_v52  ;;  %v4978_v11 = vmul.f32 0.0625, %v4968_v21  ;;  %v4971_v6 = vpop.xlane.xlu1 %4970  ;;  %v10147_v21 = vld [vmem:[%s9187_s26 + $0x3] ss:$0 sm:$0xff] }
0x1089   : > { %v4997_v33 = vmul.f32 %v8187_v17, %v10061_v54  ;;  %8194 = vrsqrt.f32 %v4985_v22  ;;  %v4979_v8 = vmul.f32 0.0625, %v4971_v6  ;;  %v5010_v16 = vmul.f32 %v7065_v19, %v4996_v61 }
0x108a   : > { %v8189_v3 = vpop.eup %8188  ;;  %v4986_v37 = vadd.f32 1e-05, %v4978_v11  ;;  %v5301_v61 = vmul.f32 0.0, %v10140_v59  ;;  %v5359_v17 = vrot.slane %v8702_v62, 2 }
0x108b   : > { %v4998_v47 = vmul.f32 %v8189_v3, %v10066_v60  ;;  %v4987_v0 = vadd.f32 1e-05, %v4979_v8  ;;  %v5011_v53 = vmul.f32 %v7065_v19, %v4997_v33  ;;  %v5024_v58 = vadd.f32 %v7066_v46, %v5010_v16  ;;  %v10155_v8 = vld [vmem:[%s9187_s26 + $0x4] ss:$0 sm:$0xff] }
0x108c   : > { %8196 = vrsqrt.f32 %v4986_v37  ;;  %v10152_v33 = vsel %vm1288_vm11, %v5359_v17, 0.0  ;;  %v8039_v37 = vld [vmem:[%s9192_s1 + $0x8] sm:$0xff]  }
0x108d   : > { %8198 = vrsqrt.f32 %v4987_v0  ;;  %v5025_v51 = vadd.f32 %v7066_v46, %v5011_v53  ;;  %v5012_v30 = vmul.f32 %v7065_v19, %v4998_v47  ;;  %11324 = vst [vmem:[#allocation38_spill] sm:$0xff] %v10152_v33  ;;  %v5388_v3 = vmul.f32 %v10155_v8, %v10152_v33  ;;  %v7067_v47 = vld [vmem:[%s829_s11] ss:$0 sm:$0xff] }
0x108e   : > { %v8191_v55 = vpop.eup %8190 }
0x108f   : > { %v4999_v35 = vmul.f32 %v8191_v55, %v10075_v13  ;;  %v5032_v54 = vpack.c.bf16 %v5025_v51, %v5024_v58  ;;  %v5026_v15 = vadd.f32 %v7066_v46, %v5012_v30  ;;  %v10172_v30 = vld [vmem:[%s9187_s26 + $0x6] ss:$0 sm:$0xff] }
0x1091   : > { %v5013_v56 = vmul.f32 %v7065_v19, %v4999_v35  ;;  %7549 = vmatprep.mubr.msk.bf16.mxu0 %vm1034_vm1, %v5032_v54 }
0x1092   : > { %v8193_v43 = vpop.eup %8192 }
0x1093   : > { %v8195_v42 = vpop.eup %8194  ;;  %v5000_v5 = vmul.f32 %v8193_v43, %v10081_v9  ;;  %v5027_v60 = vadd.f32 %v7066_v46, %v5013_v56 }
0x1094   : > { %v5001_v57 = vmul.f32 %v8195_v42, %v10085_v14 }
0x1095   : > { %v5033_v32 = vpack.c.bf16 %v5027_v60, %v5026_v15  ;;  %v5014_v34 = vmul.f32 %v7065_v19, %v5000_v5 }
0x1096   : > { %v8197_v12 = vpop.eup %8196  ;;  %v5015_v50 = vmul.f32 %v7065_v19, %v5001_v57 }
0x1097   : > { %v8199_v38 = vpop.eup %8198  ;;  %v5002_v13 = vmul.f32 %v8197_v12, %v10092_v10  ;;  %7550 = vmatmul.mubr.msk.bf16.vlgmr.msra.gmra.mrb[44].mxu0 %vm1034_vm1, %v5033_v32  ;;  %v5028_v25 = vadd.f32 %v7066_v46, %v5014_v34  ;;  %v8038_v10 = vld [vmem:[%s9192_s1] sm:$0xff]   ;;  %s11330_s1 = sld [smem:[#allocation55_spill]] }
0x1098   : > { %v5003_v39 = vmul.f32 %v8199_v38, %v10096_v31  ;;  %v5029_v26 = vadd.f32 %v7066_v46, %v5015_v50  ;;  %7557 = vmatprep.subr.bf16.mxu1 %v8038_v10  ;;  %v5249_v31 = vrot.slane %v8702_v62, 7  ;;  %v10187_v34 = vld [vmem:[%s9187_s26 + $0x7] ss:$0 sm:$0xff] }
0x1099   : > { %v5016_v44 = vmul.f32 %v7065_v19, %v5002_v13  ;;  %7558 = vmatpush3.bf16.msra.mxu1 %v8038_v10  ;;  %v10201_v10 = vld [vmem:[%s9187_s26 + $0x8] ss:$0 sm:$0xff] }
0x109a   : > { %v5034_v9 = vpack.c.bf16 %v5029_v26, %v5028_v25  ;;  %v5017_v27 = vmul.f32 %v7065_v19, %v5003_v39  ;;  %v10130_v28 = vsel %vm5263_vm9, 0.0, %v5249_v31  ;;  %v5315_v19 = vrot.slane %v8702_v62, 1  ;;  %7559 = vmatprep.subr.bf16.mxu1 %v8039_v37 }
0x109b   : > { %v5030_v24 = vadd.f32 %v7066_v46, %v5016_v44  ;;  %11322 = vst [vmem:[#allocation36_spill] sm:$0xff] %v10130_v28  ;;  %v5279_v36 = vmul.f32 %v10133_v4, %v10130_v28  ;;  %v5441_v60 = vmul.f32 %v10172_v30, %v10130_v28  ;;  %v5465_v44 = vmul.f32 0.0, %v10187_v34 }
0x109c   : > { %7553 = vmatprep.mubr.msk.bf16.mxu0 %vm1034_vm1, %v5034_v9  ;;  %v5031_v14 = vadd.f32 %v7066_v46, %v5017_v27  ;;  %v10144_v22 = vsel %vm5329_vm10, %v5315_v19, 0.0  ;;  %v10161_v46 = vld [vmem:[%s9187_s26 + $0x5] ss:$0 sm:$0xff] }
0x109d   : > { %v5286_v52 = vadd.f32 %v5279_v36, %v5235_v20  ;;  %11323 = vst [vmem:[#allocation37_spill] sm:$0xff] %v10144_v22  ;;  %v5345_v6 = vmul.f32 %v10147_v21, %v10144_v22  ;;  %7560 = vmatpush3.bf16.msra.mxu1 %v8039_v37  ;;  %v5414_v58 = vmul.f32 %v10161_v46, %v10124_v1  ;;  %s11331_s11 = scalar_lea.vmem %s11330_s1, %s9149_s28  ;;  %s8704_s28 = smov (!%p7130_p7), 16  }
0x109e   : > { %v5035_v41 = vpack.c.bf16 %v5031_v14, %v5030_v24 }
0x109f   : > { %v5308_v11 = vadd.f32 %v5301_v61, %v5286_v52 }
0x10a0   : > { %7554 = vmatmul.mubr.msk.bf16.gmra.mrb[48].mxu0 %vm1034_vm1, %v5035_v41 }
0x10a1   : > { %v5352_v16 = vadd.f32 %v5345_v6, %v5308_v11 }
0x10a3   : > { %v10165_v53 = vadd.f32 %v5388_v3, %v5352_v16  ;;  %v5492_v3 = vmul.f32 %v10201_v10, %v10144_v22 }
0x10a5   : > { %v5422_v15 = vadd.f32 %v5414_v58, %v10165_v53 }
0x10a7   : > { %v5449_v26 = vadd.f32 %v5441_v60, %v5422_v15 }
0x10a9   : > { %v5473_v17 = vadd.f32 %v5465_v44, %v5449_v26 }
0x116a   : > { %v7551_v0 = vpop.f32.mrb[44].mxu0 }
0x116b   : > { %v10169_v51 = vadd.f32 %v7551_v0, %v7067_v47  ;;  %v5097_v55 = vpop.f32.mrb[45].mxu0 }
0x116c   : > { %v10174_v35 = vadd.f32 %v7067_v47, %v5097_v55  ;;  %v7552_v54 = vpop.f32.mrb[46].mxu0 }
0x116d   : > { %v5138_v56 = vmul.f32 0.044715, %v10169_v51  ;;  %v10177_v43 = vadd.f32 %v7552_v54, %v7067_v47  ;;  %v5100_v42 = vpop.f32.mrb[47].mxu0 }
0x116e   : > { %v5136_v5 = vmul.f32 0.044715, %v10174_v35  ;;  %v10183_v57 = vadd.f32 %v7067_v47, %v5100_v42 }
0x116f   : > { %v5146_v32 = vmul.f32 %v5138_v56, %v10169_v51  ;;  %v5139_v12 = vmul.f32 0.044715, %v10177_v43  ;;  %v10209_v56 = vld [vmem:[%s9187_s26 + $0x9] ss:$0 sm:$0xff] }
0x1170   : > { %v5144_v50 = vmul.f32 %v5136_v5, %v10174_v35  ;;  %v5137_v38 = vmul.f32 0.044715, %v10183_v57 }
0x1171   : > { %v5154_v13 = vmul.f32 %v5146_v32, %v10169_v51  ;;  %v5147_v25 = vmul.f32 %v5139_v12, %v10177_v43 }
0x1172   : > { %v5152_v39 = vmul.f32 %v5144_v50, %v10174_v35  ;;  %v5145_v9 = vmul.f32 %v5137_v38, %v10183_v57  ;;  %v5500_v50 = vadd.f32 %v5492_v3, %v5473_v17  ;;  %v5519_v38 = vmul.f32 %v10209_v56, %v10152_v33 }
0x1173   : > { %v5162_v27 = vadd.f32 %v5154_v13, %v10169_v51  ;;  %v5155_v24 = vmul.f32 %v5147_v25, %v10177_v43  ;;  %v7555_v14 = vpop.f32.mrb[48].mxu0  ;;  %v5131_v17 = vmul.f32 0.5, %v10177_v43 }
0x1174   : > { %v5160_v41 = vadd.f32 %v5152_v39, %v10174_v35  ;;  %v5153_v62 = vmul.f32 %v5145_v9, %v10183_v57  ;;  %v5122_v45 = vadd.f32 %v7555_v14, %v7067_v47  ;;  %v5113_v31 = vpop.f32.mrb[49].mxu0  ;;  %v10213_v14 = vadd.f32 %v5519_v38, %v5500_v50 }
0x1175   : > { %v5170_v20 = vmul.f32 0.7978846, %v5162_v27  ;;  %v5163_v36 = vadd.f32 %v5155_v24, %v10177_v43  ;;  %v5114_v19 = vadd.f32 %v7067_v47, %v5113_v31  ;;  %v7556_v52 = vpop.f32.mrb[50].mxu0  ;;  %v5128_v31 = vmul.f32 0.5, %v10174_v35  ;;  %v10233_v43 = vld [vmem:[%s9187_s26 + $0xc] ss:$0 sm:$0xff] }
0x1176   : > { %v5168_v61 = vmul.f32 0.7978846, %v5160_v41  ;;  %v5161_v11 = vadd.f32 %v5153_v62, %v10183_v57  ;;  %v5142_v6 = vmul.f32 0.044715, %v5122_v45  ;;  %v5116_v16 = vpop.f32.mrb[51].mxu0  ;;  %v5125_v54 = vadd.f32 %v7556_v52, %v7067_v47 }
0x1177   : > { %8200 = vtanh.f32 %v5170_v20  ;;  %v5171_v37 = vmul.f32 0.7978846, %v5163_v36  ;;  %v5140_v0 = vmul.f32 0.044715, %v5114_v19  ;;  %v5117_v5 = vadd.f32 %v7067_v47, %v5116_v16  ;;  %v10218_v36 = vld [vmem:[%s9187_s26 + $0xf] ss:$0 sm:$0xff] }
0x1178   : > { %8202 = vtanh.f32 %v5168_v61  ;;  %v5169_v58 = vmul.f32 0.7978846, %v5161_v11  ;;  %v5150_v55 = vmul.f32 %v5142_v6, %v5122_v45  ;;  %v5143_v60 = vmul.f32 0.044715, %v5125_v54 }
0x1179   : > { %8204 = vtanh.f32 %v5171_v37  ;;  %v5148_v42 = vmul.f32 %v5140_v0, %v5114_v19  ;;  %v5141_v12 = vmul.f32 0.044715, %v5117_v5  ;;  %v5130_v62 = vmul.f32 0.5, %v10169_v51 }
0x117a   : > { %8206 = vtanh.f32 %v5169_v58  ;;  %v5158_v15 = vmul.f32 %v5150_v55, %v5122_v45  ;;  %v5151_v25 = vmul.f32 %v5143_v60, %v5125_v54  ;;  %v5129_v11 = vmul.f32 0.5, %v10183_v57 }
0x117b   : > { %v5156_v32 = vmul.f32 %v5148_v42, %v5114_v19  ;;  %v5149_v26 = vmul.f32 %v5141_v12, %v5117_v5  ;;  %v10222_v37 = vmul.f32 0.5, %v5122_v45  ;;  %v10226_v51 = vmul.f32 %v10218_v36, %v10124_v1 }
0x117c   : > { %v5166_v13 = vadd.f32 %v5158_v15, %v5122_v45  ;;  %v5159_v9 = vmul.f32 %v5151_v25, %v5125_v54  ;;  %v5132_v42 = vmul.f32 0.5, %v5114_v19  ;;  %v5135_v60 = vmul.f32 0.5, %v5125_v54 }
0x117d   : > { %v5164_v39 = vadd.f32 %v5156_v32, %v5114_v19  ;;  %v5157_v24 = vmul.f32 %v5149_v26, %v5117_v5  ;;  %11325 = vst [vmem:[#allocation39_spill] sm:$0xff] %v10226_v51  ;;  %v5133_v32 = vmul.f32 0.5, %v5117_v5 }
0x117e   : > { %v5174_v44 = vmul.f32 0.7978846, %v5166_v13  ;;  %v5167_v47 = vadd.f32 %v5159_v9, %v5125_v54 }
0x117f   : > { %v5172_v27 = vmul.f32 0.7978846, %v5164_v39  ;;  %v5165_v20 = vadd.f32 %v5157_v24, %v5117_v5  ;;  %v10257_v24 = vld [vmem:[%s9187_s26 + $0xa] ss:$0 sm:$0xff] }
0x1180   : > { %8208 = vtanh.f32 %v5174_v44  ;;  %v5175_v6 = vmul.f32 0.7978846, %v5167_v47 }
0x1181   : > { %v8201_v41 = vpop.eup %8200  ;;  %8210 = vtanh.f32 %v5172_v27  ;;  %v5173_v0 = vmul.f32 0.7978846, %v5165_v20 }
0x1182   : > { %v8203_v52 = vpop.eup %8202  ;;  %v5186_v61 = vadd.f32 1.0, %v8201_v41  ;;  %8212 = vtanh.f32 %v5175_v6 }
0x1183   : > { %v8205_v16 = vpop.eup %8204  ;;  %v5184_v3 = vadd.f32 1.0, %v8203_v52  ;;  %8214 = vtanh.f32 %v5173_v0  ;;  %v10267_v52 = vld [vmem:[%s9187_s26 + $0xb] ss:$0 sm:$0xff] }
0x1184   : > { %v8207_v35 = vpop.eup %8206  ;;  %v10228_v58 = vmul.f32 %v5186_v61, %v5130_v62  ;;  %v5187_v55 = vadd.f32 1.0, %v8205_v16  ;;  %v10270_v61 = vld [vmem:[%s9187_s26 + $0xd] ss:$0 sm:$0xff] }
0x1185   : > { %v10230_v15 = vmul.f32 %v5184_v3, %v5128_v31  ;;  %v5185_v57 = vadd.f32 1.0, %v8207_v35 }
0x1186   : > { %v10235_v45 = vmul.f32 %v5187_v55, %v5131_v17  ;;  %v5210_v12 = vrot.slane %v10228_v58, 6  ;;  %v10244_v54 = vmul.f32 %v10140_v59, %v10228_v58 }
0x1187   : > { %11326 = vst [vmem:[#allocation40_spill] sm:$0xff] %v10230_v15  ;;  %v5208_v38 = vrot.slane %v10230_v15, 6  ;;  %v5250_v19 = vrot.slane %v10230_v15, 7  ;;  %v5316_v13 = vrot.slane %v10230_v15, 1  ;;  %v5302_v25 = vmul.f32 %v10140_v59, %v10230_v15 }
0x1188   : > { %11327 = vst [vmem:[#allocation41_spill] sm:$0xff] %v10235_v45  ;;  %v5360_v5 = vrot.slane %v10230_v15, 2  ;;  %v5466_v39 = vmul.f32 %v10187_v34, %v10230_v15  ;;  %v5598_v26 = vmul.f32 %v10233_v43, %v10230_v15  ;;  %v10259_v47 = vmul.f32 %v5185_v57, %v5129_v11 }
0x1189   : > { %v5222_v44 = vsel %vm4769_vm8, 0.0, %v5208_v38  ;;  %v5265_v9 = vsel %vm5263_vm9, 0.0, %v5250_v19  ;;  %v5331_v27 = vsel %vm5329_vm10, %v5316_v13, 0.0  ;;  %v5211_v17 = vrot.slane %v10235_v45, 6 }
0x118a   : > { %v8209_v41 = vpop.eup %8208  ;;  %v5236_v62 = vmul.f32 %v10127_v49, %v5222_v44  ;;  %v5280_v31 = vmul.f32 %v10133_v4, %v5265_v9  ;;  %v10264_v20 = vsel %vm1288_vm11, %v5360_v5, 0.0  ;;  %v5346_v16 = vmul.f32 %v10147_v21, %v5331_v27 }
0x118b   : > { %v8211_v6 = vpop.eup %8210  ;;  %v5389_v11 = vmul.f32 %v10155_v8, %v10264_v20  ;;  %v5415_v3 = vmul.f32 %v10161_v46, %v5222_v44  ;;  %v5442_v0 = vmul.f32 %v10172_v30, %v5265_v9  ;;  %v5493_v55 = vmul.f32 %v10201_v10, %v5331_v27 }
0x118c   : > { %v5287_v35 = vadd.f32 %v5280_v31, %v5236_v62  ;;  %v5520_v57 = vmul.f32 %v10209_v56, %v10264_v20  ;;  %v5547_v38 = vmul.f32 %v10257_v24, %v5222_v44  ;;  %v5574_v13 = vmul.f32 %v10267_v52, %v5265_v9  ;;  %v8213_v48 = vpop.eup %8212 }
0x118d   : > { %v5423_v19 = vadd.f32 %v5415_v3, %v10165_v53  ;;  %v10285_v5 = vmul.f32 %v10270_v61, %v5331_v27  ;;  %v5303_v50 = vmul.f32 %v10140_v59, %v10259_v47  ;;  %v5190_v31 = vadd.f32 1.0, %v8209_v41  ;;  %v8215_v18 = vpop.eup %8214 }
0x118e   : > { %v5309_v2 = vadd.f32 %v5302_v25, %v5287_v35  ;;  %v5555_v62 = vadd.f32 %v5547_v38, %v10213_v14  ;;  %v5188_v63 = vadd.f32 1.0, %v8211_v6  ;;  %v10292_v44 = vmul.f32 %v10187_v34, %v10259_v47 }
0x118f   : > { %v5450_v7 = vadd.f32 %v5442_v0, %v5423_v19  ;;  %v5191_v53 = vadd.f32 1.0, %v8213_v48  ;;  %v5209_v9 = vrot.slane %v10259_v47, 6  ;;  %v10298_v29 = vsel %vm4769_vm8, 0.0, %v5210_v12 }
0x1190   : > { %v5353_v27 = vadd.f32 %v5346_v16, %v5309_v2  ;;  %v5582_v3 = vadd.f32 %v5574_v13, %v5555_v62  ;;  %v10295_v40 = vmul.f32 %v5188_v63, %v5132_v42  ;;  %v10301_v14 = vmul.f32 %v5190_v31, %v10222_v37 }
0x1191   : > { %v5474_v25 = vadd.f32 %v5466_v39, %v5450_v7  ;;  %v5189_v41 = vadd.f32 1.0, %v8215_v18  ;;  %v10304_v6 = vsel %vm4769_vm8, 0.0, %v5209_v9  ;;  %v10306_v35 = vmul.f32 %v5191_v53, %v5135_v60 }
0x1192   : > { %11328 = vst [vmem:[#allocation42_spill] sm:$0xff] %v10295_v40  ;;  %v5396_v0 = vadd.f32 %v5389_v11, %v5353_v27  ;;  %v5212_v48 = vrot.slane %v10295_v40, 6  ;;  %v10310_v2 = vsel %vm4769_vm8, 0.0, %v5211_v17  ;;  %v10312_v42 = vadd.f32 %v5598_v26, %v5582_v3 }
0x1193   : > { %v5501_v63 = vadd.f32 %v5493_v55, %v5474_v25  ;;  %v10314_v12 = vmul.f32 %v5189_v41, %v5133_v32  ;;  %v5237_v7 = vmul.f32 %v10127_v49, %v10304_v6  ;;  %v5238_v37 = vmul.f32 %v10127_v49, %v10298_v29 }
0x1194   : > { %v10319_v18 = vsel %vm4769_vm8, 0.0, %v5212_v48  ;;  %v5251_v60 = vrot.slane %v10259_v47, 7  ;;  %v5253_v39 = vrot.slane %v10235_v45, 7  ;;  %v5239_v26 = vmul.f32 %v10127_v49, %v10310_v2 }
0x1195   : > { %v10325_v17 = vadd.f32 %v5520_v57, %v5501_v63  ;;  %v10331_v32 = vmul.f32 %v10127_v49, %v10319_v18  ;;  %v11329_v16 = vrot.slane %v10228_v58, 7  ;;  %v5254_v55 = vrot.slane %v10295_v40, 7 }
0x1196   : > { %v10340_v38 = vsel %vm5263_vm9, 0.0, %v5251_v60  ;;  %v10343_v57 = vsel %vm5263_vm9, 0.0, %v5253_v39  ;;  %v5305_v31 = vmul.f32 %v10140_v59, %v10235_v45  ;;  %v5317_v53 = vrot.slane %v10259_v47, 1 }
0x1197   : > { %v10336_v11 = vsel %vm5263_vm9, 0.0, %v11329_v16  ;;  %v5281_v13 = vmul.f32 %v10133_v4, %v10340_v38  ;;  %v5283_v62 = vmul.f32 %v10133_v4, %v10343_v57  ;;  %v5318_v27 = vrot.slane %v10228_v58, 1 }
0x1198   : > { %v5282_v19 = vmul.f32 %v10133_v4, %v10336_v11  ;;  %v5319_v3 = vrot.slane %v10235_v45, 1  ;;  %v5361_v25 = vrot.slane %v10259_v47, 2  ;;  %v10358_v63 = vsel %vm5329_vm10, %v5317_v53, 0.0 }
0x1199   : > { %v5288_v41 = vadd.f32 %v5281_v13, %v5237_v7  ;;  %v5290_v48 = vadd.f32 %v5283_v62, %v5239_v26  ;;  %v5362_v60 = vrot.slane %v10228_v58, 2  ;;  %v10363_v16 = vsel %vm5329_vm10, %v5318_v27, 0.0 }
0x119a   : > { %v5289_v9 = vadd.f32 %v5282_v19, %v5238_v37  ;;  %v10366_v37 = vsel %vm5329_vm10, %v5319_v3, 0.0  ;;  %v5347_v19 = vmul.f32 %v10147_v21, %v10358_v63  ;;  %v5348_v7 = vmul.f32 %v10147_v21, %v10363_v16 }
0x119b   : > { %v5310_v23 = vadd.f32 %v5303_v50, %v5288_v41  ;;  %v5312_v33 = vadd.f32 %v5305_v31, %v5290_v48  ;;  %v5349_v26 = vmul.f32 %v10147_v21, %v10366_v37  ;;  %v5363_v13 = vrot.slane %v10235_v45, 2 }
0x119c   : > { %v5311_v39 = vadd.f32 %v10244_v54, %v5289_v9  ;;  %v10376_v54 = vsel %vm1288_vm11, %v5361_v25, 0.0  ;;  %v10379_v62 = vsel %vm1288_vm11, %v5362_v60, 0.0  ;;  %v5416_v53 = vmul.f32 %v10161_v46, %v10304_v6 }
0x119d   : > { %v5354_v9 = vadd.f32 %v5347_v19, %v5310_v23  ;;  %v5356_v31 = vadd.f32 %v5349_v26, %v5312_v33  ;;  %v5390_v27 = vmul.f32 %v10155_v8, %v10376_v54  ;;  %v10386_v3 = vsel %vm5263_vm9, 0.0, %v5254_v55 }
0x119e   : > { %v5355_v50 = vadd.f32 %v5348_v7, %v5311_v39  ;;  %v10389_v41 = vsel %vm1288_vm11, %v5363_v13, 0.0  ;;  %v5391_v25 = vmul.f32 %v10155_v8, %v10379_v62  ;;  %v5417_v48 = vmul.f32 %v10161_v46, %v10298_v29 }
0x119f   : > { %v5392_v23 = vmul.f32 %v10155_v8, %v10389_v41  ;;  %v5397_v60 = vadd.f32 %v5390_v27, %v5354_v9  ;;  %v5419_v33 = vmul.f32 %v10161_v46, %v10319_v18  ;;  %v5424_v39 = vadd.f32 %v5416_v53, %v5396_v0 }
0x11a0   : > { %v5398_v19 = vadd.f32 %v5391_v25, %v5355_v50  ;;  %v5418_v55 = vmul.f32 %v10161_v46, %v10310_v2  ;;  %v5443_v7 = vmul.f32 %v10172_v30, %v10340_v38  ;;  %v5444_v26 = vmul.f32 %v10172_v30, %v10336_v11 }
0x11a1   : > { %v5399_v13 = vadd.f32 %v5392_v23, %v5356_v31  ;;  %v5425_v1 = vadd.f32 %v5417_v48, %v5397_v60  ;;  %v5445_v22 = vmul.f32 %v10172_v30, %v10343_v57  ;;  %v5446_v9 = vmul.f32 %v10172_v30, %v10386_v3 }
0x11a2   : > { %v5426_v27 = vadd.f32 %v5418_v55, %v5398_v19  ;;  %v5451_v0 = vadd.f32 %v5443_v7, %v5424_v39  ;;  %v5468_v53 = vmul.f32 %v10187_v34, %v10228_v58  ;;  %v5469_v50 = vmul.f32 %v10187_v34, %v10235_v45 }
0x11a3   : > { %v5427_v25 = vadd.f32 %v5419_v33, %v5399_v13  ;;  %v5452_v51 = vadd.f32 %v5444_v26, %v5425_v1  ;;  %v5470_v31 = vmul.f32 %v10187_v34, %v10295_v40  ;;  %v5494_v48 = vmul.f32 %v10201_v10, %v10358_v63 }
0x11a4   : > { %v5453_v23 = vadd.f32 %v5445_v22, %v5426_v27  ;;  %v5475_v60 = vadd.f32 %v10292_v44, %v5451_v0  ;;  %v5495_v39 = vmul.f32 %v10201_v10, %v10363_v16  ;;  %v5496_v19 = vmul.f32 %v10201_v10, %v10366_v37 }
0x11a5   : > { %v5454_v55 = vadd.f32 %v5446_v9, %v5427_v25  ;;  %v5476_v7 = vadd.f32 %v5468_v53, %v5452_v51  ;;  %v5521_v1 = vmul.f32 %v10209_v56, %v10376_v54  ;;  %v5522_v33 = vmul.f32 %v10209_v56, %v10379_v62 }
0x11a6   : > { %v5477_v26 = vadd.f32 %v5469_v50, %v5453_v23  ;;  %v5502_v13 = vadd.f32 %v5494_v48, %v5475_v60  ;;  %v5523_v22 = vmul.f32 %v10209_v56, %v10389_v41  ;;  %v5548_v44 = vmul.f32 %v10257_v24, %v10304_v6 }
0x11a7   : > { %v10430_v27 = vadd.f32 %v5470_v31, %v5454_v55  ;;  %v5503_v0 = vadd.f32 %v5495_v39, %v5476_v7  ;;  %v5549_v51 = vmul.f32 %v10257_v24, %v10298_v29  ;;  %v5550_v9 = vmul.f32 %v10257_v24, %v10310_v2 }
0x11a8   : > { %v5504_v53 = vadd.f32 %v5496_v19, %v5477_v26  ;;  %v5529_v25 = vadd.f32 %v5521_v1, %v5502_v13  ;;  %v5556_v50 = vadd.f32 %v5548_v44, %v10325_v17  ;;  %v5575_v48 = vmul.f32 %v10267_v52, %v10340_v38  ;;  %v10454_v44 = vld [vmem:[%s9187_s26 + $0xe] ss:$0 sm:$0xff] }
0x11a9   : > { %v5530_v23 = vadd.f32 %v5522_v33, %v5503_v0  ;;  %v5551_v31 = vmul.f32 %v10257_v24, %v10319_v18  ;;  %v5576_v60 = vmul.f32 %v10267_v52, %v10336_v11  ;;  %v5577_v39 = vmul.f32 %v10267_v52, %v10343_v57 }
0x11aa   : > { %v5531_v55 = vadd.f32 %v5523_v22, %v5504_v53  ;;  %v5557_v7 = vadd.f32 %v5549_v51, %v5529_v25  ;;  %v5583_v19 = vadd.f32 %v5575_v48, %v5556_v50  ;;  %v5599_v1 = vmul.f32 %v10233_v43, %v10259_v47 }
0x11ab   : > { %v5558_v17 = vadd.f32 %v5550_v9, %v5530_v23  ;;  %v5578_v26 = vmul.f32 %v10267_v52, %v10386_v3  ;;  %v5600_v33 = vmul.f32 %v10233_v43, %v10228_v58  ;;  %v5601_v13 = vmul.f32 %v10233_v43, %v10235_v45 }
0x11ac   : > { %v5559_v0 = vadd.f32 %v5551_v31, %v5531_v55  ;;  %v5584_v28 = vadd.f32 %v5576_v60, %v5557_v7  ;;  %v5607_v22 = vadd.f32 %v5599_v1, %v5583_v19  ;;  %v5626_v51 = vmul.f32 %v10270_v61, %v10358_v63 }
0x11ad   : > { %v5585_v53 = vadd.f32 %v5577_v39, %v5558_v17  ;;  %v5602_v9 = vmul.f32 %v10233_v43, %v10295_v40  ;;  %v5627_v25 = vmul.f32 %v10270_v61, %v10363_v16  ;;  %v5633_v50 = vadd.f32 %v10285_v5, %v10312_v42 }
0x11ae   : > { %v5586_v48 = vadd.f32 %v5578_v26, %v5559_v0  ;;  %v5608_v23 = vadd.f32 %v5600_v33, %v5584_v28  ;;  %v5634_v15 = vadd.f32 %v5626_v51, %v5607_v22  ;;  %v5652_v31 = vmul.f32 %v10454_v44, %v10264_v20  ;;  %v10477_v20 = vld [vmem:[%s9187_s26 + $0x10] ss:$0 sm:$0xff] }
0x11af   : > { %v5609_v60 = vadd.f32 %v5601_v13, %v5585_v53  ;;  %v5628_v39 = vmul.f32 %v10270_v61, %v10366_v37  ;;  %v5653_v55 = vmul.f32 %v10454_v44, %v10376_v54  ;;  %v5654_v7 = vmul.f32 %v10454_v44, %v10379_v62  ;;  %v10488_v53 = vld [vmem:[%s9187_s26 + $0x11] ss:$0 sm:$0xff] }
0x11b0   : > { %v5635_v19 = vadd.f32 %v5627_v25, %v5608_v23  ;;  %v5655_v5 = vmul.f32 %v10454_v44, %v10389_v41  ;;  %v5660_v28 = vadd.f32 %v5652_v31, %v5633_v50  ;;  %v5676_v42 = vmul.f32 %v10218_v36, %v10304_v6  ;;  %v10499_v31 = vld [vmem:[%s9187_s26 + $0x12] ss:$0 sm:$0xff] }
0x11b1   : > { %v10479_v1 = vadd.f32 %v5602_v9, %v5586_v48  ;;  %v5636_v17 = vadd.f32 %v5628_v39, %v5609_v60  ;;  %v5661_v26 = vadd.f32 %v5653_v55, %v5634_v15  ;;  %v5677_v33 = vmul.f32 %v10218_v36, %v10298_v29 }
0x11b2   : > { %v5662_v13 = vadd.f32 %v5654_v7, %v5635_v19  ;;  %v5678_v0 = vmul.f32 %v10218_v36, %v10310_v2  ;;  %v5684_v22 = vadd.f32 %v5676_v42, %v5660_v28  ;;  %v5700_v51 = vmul.f32 %v10477_v20, %v10340_v38 }
0x11b3   : > { %v5663_v6 = vadd.f32 %v5655_v5, %v5636_v17  ;;  %v5679_v9 = vmul.f32 %v10218_v36, %v10319_v18  ;;  %v5685_v25 = vadd.f32 %v5677_v33, %v5661_v26  ;;  %v5701_v15 = vmul.f32 %v10477_v20, %v10336_v11  ;;  %v10510_v17 = vld [vmem:[%s9187_s26 + $0x13] ss:$0 sm:$0xff] }
0x11b4   : > { %v5686_v50 = vadd.f32 %v5678_v0, %v5662_v13  ;;  %v5702_v48 = vmul.f32 %v10477_v20, %v10343_v57  ;;  %v5708_v23 = vadd.f32 %v5700_v51, %v5684_v22  ;;  %v5724_v38 = vmul.f32 %v10488_v53, %v10259_v47  ;;  %v10517_v22 = vld [vmem:[%s9187_s26 + $0x14] ss:$0 sm:$0xff] }
0x11b5   : > { %v5687_v60 = vadd.f32 %v5679_v9, %v5663_v6  ;;  %v5703_v39 = vmul.f32 %v10477_v20, %v10386_v3  ;;  %v5709_v55 = vadd.f32 %v5701_v15, %v5685_v25  ;;  %v5725_v7 = vmul.f32 %v10488_v53, %v10228_v58  ;;  %v10524_v25 = vld [vmem:[%s9187_s26 + $0x15] ss:$0 sm:$0xff]  ;;  %v10527_v15 = vld [vmem:[%s9187_s26 + $0x16] ss:$0 sm:$0xff] }
0x11b6   : > { %v5710_v19 = vadd.f32 %v5702_v48, %v5686_v50  ;;  %v5726_v5 = vmul.f32 %v10488_v53, %v10235_v45  ;;  %v5732_v28 = vadd.f32 %v5724_v38, %v5708_v23  ;;  %v5748_v42 = vmul.f32 %v10499_v31, %v10358_v63 }
0x11b7   : > { %v5711_v26 = vadd.f32 %v5703_v39, %v5687_v60  ;;  %v5727_v33 = vmul.f32 %v10488_v53, %v10295_v40  ;;  %v5733_v13 = vadd.f32 %v5725_v7, %v5709_v55  ;;  %v5749_v0 = vmul.f32 %v10499_v31, %v10363_v16  ;;  %v10534_v60 = vld [vmem:[%s9187_s26 + $0x17] ss:$0 sm:$0xff] }
0x11b8   : > { %v5734_v51 = vadd.f32 %v5726_v5, %v5710_v19  ;;  %v5750_v6 = vmul.f32 %v10499_v31, %v10366_v37  ;;  %v5756_v9 = vadd.f32 %v5748_v42, %v5732_v28  ;;  %v5772_v63 = vmul.f32 %v10510_v17, %v10376_v54  ;;  %v10541_v19 = vld [vmem:[%s9187_s26 + $0x18] ss:$0 sm:$0xff] }
0x11b9   : > { %v5735_v50 = vadd.f32 %v5727_v33, %v5711_v26  ;;  %v5757_v48 = vadd.f32 %v5749_v0, %v5733_v13  ;;  %v5773_v23 = vmul.f32 %v10510_v17, %v10379_v62  ;;  %v5774_v38 = vmul.f32 %v10510_v17, %v10389_v41 }
0x11ba   : > { %v5758_v39 = vadd.f32 %v5750_v6, %v5734_v51  ;;  %v5780_v55 = vadd.f32 %v5772_v63, %v5756_v9  ;;  %v5796_v7 = vmul.f32 %v10517_v22, %v10298_v29  ;;  %v5797_v54 = vmul.f32 %v10517_v22, %v10310_v2 }
0x11bb   : > { %v5781_v5 = vadd.f32 %v5773_v23, %v5757_v48  ;;  %v5819_v28 = vmul.f32 %v10524_v25, %v10336_v11  ;;  %v5820_v42 = vmul.f32 %v10524_v25, %v10343_v57  ;;  %v5842_v26 = vmul.f32 %v10527_v15, %v10228_v58 }
0x11bc   : > { %v5782_v33 = vadd.f32 %v5774_v38, %v5758_v39  ;;  %v5803_v13 = vadd.f32 %v5796_v7, %v5780_v55  ;;  %v5843_v29 = vmul.f32 %v10527_v15, %v10235_v45  ;;  %v5865_v2 = vmul.f32 %v10534_v60, %v10363_v16 }
0x11bd   : > { %v5804_v0 = vadd.f32 %v5797_v54, %v5781_v5  ;;  %v5866_v51 = vmul.f32 %v10534_v60, %v10366_v37  ;;  %v5888_v11 = vmul.f32 %v10541_v19, %v10379_v62  ;;  %v5213_v57 = vrot.slane %v10314_v12, 6 }
0x11be   : > { %v5826_v6 = vadd.f32 %v5819_v28, %v5803_v13  ;;  %v5889_v9 = vmul.f32 %v10541_v19, %v10389_v41  ;;  %v5255_v63 = vrot.slane %v10314_v12, 7  ;;  %v5284_v48 = vmul.f32 %v10133_v4, %v10386_v3 }
0x11bf   : > { %v5827_v23 = vadd.f32 %v5820_v42, %v5804_v0  ;;  %v5306_v16 = vmul.f32 %v10140_v59, %v10295_v40  ;;  %v5320_v37 = vrot.slane %v10295_v40, 1  ;;  %v5321_v62 = vrot.slane %v10314_v12, 1 }
0x11c0   : > { %v5849_v38 = vadd.f32 %v5842_v26, %v5826_v6  ;;  %v10568_v39 = vsel %vm4769_vm8, 0.0, %v5213_v57  ;;  %v5291_v41 = vadd.f32 %v5284_v48, %v10331_v32  ;;  %v5364_v55 = vrot.slane %v10295_v40, 2 }
0x11c1   : > { %v5850_v7 = vadd.f32 %v5843_v29, %v5827_v23  ;;  %v10573_v54 = vsel %vm5263_vm9, 0.0, %v5255_v63  ;;  %v10576_v5 = vsel %vm5329_vm10, %v5320_v37, 0.0  ;;  %v5365_v28 = vrot.slane %v10314_v12, 2  ;;  %v10589_v29 = vld [vmem:[%s11331_s11] ss:$0 sm:$0xff] }
0x11c2   : > { %v5872_v42 = vadd.f32 %v5865_v2, %v5849_v38  ;;  %v5313_v13 = vadd.f32 %v5306_v16, %v5291_v41  ;;  %v5350_v26 = vmul.f32 %v10147_v21, %v10576_v5  ;;  %v10582_v0 = vsel %vm1288_vm11, %v5364_v55, 0.0 }
0x11c3   : > { %v5873_v32 = vadd.f32 %v5866_v51, %v5850_v7  ;;  %v10592_v57 = vsel %vm5329_vm10, %v5321_v62, 0.0  ;;  %v10595_v6 = vsel %vm1288_vm11, %v5365_v28, 0.0  ;;  %v5393_v2 = vmul.f32 %v10155_v8, %v10582_v0 }
0x11c4   : > { %v5895_v63 = vadd.f32 %v5888_v11, %v5872_v42  ;;  %v5357_v48 = vadd.f32 %v5350_v26, %v5313_v13  ;;  %v5420_v51 = vmul.f32 %v10161_v46, %v10568_v39  ;;  %v5497_v23 = vmul.f32 %v10201_v10, %v10576_v5 }
0x11c5   : > { %v5896_v16 = vadd.f32 %v5889_v9, %v5873_v32  ;;  %v5524_v37 = vmul.f32 %v10209_v56, %v10582_v0  ;;  %v5751_v62 = vmul.f32 %v10499_v31, %v10576_v5  ;;  %v5798_v38 = vmul.f32 %v10517_v22, %v10319_v18 }
0x11c6   : > { %v5910_v41 = vadd.f32 %v10589_v29, %v5895_v63  ;;  %v5400_v11 = vadd.f32 %v5393_v2, %v5357_v48  ;;  %v5505_v55 = vadd.f32 %v5497_v23, %v10430_v27  ;;  %v5775_v7 = vmul.f32 %v10510_v17, %v10582_v0 }
0x11c7   : > { %v5911_v28 = vadd.f32 %v10589_v29, %v5896_v16  ;;  %v5759_v9 = vadd.f32 %v5751_v62, %v5735_v50  ;;  %v5799_v42 = vmul.f32 %v10517_v22, %v10568_v39  ;;  %v5805_v13 = vadd.f32 %v5798_v38, %v5782_v33 }
0x11c8   : > { %v10616_v26 = vmul.f32 0.5, %v5910_v41  ;;  %v5926_v32 = vmul.f32 0.044715, %v5910_v41  ;;  %v5428_v45 = vadd.f32 %v5420_v51, %v5400_v11  ;;  %v5821_v18 = vmul.f32 %v10524_v25, %v10386_v3 }
0x11c9   : > { %v10620_v2 = vmul.f32 0.5, %v5911_v28  ;;  %v5927_v27 = vmul.f32 0.044715, %v5911_v28  ;;  %v10622_v63 = vadd.f32 %v5524_v37, %v5505_v55  ;;  %v5783_v48 = vadd.f32 %v5775_v7, %v5759_v9 }
0x11ca   : > { %v5934_v23 = vmul.f32 %v5926_v32, %v5910_v41  ;;  %v5822_v50 = vmul.f32 %v10524_v25, %v10573_v54  ;;  %v5828_v16 = vadd.f32 %v5821_v18, %v5805_v13  ;;  %v5844_v33 = vmul.f32 %v10527_v15, %v10295_v40 }
0x11cb   : > { %v5935_v62 = vmul.f32 %v5927_v27, %v5911_v28  ;;  %v5806_v38 = vadd.f32 %v5799_v42, %v5783_v48  ;;  %v5845_v51 = vmul.f32 %v10527_v15, %v10314_v12  ;;  %v5867_v3 = vmul.f32 %v10534_v60, %v10576_v5 }
0x11cc   : > { %v5942_v11 = vmul.f32 %v5934_v23, %v5910_v41  ;;  %v5851_v37 = vadd.f32 %v5844_v33, %v5828_v16  ;;  %v5868_v55 = vmul.f32 %v10534_v60, %v10592_v57  ;;  %v5890_v7 = vmul.f32 %v10541_v19, %v10582_v0 }
0x11cd   : > { %v5943_v9 = vmul.f32 %v5935_v62, %v5911_v28  ;;  %v5829_v13 = vadd.f32 %v5822_v50, %v5806_v38  ;;  %v5241_v32 = vmul.f32 %v10127_v49, %v10568_v39  ;;  %v5285_v42 = vmul.f32 %v10133_v4, %v10573_v54 }
0x11ce   : > { %v5950_v18 = vadd.f32 %v5942_v11, %v5910_v41  ;;  %v5874_v27 = vadd.f32 %v5867_v3, %v5851_v37  ;;  %v5891_v48 = vmul.f32 %v10541_v19, %v10595_v6  ;;  %v5307_v23 = vmul.f32 %v10140_v59, %v10314_v12 }
0x11cf   : > { %v5951_v16 = vadd.f32 %v5943_v9, %v5911_v28  ;;  %v5852_v33 = vadd.f32 %v5845_v51, %v5829_v13  ;;  %v5292_v40 = vadd.f32 %v5285_v42, %v5241_v32  ;;  %v5351_v50 = vmul.f32 %v10147_v21, %v10592_v57 }
0x11d0   : > { %v5958_v62 = vmul.f32 0.7978846, %v5950_v18  ;;  %v5897_v38 = vadd.f32 %v5890_v7, %v5874_v27  ;;  %v5403_v49 = vrot.slane %v10301_v14, 6  ;;  %v5430_v4 = vrot.slane %v10301_v14, 7 }
0x11d1   : > { %v5959_v41 = vmul.f32 0.7978846, %v5951_v16  ;;  %v5875_v3 = vadd.f32 %v5868_v55, %v5852_v33  ;;  %v5314_v11 = vadd.f32 %v5307_v23, %v5292_v40  ;;  %v5447_v37 = vmul.f32 %v10172_v30, %v10573_v54 }
0x11d2   : > { %8216 = vtanh.f32 %v5958_v62  ;;  %v5912_v59 = vadd.f32 %v10589_v29, %v5897_v38  ;;  %v10652_v28 = vsel %vm4769_vm8, 0.0, %v5403_v49  ;;  %v10655_v21 = vsel %vm5263_vm9, 0.0, %v5430_v4 }
0x11d3   : > { %8218 = vtanh.f32 %v5959_v41  ;;  %v5898_v51 = vadd.f32 %v5891_v48, %v5875_v3  ;;  %v5358_v7 = vadd.f32 %v5351_v50, %v5314_v11  ;;  %v5394_v9 = vmul.f32 %v10155_v8, %v10595_v6 }
0x11d4   : > { %v10659_v55 = vmul.f32 0.5, %v5912_v59  ;;  %v5928_v40 = vmul.f32 0.044715, %v5912_v59  ;;  %v5421_v13 = vmul.f32 %v10161_v46, %v10652_v28  ;;  %v5455_v32 = vadd.f32 %v5447_v37, %v5428_v45 }
0x11d5   : > { %v10664_v42 = vadd.f32 %v10589_v29, %v5898_v51  ;;  %v5401_v18 = vadd.f32 %v5394_v9, %v5358_v7  ;;  %v5448_v27 = vmul.f32 %v10172_v30, %v10655_v21  ;;  %v5471_v48 = vmul.f32 %v10187_v34, %v10314_v12 }
0x11d6   : > { %v5936_v23 = vmul.f32 %v5928_v40, %v5912_v59  ;;  %v5472_v8 = vmul.f32 %v10187_v34, %v10301_v14  ;;  %v5481_v16 = vrot.slane %v10301_v14, 1  ;;  %v5508_v33 = vrot.slane %v10301_v14, 2 }
0x11d7   : > { %v5929_v46 = vmul.f32 0.044715, %v10664_v42  ;;  %v5429_v45 = vadd.f32 %v5421_v13, %v5401_v18  ;;  %v5479_v50 = vadd.f32 %v5471_v48, %v5455_v32  ;;  %v5498_v62 = vmul.f32 %v10201_v10, %v10592_v57 }
0x11d8   : > { %v5944_v38 = vmul.f32 %v5936_v23, %v5912_v59  ;;  %v10678_v30 = vsel %vm5329_vm10, %v5481_v16, 0.0  ;;  %v10681_v49 = vsel %vm1288_vm11, %v5508_v33, 0.0  ;;  %v5525_v34 = vmul.f32 %v10209_v56, %v10595_v6 }
0x11d9   : > { %v5937_v4 = vmul.f32 %v5929_v46, %v10664_v42  ;;  %v5456_v41 = vadd.f32 %v5448_v27, %v5429_v45  ;;  %v5499_v3 = vmul.f32 %v10201_v10, %v10678_v30  ;;  %v5506_v11 = vadd.f32 %v5498_v62, %v5479_v50 }
0x11da   : > { %v5952_v37 = vadd.f32 %v5944_v38, %v5912_v59  ;;  %v5526_v51 = vmul.f32 %v10209_v56, %v10681_v49  ;;  %v5536_v7 = vrot.slane %v10306_v35, 6  ;;  %v5552_v9 = vmul.f32 %v10257_v24, %v10568_v39 }
0x11db   : > { %v5945_v40 = vmul.f32 %v5937_v4, %v10664_v42  ;;  %v5480_v13 = vadd.f32 %v5472_v8, %v5456_v41  ;;  %v5533_v32 = vadd.f32 %v5525_v34, %v5506_v11  ;;  %v5553_v18 = vmul.f32 %v10257_v24, %v10652_v28 }
0x11dc   : > { %v8217_v27 = vpop.eup %8216  ;;  %v5960_v10 = vmul.f32 0.7978846, %v5952_v37  ;;  %v10697_v59 = vsel %vm4769_vm8, 0.0, %v5536_v7  ;;  %v5560_v56 = vadd.f32 %v5552_v9, %v10622_v63  ;;  %v5563_v48 = vrot.slane %v10306_v35, 7  ;;  %v11332_v37 = vld [vmem:[#allocation40_spill] sm:$0xff] }
0x11dd   : > { %v8219_v23 = vpop.eup %8218  ;;  %v5974_v16 = vadd.f32 1.0, %v8217_v27  ;;  %v5953_v33 = vadd.f32 %v5945_v40, %v10664_v42  ;;  %v5507_v46 = vadd.f32 %v5499_v3, %v5480_v13  ;;  %v5554_v8 = vmul.f32 %v10257_v24, %v10697_v59 }
0x11de   : > { %v5975_v45 = vadd.f32 1.0, %v8219_v23  ;;  %8220 = vtanh.f32 %v5960_v10  ;;  %v5561_v50 = vadd.f32 %v5553_v18, %v5533_v32  ;;  %v10705_v62 = vsel %vm5263_vm9, 0.0, %v5563_v48 }
0x11df   : > { %v5982_v38 = vmul.f32 %v5974_v16, %v10616_v26  ;;  %v5961_v34 = vmul.f32 0.7978846, %v5953_v33  ;;  %v5534_v63 = vadd.f32 %v5526_v51, %v5507_v46  ;;  %v5579_v4 = vmul.f32 %v10267_v52, %v10573_v54 }
0x11e0   : > { %v5983_v41 = vmul.f32 %v5975_v45, %v10620_v2  ;;  %v5580_v3 = vmul.f32 %v10267_v52, %v10655_v21  ;;  %v5581_v24 = vmul.f32 %v10267_v52, %v10705_v62  ;;  %v5603_v11 = vmul.f32 %v10233_v43, %v10314_v12 }
0x11e1   : > { %v5990_v7 = vadd.f32 %v5982_v38, %v11332_v37  ;;  %8222 = vtanh.f32 %v5961_v34  ;;  %v5562_v26 = vadd.f32 %v5554_v8, %v5534_v63  ;;  %v5587_v9 = vadd.f32 %v5579_v4, %v5560_v56 }
0x11e2   : > { %v5991_v51 = vadd.f32 %v5983_v41, %v10259_v47  ;;  %v5588_v40 = vadd.f32 %v5580_v3, %v5561_v50  ;;  %v5604_v2 = vmul.f32 %v10233_v43, %v10301_v14  ;;  %v5605_v13 = vmul.f32 %v10233_v43, %v10306_v35 }
0x11e3   : > { %v5589_v32 = vadd.f32 %v5581_v24, %v5562_v26  ;;  %v5611_v18 = vadd.f32 %v5603_v11, %v5587_v9  ;;  %v5614_v52 = vrot.slane %v10306_v35, 1  ;;  %v5629_v27 = vmul.f32 %v10270_v61, %v10576_v5 }
0x11e4   : > { %v5998_v10 = vpack.c.bf16 %v5991_v51, %v5990_v7  ;;  %v5612_v48 = vadd.f32 %v5604_v2, %v5588_v40  ;;  %v5630_v56 = vmul.f32 %v10270_v61, %v10592_v57  ;;  %v5631_v47 = vmul.f32 %v10270_v61, %v10678_v30 }
0x11e5   : > { %v5613_v23 = vadd.f32 %v5605_v13, %v5589_v32  ;;  %v10731_v16 = vsel %vm5329_vm10, %v5614_v52, 0.0  ;;  %v5637_v43 = vadd.f32 %v5629_v27, %v10479_v1  ;;  %v5641_v33 = vrot.slane %v10306_v35, 2  ;;  %v11333_v52 = vld [vmem:[#allocation36_spill] sm:$0xff] }
0x11e6   : > { %7561 = vmatprep.mubr.msk.bf16.mxu1 %vm6018_vm12, %v5998_v10  ;;  %v5632_v5 = vmul.f32 %v10270_v61, %v10731_v16  ;;  %v5638_v46 = vadd.f32 %v5630_v56, %v5611_v18  ;;  %v5639_v8 = vadd.f32 %v5631_v47, %v5612_v48  ;;  %v5656_v45 = vmul.f32 %v10454_v44, %v10582_v0  ;;  %v11334_v47 = vld [vmem:[#allocation39_spill] sm:$0xff] }
0x11e7   : > { %v10741_v50 = vsel %vm1288_vm11, %v5641_v33, 0.0  ;;  %v5657_v38 = vmul.f32 %v10454_v44, %v10595_v6  ;;  %v5658_v1 = vmul.f32 %v10454_v44, %v10681_v49  ;;  %v5680_v34 = vmul.f32 %v10218_v36, %v10568_v39 }
0x11e8   : > { %v8221_v63 = vpop.eup %8220  ;;  %v5640_v4 = vadd.f32 %v5632_v5, %v5613_v23  ;;  %v5659_v61 = vmul.f32 %v10454_v44, %v10741_v50  ;;  %v5664_v41 = vadd.f32 %v5656_v45, %v5637_v43  ;;  %v5681_v0 = vmul.f32 %v10218_v36, %v10652_v28  ;;  %v11335_v45 = vld [vmem:[#allocation41_spill] sm:$0xff] }
0x11e9   : > { %v5976_v3 = vadd.f32 1.0, %v8221_v63  ;;  %v5665_v24 = vadd.f32 %v5657_v38, %v5638_v46  ;;  %v5666_v11 = vadd.f32 %v5658_v1, %v5639_v8  ;;  %v5682_v37 = vmul.f32 %v10218_v36, %v10697_v59 }
0x11ea   : > { %v5921_v7 = vmul.f32 0.5, %v10664_v42  ;;  %v5667_v26 = vadd.f32 %v5659_v61, %v5640_v4  ;;  %v5688_v9 = vadd.f32 %v5680_v34, %v5664_v41  ;;  %v5704_v39 = vmul.f32 %v10477_v20, %v10573_v54 }
0x11eb   : > { %v8223_v51 = vpop.eup %8222  ;;  %v5689_v40 = vadd.f32 %v5681_v0, %v5665_v24  ;;  %v5690_v44 = vadd.f32 %v5682_v37, %v5666_v11  ;;  %v5705_v2 = vmul.f32 %v10477_v20, %v10655_v21  ;;  %v5706_v13 = vmul.f32 %v10477_v20, %v10705_v62 }
0x11ec   : > { %v5977_v32 = vadd.f32 1.0, %v8223_v51  ;;  %v5984_v18 = vmul.f32 %v5976_v3, %v10659_v55  ;;  %v5712_v36 = vadd.f32 %v5704_v39, %v5688_v9  ;;  %v5728_v42 = vmul.f32 %v10488_v53, %v10314_v12 }
0x11ed   : > { %v5707_v27 = vmul.f32 %v10477_v20, %v11333_v52  ;;  %v5713_v54 = vadd.f32 %v5705_v2, %v5689_v40  ;;  %v5714_v10 = vadd.f32 %v5706_v13, %v5690_v44  ;;  %v5729_v48 = vmul.f32 %v10488_v53, %v10301_v14  ;;  %v11336_v40 = vld [vmem:[#allocation37_spill] sm:$0xff]  ;;  %v11337_v44 = vld [vmem:[#allocation35_spill] sm:$0xff] }
0x11ee   : > { %v5985_v56 = vmul.f32 %v5977_v32, %v5921_v7  ;;  %v5691_v23 = vadd.f32 %v11334_v47, %v5667_v26  ;;  %v5730_v43 = vmul.f32 %v10488_v53, %v10306_v35  ;;  %v5736_v33 = vadd.f32 %v5728_v42, %v5712_v36  ;;  %v11338_v36 = vld [vmem:[#allocation38_spill] sm:$0xff] }
0x11ef   : > { %v5737_v55 = vadd.f32 %v5729_v48, %v5713_v54  ;;  %v5752_v5 = vmul.f32 %v10499_v31, %v10592_v57  ;;  %v5753_v46 = vmul.f32 %v10499_v31, %v10678_v30  ;;  %v5754_v20 = vmul.f32 %v10499_v31, %v10731_v16 }
0x11f0   : > { %v5992_v8 = vadd.f32 %v5984_v18, %v10228_v58  ;;  %v5993_v38 = vadd.f32 %v5985_v56, %v11335_v45  ;;  %v5738_v1 = vadd.f32 %v5730_v43, %v5714_v10  ;;  %v5776_v34 = vmul.f32 %v10510_v17, %v10595_v6 }
0x11f1   : > { %v5760_v63 = vadd.f32 %v5752_v5, %v5736_v33  ;;  %v5761_v4 = vadd.f32 %v5753_v46, %v5737_v55  ;;  %v5777_v61 = vmul.f32 %v10510_v17, %v10681_v49  ;;  %v5778_v57 = vmul.f32 %v10510_v17, %v10741_v50 }
0x11f2   : > { %v5999_v41 = vpack.c.bf16 %v5993_v38, %v5992_v8  ;;  %v5762_v0 = vadd.f32 %v5754_v20, %v5738_v1  ;;  %v5800_v58 = vmul.f32 %v10517_v22, %v10652_v28  ;;  %v5801_v11 = vmul.f32 %v10517_v22, %v10697_v59 }
0x11f3   : > { %v5784_v3 = vadd.f32 %v5776_v34, %v5760_v63  ;;  %v5785_v24 = vadd.f32 %v5777_v61, %v5761_v4  ;;  %v5715_v6 = vadd.f32 %v5707_v27, %v5691_v23  ;;  %v5823_v9 = vmul.f32 %v10524_v25, %v10655_v21 }
0x11f4   : > { %7562 = vmatmul.mubr.msk.bf16.vlgmr.msra.gmra.mrb[40].mxu1 %vm6018_vm12, %v5999_v41  ;;  %v5786_v37 = vadd.f32 %v5778_v57, %v5762_v0  ;;  %v5824_v39 = vmul.f32 %v10524_v25, %v10705_v62  ;;  %v5846_v51 = vmul.f32 %v10527_v15, %v10301_v14  ;;  %v5731_v28 = vmul.f32 0.0, %v10488_v53 }
0x11f5   : > { %v5807_v7 = vadd.f32 %v5800_v58, %v5784_v3  ;;  %v5808_v26 = vadd.f32 %v5801_v11, %v5785_v24  ;;  %v5755_v59 = vmul.f32 %v10499_v31, %v11336_v40  ;;  %v5802_v2 = vmul.f32 %v10517_v22, %v11337_v44 }
0x11f6   : > { %v5847_v18 = vmul.f32 %v10527_v15, %v10306_v35  ;;  %v5825_v21 = vmul.f32 %v10524_v25, %v11333_v52  ;;  %v5739_v62 = vadd.f32 %v5731_v28, %v5715_v6  ;;  %v5779_v42 = vmul.f32 %v10510_v17, %v11338_v36 }
0x11f7   : > { %v5830_v13 = vadd.f32 %v5823_v9, %v5807_v7  ;;  %v5831_v32 = vadd.f32 %v5824_v39, %v5808_v26  ;;  %v5809_v27 = vadd.f32 %v5802_v2, %v5786_v37  ;;  %v5848_v53 = vmul.f32 0.0, %v10527_v15 }
0x11f8   : > { %v5869_v22 = vmul.f32 %v10534_v60, %v10678_v30  ;;  %v5870_v10 = vmul.f32 %v10534_v60, %v10731_v16  ;;  %v5763_v48 = vadd.f32 %v5755_v59, %v5739_v62  ;;  %v5871_v25 = vmul.f32 %v10534_v60, %v11336_v40  ;;  %v11339_v62 = vld [vmem:[#allocation42_spill] sm:$0xff] }
0x11f9   : > { %v5853_v54 = vadd.f32 %v5846_v51, %v5830_v13  ;;  %v5854_v31 = vadd.f32 %v5847_v18, %v5831_v32  ;;  %v5832_v56 = vadd.f32 %v5825_v21, %v5809_v27  ;;  %v5892_v17 = vmul.f32 %v10541_v19, %v10681_v49 }
0x11fa   : > { %v5893_v15 = vmul.f32 %v10541_v19, %v10741_v50  ;;  %v5787_v23 = vadd.f32 %v5779_v42, %v5763_v48  ;;  %v5894_v30 = vmul.f32 %v10541_v19, %v11338_v36 }
0x11fb   : > { %v5876_v52 = vadd.f32 %v5869_v22, %v5853_v54  ;;  %v5877_v47 = vadd.f32 %v5870_v10, %v5854_v31  ;;  %v5855_v43 = vadd.f32 %v5848_v53, %v5832_v56 }
0x11fc   : > { %v5810_v55 = vadd.f32 %v5802_v2, %v5787_v23 }
0x11fd   : > { %v5899_v33 = vadd.f32 %v5892_v17, %v5876_v52  ;;  %v5900_v16 = vadd.f32 %v5893_v15, %v5877_v47  ;;  %v5878_v5 = vadd.f32 %v5871_v25, %v5855_v43  ;;  %v11341_v15 = vld [vmem:[#allocation28_spill] sm:$0xff] }
0x11fe   : > { %v5833_v20 = vadd.f32 %v5825_v21, %v5810_v55 }
0x11ff   : > { %v5914_v46 = vadd.f32 %v10589_v29, %v5899_v33  ;;  %v5915_v60 = vadd.f32 %v10589_v29, %v5900_v16  ;;  %v5901_v8 = vadd.f32 %v5894_v30, %v5878_v5 }
0x1200   : > { %v5856_v38 = vadd.f32 %v5848_v53, %v5833_v20 }
0x1201   : > { %v5930_v45 = vmul.f32 0.044715, %v5914_v46  ;;  %v5931_v49 = vmul.f32 0.044715, %v5915_v60  ;;  %v5916_v50 = vadd.f32 %v10589_v29, %v5901_v8  ;;  %v5922_v44 = vmul.f32 0.5, %v5914_v46 }
0x1202   : > { %v5879_v63 = vadd.f32 %v5871_v25, %v5856_v38  ;;  %v5923_v13 = vmul.f32 0.5, %v5915_v60  ;;  %v11345_v38 = vld [vmem:[#allocation33_spill] sm:$0xff] }
0x1203   : > { %v5938_v1 = vmul.f32 %v5930_v45, %v5914_v46  ;;  %v5939_v34 = vmul.f32 %v5931_v49, %v5915_v60  ;;  %v5932_v4 = vmul.f32 0.044715, %v5916_v50  ;;  %v5924_v54 = vmul.f32 0.5, %v5916_v50 }
0x1204   : > { %v5902_v57 = vadd.f32 %v5894_v30, %v5879_v63  ;;  %v11342_v30 = vld [vmem:[#allocation27_spill] sm:$0xff] }
0x1205   : > { %v5946_v19 = vmul.f32 %v5938_v1, %v5914_v46  ;;  %v5947_v61 = vmul.f32 %v5939_v34, %v5915_v60  ;;  %v5940_v41 = vmul.f32 %v5932_v4, %v5916_v50  ;;  %v11346_v34 = vld [vmem:[#allocation31_spill] sm:$0xff] }
0x1206   : > { %v5917_v24 = vadd.f32 %v10589_v29, %v5902_v57 }
0x1207   : > { %v5954_v0 = vadd.f32 %v5946_v19, %v5914_v46  ;;  %v5955_v3 = vadd.f32 %v5947_v61, %v5915_v60  ;;  %v5948_v58 = vmul.f32 %v5940_v41, %v5916_v50  ;;  %v11344_v60 = vld [vmem:[#allocation29_spill] sm:$0xff]  ;;  %v11347_v61 = vld [vmem:[#allocation34_spill] sm:$0xff] }
0x1208   : > { %v5933_v37 = vmul.f32 0.044715, %v5917_v24  ;;  %v5925_v22 = vmul.f32 0.5, %v5917_v24 }
0x1209   : > { %v5962_v11 = vmul.f32 0.7978846, %v5954_v0  ;;  %v5963_v6 = vmul.f32 0.7978846, %v5955_v3  ;;  %v5956_v7 = vadd.f32 %v5948_v58, %v5916_v50  ;;  %v11348_v3 = vld [vmem:[#allocation32_spill] sm:$0xff] }
0x120a   : > { %v5941_v26 = vmul.f32 %v5933_v37, %v5917_v24  ;;  %v8703_v37 = vmov (!%p7130_p7), 0.0  }
0x120b   : > { %8224 = vtanh.f32 %v5962_v11  ;;  %v5964_v9 = vmul.f32 0.7978846, %v5956_v7 }
0x120c   : > { %8226 = vtanh.f32 %v5963_v6  ;;  %v5949_v39 = vmul.f32 %v5941_v26, %v5917_v24 }
0x120d   : > { %8228 = vtanh.f32 %v5964_v9 }
0x120e   : > { %v5957_v51 = vadd.f32 %v5949_v39, %v5917_v24 }
0x1210   : > { %v5965_v28 = vmul.f32 0.7978846, %v5957_v51 }
0x1212   : > { %8230 = vtanh.f32 %v5965_v28 }
0x1215   : > { %v8225_v40 = vpop.eup %8224 }
0x1216   : > { %v8227_v59 = vpop.eup %8226  ;;  %v5978_v2 = vadd.f32 1.0, %v8225_v40  ;;  %v11349_v40 = vld [vmem:[#allocation37_spill] sm:$0xff] (!%p7130_p7) }
0x1217   : > { %v5979_v29 = vadd.f32 1.0, %v8227_v59  ;;  %v8229_v32 = vpop.eup %8228 }
0x1218   : > { %v5986_v18 = vmul.f32 %v5978_v2, %v5922_v44  ;;  %v5980_v27 = vadd.f32 1.0, %v8229_v32 }
0x1219   : > { %v5987_v21 = vmul.f32 %v5979_v29, %v5923_v13 }
0x121a   : > { %v5994_v36 = vadd.f32 %v5986_v18, %v11339_v62  ;;  %v5988_v48 = vmul.f32 %v5980_v27, %v5924_v54 }
0x121b   : > { %v5995_v42 = vadd.f32 %v5987_v21, %v10314_v12  ;;  %v7129_v12 = vld [vmem:[%s983_s13] ss:$0 sm:$0xff]  ;;  %s8706_s13 = smov (!%p7130_p7), 48  }
0x121c   : > { %v8231_v31 = vpop.eup %8230  ;;  %v5996_v25 = vadd.f32 %v5988_v48, %v10301_v14  ;;  %v11343_v14 = vld [vmem:[#allocation30_spill] sm:$0xff] }
0x121d   : > { %v6000_v53 = vpack.c.bf16 %v5995_v42, %v5994_v36  ;;  %v5981_v10 = vadd.f32 1.0, %v8231_v31 }
0x121f   : > { %7565 = vmatprep.mubr.msk.bf16.mxu1 %vm6018_vm12, %v6000_v53  ;;  %v5989_v56 = vmul.f32 %v5981_v10, %v5925_v22 }
0x1221   : > { %v5997_v52 = vadd.f32 %v5989_v56, %v10306_v35 }
0x1223   : > { %v6001_v47 = vpack.c.bf16 %v5997_v52, %v5996_v25 }
0x1225   : > { %7566 = vmatmul.mubr.msk.bf16.gmra.mrb[44].mxu1 %vm6018_vm12, %v6001_v47  ;;  %v8380_v47 = vld [vmem:[%s11350_s15] sm:$0xff] (!%p7130_p7)  }
0x12c7   : > { %v7563_v17 = vpop.f32.mrb[40].mxu1 }
0x12c8   : > { %v6098_v23 = vadd.f32 %v7563_v17, %v11341_v15  ;;  %v6065_v43 = vpop.f32.mrb[41].mxu1 }
0x12c9   : > { %v6096_v33 = vadd.f32 %v6065_v43, %v11342_v30  ;;  %v7564_v16 = vpop.f32.mrb[42].mxu1  ;;  %v8708_v30 = vmov (!%p7130_p7), 0  }
0x12ca   : > { %v10838_v55 = vadd.f32 %v7129_v12, %v6098_v23  ;;  %v6099_v5 = vadd.f32 %v7564_v16, %v11343_v14  ;;  %v6068_v35 = vpop.f32.mrb[43].mxu1  ;;  %6533 = vmatprep.subr.bf16.mxu0 (!%p7130_p7), %v8708_v30  ;;  %7729 = vmatprep.subr.bf16.mxu1 (!%p7130_p7), %v8708_v30 }
0x12cb   : > { %v10841_v46 = vadd.f32 %v7129_v12, %v6096_v33  ;;  %v6097_v20 = vadd.f32 %v6068_v35, %v11344_v60  ;;  %6534 = vmatpush1.bf16.msra.mxu0 (!%p7130_p7), %v8380_v47  ;;  %7738 = vmatpush1.bf16.msra.mxu1 (!%p7130_p7), %v8380_v47 }
0x12cc   : > { %6121 = vst.msk [vmem:[#allocation2 + $0x10] sm:$0xff] %vm1034_vm1, %v10838_v55  ;;  %v10846_v8 = vadd.f32 %v7129_v12, %v6099_v5  ;;  %v6161_v10 = vrot.slane (!%p7130_p7), %v10838_v55, 1  ;;  %v6140_v56 = vrot.slane (!%p7130_p7), %v10838_v55, 7  ;;  %v8381_v5 = vld [vmem:[%s11350_s15 + $0x8] sm:$0xff] (!%p7130_p7)   ;;  %6535 = vmatprep.subr.bf16.mxu0 (!%p7130_p7), %v8708_v30  ;;  %7730 = vmatprep.subr.bf16.mxu1 (!%p7130_p7), %v8708_v30 }
0x12cd   : > { %6119 = vst.msk [vmem:[#allocation2] sm:$0xff] %vm1034_vm1, %v10841_v46  ;;  %v10850_v45 = vadd.f32 %v7129_v12, %v6097_v20  ;;  %v6159_v6 = vrot.slane (!%p7130_p7), %v10841_v46, 1  ;;  %v8240_v7 = vpack.i.bf16 (!%p7130_p7), %v10841_v46, %v8703_v37  ;;  %v6138_v51 = vrot.slane (!%p7130_p7), %v10841_v46, 7 }
0x12ce   : > { %6122 = vst.msk [vmem:[#allocation2 + $0x18] sm:$0xff] %vm1034_vm1, %v10846_v8  ;;  %v6162_v26 = vrot.slane (!%p7130_p7), %v10846_v8, 1  ;;  %v10938_v23 = vsel (!%p7130_p7), %vm5329_vm10, %v6161_v10, 0.0  ;;  %v10941_v43 = vsel (!%p7130_p7), %vm5263_vm9, 0.0, %v6140_v56 }
0x12cf   : > { %6120 = vst.msk [vmem:[#allocation2 + $0x8] sm:$0xff] %vm1034_vm1, %v10850_v45  ;;  %v6173_v39 = vsel (!%p7130_p7), %vm5329_vm10, %v6159_v6, 0.0  ;;  %v6139_v28 = vrot.slane (!%p7130_p7), %v10850_v45, 7  ;;  %8241 = vrot.lane.b32.xlu0 (!%p7130_p7), %v8240_v7, %s8704_s28  ;;  %v10893_v29 = vsel (!%p7130_p7), %vm5263_vm9, 0.0, %v6138_v51  ;;  %v6160_v53 = vrot.slane (!%p7130_p7), %v10850_v45, 1  ;;  %6536 = vmatpush1.bf16.msra.mxu0 (!%p7130_p7), %v8381_v5  ;;  %v8388_v51 = vld [vmem:[%s11350_s15 + $0x40] sm:$0xff] (!%p7130_p7)  }
0x12d0   : > { %v8250_v59 = vpack.i.bf16 (!%p7130_p7), %v6173_v39, %v11349_v40  ;;  %v10887_v2 = vsel (!%p7130_p7), %vm5329_vm10, %v6162_v26, 0.0  ;;  %v8270_v22 = vpack.i.bf16 (!%p7130_p7), %v10850_v45, %v10841_v46  ;;  %7739 = vmatpush1.bf16.msra.mxu1 (!%p7130_p7), %v8381_v5  ;;  %6537 = vmatprep.subr.bf16.mxu0 (!%p7130_p7), %v8708_v30  ;;  %v8340_v7 = vpack.i.bf16 (!%p7130_p7), %v10846_v8, %v10838_v55 }
0x12d1   : > { %v10896_v32 = vsel (!%p7130_p7), %vm5263_vm9, 0.0, %v6139_v28  ;;  %v10922_v48 = vsel (!%p7130_p7), %vm5329_vm10, %v6160_v53, 0.0  ;;  %7731 = vmatprep.subr.bf16.mxu1 (!%p7130_p7), %v8708_v30 }
0x12d2   : > { %8251 = vrot.lane.b32.xlu1 (!%p7130_p7), %v8250_v59, %s8705_s21  ;;  %v8260_v42 = vpack.i.bf16 (!%p7130_p7), %v10896_v32, %v10893_v29  ;;  %v8280_v15 = vpack.i.bf16 (!%p7130_p7), %v10922_v48, %v6173_v39  ;;  %v6435_v33 = vpack.c.bf16 (!%p7130_p7), %v10938_v23, %v10922_v48  ;;  %v8290_v60 = vpack.i.bf16 (!%p7130_p7), %v10941_v43, %v10896_v32  ;;  %v11351_v59 = vld [vmem:[#allocation36_spill] sm:$0xff] (!%p7130_p7) }
0x12d4   : > { %7141 = vmatprep.mubr.msk.bf16.mxu0 (!%p7130_p7), %vm1034_vm1, %v6435_v33 }
0x12f8   : > { %v7567_v49 = vpop.f32.mrb[44].mxu1 }
0x12f9   : > { %v6102_v50 = vadd.f32 %v7567_v49, %v11345_v38  ;;  %v6081_v1 = vpop.f32.mrb[45].mxu1  ;;  %v8382_v49 = vld [vmem:[%s11350_s15 + $0x10] sm:$0xff] (!%p7130_p7)   ;;  %v8300_v38 = vpack.i.bf16 (!%p7130_p7), %v10838_v55, %v10850_v45  ;;  %v6141_v45 = vrot.slane (!%p7130_p7), %v10846_v8, 7  ;;  %v8350_v55 = vpack.i.bf16 (!%p7130_p7), %v10887_v2, %v10938_v23 }
0x12fa   : > { %v6100_v63 = vadd.f32 %v6081_v1, %v11346_v34  ;;  %v7568_v4 = vpop.f32.mrb[46].mxu1  ;;  %6130 = sbr.rel (%p7130_p7) target bundleno = 5254 (0x1486), region = 132  ;;  %6538 = vmatpush1.bf16.msra.mxu0 (!%p7130_p7), %v8382_v49  ;;  %v8383_v1 = vld [vmem:[%s11350_s15 + $0x18] sm:$0xff] (!%p7130_p7)   ;;  %7740 = vmatpush1.bf16.msra.mxu1 (!%p7130_p7), %v8382_v49  ;;  %v8384_v34 = vld [vmem:[%s11350_s15 + $0x20] sm:$0xff] (!%p7130_p7)  }
0x12fb   : > { %v10858_v19 = vadd.f32 %v7129_v12, %v6102_v50  ;;  %v6103_v57 = vadd.f32 %v7568_v4, %v11347_v61  ;;  %v6084_v41 = vpop.f32.mrb[47].mxu1  ;;  %6539 = vmatprep.subr.bf16.mxu0 (!%p7130_p7), %v8708_v30  ;;  %7732 = vmatprep.subr.bf16.mxu1 (!%p7130_p7), %v8708_v30  ;;  %v8320_v4 = vpack.i.bf16 (!%p7130_p7), %v10938_v23, %v10922_v48  ;;  %v11000_v61 = vsel (!%p7130_p7), %vm5263_vm9, 0.0, %v6141_v45 }
0x12fc   : > { %v6115_v0 = vadd.f32 %v7129_v12, %v6100_v63  ;;  %v6101_v24 = vadd.f32 %v6084_v41, %v11348_v3  ;;  %v8385_v41 = vld [vmem:[%s11350_s15 + $0x28] sm:$0xff] (!%p7130_p7)   ;;  %v8330_v3 = vpack.i.bf16 (!%p7130_p7), %v11000_v61, %v10941_v43 }
0x12fd   : > { %6125 = vst.msk [vmem:[#allocation2 + $0x30] sm:$0xff] %vm1034_vm1, %v10858_v19  ;;  %v10864_v58 = vadd.f32 %v7129_v12, %v6103_v57  ;;  %v6165_v52 = vrot.slane (!%p7130_p7), %v10858_v19, 1 }
0x12fe   : > { %6123 = vst.msk [vmem:[#allocation2 + $0x20] sm:$0xff] %vm1034_vm1, %v6115_v0  ;;  %v10867_v11 = vadd.f32 %v7129_v12, %v6101_v24  ;;  %v6163_v9 = vrot.slane (!%p7130_p7), %v6115_v0, 1  ;;  %v10884_v44 = vpack.i.bf16 (!%p7130_p7), %v6115_v0, %v10846_v8  ;;  %v6142_v18 = vrot.slane (!%p7130_p7), %v6115_v0, 7  ;;  %6540 = vmatpush1.bf16.msra.mxu0 (!%p7130_p7), %v8383_v1  ;;  %7741 = vmatpush1.bf16.msra.mxu1 (!%p7130_p7), %v8383_v1 }
0x12ff   : > { %6126 = vst.msk [vmem:[#allocation2 + $0x38] sm:$0xff] %vm1034_vm1, %v10864_v58  ;;  %v6144_v12 = vrot.slane (!%p7130_p7), %v10858_v19, 7  ;;  %v10951_v14 = vsel (!%p7130_p7), %vm5329_vm10, %v6165_v52, 0.0  ;;  %v6181_v63 = vrot.slane (!%p7130_p7), %v10864_v58, 7  ;;  %6541 = vmatprep.subr.bf16.mxu0 (!%p7130_p7), %v8708_v30  ;;  %7733 = vmatprep.subr.bf16.mxu1 (!%p7130_p7), %v8708_v30  ;;  %v6184_v6 = vrot.slane (!%p7130_p7), %v10864_v58, 1 }
0x1300   : > { %6124 = vst.msk [vmem:[#allocation2 + $0x28] sm:$0xff] %vm1034_vm1, %v10867_v11  ;;  %v10890_v13 = vsel (!%p7130_p7), %vm5329_vm10, %v6163_v9, 0.0  ;;  %v6143_v62 = vrot.slane (!%p7130_p7), %v10867_v11, 7  ;;  %v10903_v36 = vsel (!%p7130_p7), %vm5263_vm9, 0.0, %v6142_v18  ;;  %8246 = vrot.lane.b32.xlu0 (!%p7130_p7), %v10884_v44, %s8704_s28  ;;  %v6164_v31 = vrot.slane (!%p7130_p7), %v10867_v11, 1  ;;  %v8387_v9 = vld [vmem:[%s11350_s15 + $0x38] sm:$0xff] (!%p7130_p7)  }
0x1301   : > { %v8255_v21 = vpack.i.bf16 %v10890_v13, %v10887_v2  ;;  %v8275_v25 = vpack.i.bf16 %v10867_v11, %v6115_v0  ;;  %v10957_v35 = vsel %vm5263_vm9, 0.0, %v6144_v12  ;;  %v8305_v50 = vpack.i.bf16 %v10858_v19, %v10867_v11  ;;  %v8386_v11 = vld [vmem:[%s11350_s15 + $0x30] sm:$0xff]  }
0x1302   : > { %v10910_v27 = vsel %vm5263_vm9, 0.0, %v6143_v62  ;;  %v10932_v17 = vsel %vm5329_vm10, %v6164_v31, 0.0  ;;  %6542 = vmatpush1.bf16.msra.mxu0 %v8384_v34  ;;  %v6183_v0 = vsel %vm5263_vm9, 0.0, %v6181_v63  ;;  %7742 = vmatpush1.bf16.msra.mxu1 %v8384_v34  ;;  %v8345_v26 = vpack.i.bf16 %v10864_v58, %v10858_v19 }
0x1303   : > { %8256 = vrot.lane.b32.xlu1 %v8255_v21, %s8705_s21  ;;  %v8265_v54 = vpack.i.bf16 %v10910_v27, %v10903_v36  ;;  %v8285_v16 = vpack.i.bf16 %v10932_v17, %v10890_v13  ;;  %v6439_v46 = vpack.c.bf16 %v10951_v14, %v10932_v17  ;;  %v8295_v20 = vpack.i.bf16 %v10957_v35, %v10910_v27 }
0x1304   : > { %8261 = vrot.lane.b32.xlu0 %v8260_v42, %s8706_s13  ;;  %v8325_v57 = vpack.i.bf16 %v10951_v14, %v10932_v17  ;;  %6543 = vmatprep.subr.bf16.mxu0 %v8708_v30  ;;  %v8335_v24 = vpack.i.bf16 %v6183_v0, %v10957_v35  ;;  %v11032_v39 = vsel %vm5329_vm10, %v6184_v6, 0.0  ;;  %v6437_v8 = vpack.c.bf16 %v10890_v13, %v10887_v2 }
0x1305   : > { %7143 = vmatprep.mubr.msk.bf16.mxu1 %vm1034_vm1, %v6439_v46  ;;  %7734 = vmatprep.subr.bf16.mxu1 %v8708_v30  ;;  %v8355_v19 = vpack.i.bf16 %v11032_v39, %v10951_v14  ;;  %v8360_v28 = vpack.i.bf16 %v10903_v36, %v11000_v61  ;;  %v8365_v18 = vpack.i.bf16 %v11351_v59, %v6183_v0 }
0x1306   : > { %6544 = vmatpush1.bf16.msra.mxu0 %v8385_v41  ;;  %7743 = vmatpush1.bf16.msra.mxu1 %v8385_v41  ;;  %v8375_v21 = vpack.i.bf16 %v8703_v37, %v10864_v58 }
0x1307   : > { %8266 = vrot.lane.b32.xlu1 %v8265_v54, %s8706_s13  ;;  %6545 = vmatprep.subr.bf16.mxu0 %v8708_v30 }
0x1308   : > { %8271 = vrot.lane.b32.xlu0 %v8270_v22, %s8707_s20  ;;  %7735 = vmatprep.subr.bf16.mxu1 %v8708_v30 }
0x130a   : > { %6546 = vmatpush1.bf16.msra.mxu0 %v8386_v11  ;;  %7744 = vmatpush1.bf16.msra.mxu1 %v8386_v11 }
0x130b   : > { %8276 = vrot.lane.b32.xlu1 %v8275_v25, %s8707_s20  ;;  %6547 = vmatprep.subr.bf16.mxu0 %v8708_v30 }
0x130c   : > { %8281 = vrot.lane.b32.xlu0 %v8280_v15, %s8709_s29  ;;  %7736 = vmatprep.subr.bf16.mxu1 %v8708_v30 }
0x130e   : > { %6548 = vmatpush1.bf16.msra.mxu0 %v8387_v9  ;;  %7745 = vmatpush1.bf16.msra.mxu1 %v8387_v9 }
0x130f   : > { %8286 = vrot.lane.b32.xlu1 %v8285_v16, %s8709_s29  ;;  %6549 = vmatprep.subr.bf16.mxu0 %v8708_v30 }
0x1310   : > { %8291 = vrot.lane.b32.xlu0 %v8290_v60, %s8710_s12  ;;  %7737 = vmatprep.subr.bf16.mxu1 %v8708_v30 }
0x1312   : > { %6550 = vmatpush1.bf16.msra.mxu0 %v8388_v51  ;;  %7746 = vmatpush1.bf16.msra.mxu1 %v8388_v51 }
0x1313   : > { %8296 = vrot.lane.b32.xlu1 %v8295_v20, %s8710_s12 }
0x1314   : > { %8301 = vrot.lane.b32.xlu0 %v8300_v38, %s8711_s6 }
0x1317   : > { %8306 = vrot.lane.b32.xlu1 %v8305_v50, %s8711_s6 }
0x1318   : > { %8311 = vrot.lane.b32.xlu0 %v8300_v38, %s8704_s28 }
0x131b   : > { %8316 = vrot.lane.b32.xlu1 %v8305_v50, %s8704_s28 }
0x131c   : > { %8321 = vrot.lane.b32.xlu0 %v8320_v4, %s8705_s21 }
0x131f   : > { %8326 = vrot.lane.b32.xlu1 %v8325_v57, %s8705_s21  ;;  %s11352_s21 = sld [smem:[#allocation60_spill]] }
0x1320   : > { %8331 = vrot.lane.b32.xlu0 %v8330_v3, %s8706_s13 }
0x1323   : > { %8336 = vrot.lane.b32.xlu1 %v8335_v24, %s8706_s13 }
0x1324   : > { %8341 = vrot.lane.b32.xlu0 %v8340_v7, %s8707_s20 }
0x1327   : > { %8346 = vrot.lane.b32.xlu1 %v8345_v26, %s8707_s20 }
0x1328   : > { %8351 = vrot.lane.b32.xlu0 %v8350_v55, %s8709_s29 }
0x132b   : > { %8356 = vrot.lane.b32.xlu1 %v8355_v19, %s8709_s29 }
0x132c   : > { %8361 = vrot.lane.b32.xlu0 %v8360_v28, %s8710_s12 }
0x132f   : > { %8366 = vrot.lane.b32.xlu1 %v8365_v18, %s8710_s12 }
0x1330   : > { %8371 = vrot.lane.b32.xlu0 %v10884_v44, %s8711_s6 }
0x1333   : > { %8376 = vrot.lane.b32.xlu1 %v8375_v21, %s8711_s6 }
0x1341   : > { %v8242_v62 = vpop.permute.xlu0 %8241 }
0x1342   : > { %v8244_v10 = vunpack.i.h.bf16 %v8242_v62  ;;  %v8243_v48 = vunpack.i.l.bf16 %v8242_v62 }
0x1344   : > { %v8252_v42 = vpop.permute.xlu1 %8251  ;;  %v6373_v17 = vsel %vm1034_vm1, %v11351_v59, %v8243_v48  ;;  %v6374_v44 = vsel %vm1034_vm1, %v10893_v29, %v8244_v10 }
0x1345   : > { %v8254_v47 = vunpack.i.h.bf16 %v8252_v42  ;;  %v8253_v58 = vunpack.i.l.bf16 %v8252_v42 }
0x1347   : > { %v6381_v5 = vsel %vm6018_vm12, %v6373_v17, %v8253_v58  ;;  %v6382_v46 = vsel %vm6018_vm12, %v6374_v44, %v8254_v47 }
0x1372   : > { %v8247_v53 = vpop.permute.xlu0 %8246 }
0x1373   : > { %v8249_v25 = vunpack.i.h.bf16 %v8247_v53  ;;  %v8248_v52 = vunpack.i.l.bf16 %v8247_v53 }
0x1375   : > { %v8257_v54 = vpop.permute.xlu1 %8256  ;;  %v6377_v30 = vsel %vm1034_vm1, %v11000_v61, %v8248_v52  ;;  %v6378_v33 = vsel %vm1034_vm1, %v10903_v36, %v8249_v25 }
0x1376   : > { %v8262_v31 = vpop.permute.xlu0 %8261  ;;  %v8259_v12 = vunpack.i.h.bf16 %v8257_v54  ;;  %v8258_v15 = vunpack.i.l.bf16 %v8257_v54 }
0x1377   : > { %v8264_v16 = vunpack.i.h.bf16 %v8262_v31  ;;  %v8263_v14 = vunpack.i.l.bf16 %v8262_v31 }
0x1378   : > { %v6385_v50 = vsel %vm6018_vm12, %v6377_v30, %v8258_v15  ;;  %v6386_v1 = vsel %vm6018_vm12, %v6378_v33, %v8259_v12  ;;  %v6441_v15 = vpack.c.bf16 %v11349_v40, %v11032_v39 }
0x1379   : > { %v8267_v22 = vpop.permute.xlu1 %8266  ;;  %v6390_v63 = vsel %vm6389_vm13, %v6381_v5, %v8263_v14  ;;  %v6391_v4 = vsel %vm6389_vm13, %v6382_v46, %v8264_v16 }
0x137a   : > { %v8272_v56 = vpop.permute.xlu0 %8271  ;;  %v8269_v29 = vunpack.i.h.bf16 %v8267_v22  ;;  %v8268_v20 = vunpack.i.l.bf16 %v8267_v22 }
0x137b   : > { %v8274_v49 = vunpack.i.h.bf16 %v8272_v56  ;;  %v8273_v38 = vunpack.i.l.bf16 %v8272_v56 }
0x137c   : > { %v6394_v6 = vsel %vm6389_vm13, %v6385_v50, %v8268_v20  ;;  %v6395_v7 = vsel %vm6389_vm13, %v6386_v1, %v8269_v29 }
0x137d   : > { %v8277_v37 = vpop.permute.xlu1 %8276  ;;  %v6399_v26 = vsel %vm6398_vm14, %v6390_v63, %v8273_v38  ;;  %v6400_v9 = vsel %vm6398_vm14, %v6391_v4, %v8274_v49 }
0x137e   : > { %v8282_v23 = vpop.permute.xlu0 %8281  ;;  %v8279_v45 = vunpack.i.h.bf16 %v8277_v37  ;;  %v8278_v34 = vunpack.i.l.bf16 %v8277_v37 }
0x137f   : > { %v8284_v61 = vunpack.i.h.bf16 %v8282_v23  ;;  %v8283_v57 = vunpack.i.l.bf16 %v8282_v23 }
0x1380   : > { %v6403_v55 = vsel %vm6398_vm14, %v6394_v6, %v8278_v34  ;;  %v6404_v19 = vsel %vm6398_vm14, %v6395_v7, %v8279_v45 }
0x1381   : > { %v8287_v60 = vpop.permute.xlu1 %8286  ;;  %v6408_v18 = vsel %vm6407_vm15, %v6399_v26, %v8283_v57  ;;  %v6409_v21 = vsel %vm6407_vm15, %v6400_v9, %v8284_v61 }
0x1382   : > { %v8292_v36 = vpop.permute.xlu0 %8291  ;;  %v8289_v41 = vunpack.i.h.bf16 %v8287_v60  ;;  %v8288_v0 = vunpack.i.l.bf16 %v8287_v60 }
0x1383   : > { %v8294_v3 = vunpack.i.h.bf16 %v8292_v36  ;;  %v8293_v24 = vunpack.i.l.bf16 %v8292_v36 }
0x1384   : > { %v6412_v53 = vsel %vm6407_vm15, %v6403_v55, %v8288_v0  ;;  %v6413_v54 = vsel %vm6407_vm15, %v6404_v19, %v8289_v41 }
0x1385   : > { %v8297_v11 = vpop.permute.xlu1 %8296  ;;  %v6417_v31 = vsel %vm6416_vm0, %v6408_v18, %v8293_v24  ;;  %v6418_v22 = vsel %vm6416_vm0, %v6409_v21, %v8294_v3 }
0x1386   : > { %v8299_v51 = vunpack.i.h.bf16 %v8297_v11  ;;  %v8298_v28 = vunpack.i.l.bf16 %v8297_v11  ;;  %v8302_v59 = vpop.permute.xlu0 %8301 }
0x1387   : > { %v8304_v62 = vunpack.i.h.bf16 %v8302_v59  ;;  %v8303_v42 = vunpack.i.l.bf16 %v8302_v59 }
0x1388   : > { %v6421_v47 = vsel %vm6416_vm0, %v6412_v53, %v8298_v28  ;;  %v6422_v58 = vsel %vm6416_vm0, %v6413_v54, %v8299_v51 }
0x1389   : > { %v8307_v10 = vpop.permute.xlu1 %8306  ;;  %v6426_v25 = vsel %vm6425_vm2, %v6417_v31, %v8303_v42  ;;  %v6427_v52 = vsel %vm6425_vm2, %v6418_v22, %v8304_v62 }
0x138a   : > { %v8309_v48 = vunpack.i.h.bf16 %v8307_v10  ;;  %v8308_v56 = vunpack.i.l.bf16 %v8307_v10  ;;  %v8312_v37 = vpop.permute.xlu0 %8311  ;;  %v6434_v17 = vpack.c.bf16 %v6427_v52, %v6426_v25 }
0x138b   : > { %v8314_v46 = vunpack.i.h.bf16 %v8312_v37  ;;  %v8313_v60 = vunpack.i.l.bf16 %v8312_v37 }
0x138c   : > { %v6430_v44 = vsel %vm6425_vm2, %v6421_v47, %v8308_v56  ;;  %v6431_v12 = vsel %vm6425_vm2, %v6422_v58, %v8309_v48  ;;  %6566 = vmatmul.mubr.bf16.vlgmr.msra.gmra.mrb[0].mxu0 %v6434_v17 }
0x138d   : > { %v8317_v23 = vpop.permute.xlu1 %8316  ;;  %v6438_v30 = vpack.c.bf16 %v6431_v12, %v6430_v44  ;;  %7142 = vmatprep.mubr.msk.bf16.mxu0 %vm1034_vm1, %v6437_v8  ;;  %v6376_v2 = vsel %vm1034_vm1, %v10941_v43, %v8314_v46  ;;  %v6375_v13 = vsel %vm1034_vm1, %v10896_v32, %v8313_v60 }
0x138e   : > { %v8322_v33 = vpop.permute.xlu0 %8321  ;;  %v8319_v20 = vunpack.i.h.bf16 %v8317_v23  ;;  %v8318_v40 = vunpack.i.l.bf16 %v8317_v23 }
0x138f   : > { %6582 = vmatmul.mubr.bf16.vlgmr.msra.gmra.mrb[0].mxu1 %v6438_v30  ;;  %v8324_v39 = vunpack.i.h.bf16 %v8322_v33  ;;  %v8323_v49 = vunpack.i.l.bf16 %v8322_v33 }
0x1390   : > { %7144 = vmatprep.mubr.msk.bf16.mxu1 %vm1034_vm1, %v6441_v15  ;;  %v6380_v36 = vsel %vm1034_vm1, %v10957_v35, %v8319_v20  ;;  %v6379_v63 = vsel %vm1034_vm1, %v10910_v27, %v8318_v40  ;;  %v6598_v40 = vld [vmem:[%s9155_s5] sm:$0xff] }
0x1391   : > { %v8327_v16 = vpop.permute.xlu1 %8326  ;;  %v6383_v4 = vsel %vm6018_vm12, %v6375_v13, %v8323_v49  ;;  %v6384_v61 = vsel %vm6018_vm12, %v6376_v2, %v8324_v39  ;;  %v6599_v2 = vld [vmem:[%s9155_s5 + $0x8] sm:$0xff] }
0x1392   : > { %v8332_v14 = vpop.permute.xlu0 %8331  ;;  %v8329_v8 = vunpack.i.h.bf16 %v8327_v16  ;;  %v8328_v50 = vunpack.i.l.bf16 %v8327_v16 }
0x1393   : > { %v8334_v45 = vunpack.i.h.bf16 %v8332_v14  ;;  %v8333_v34 = vunpack.i.l.bf16 %v8332_v14 }
0x1394   : > { %v6387_v3 = vsel %vm6018_vm12, %v6379_v63, %v8328_v50  ;;  %v6388_v24 = vsel %vm6018_vm12, %v6380_v36, %v8329_v8  ;;  %v6602_v8 = vld [vmem:[%s9155_s5 + $0x20] sm:$0xff] }
0x1395   : > { %v8337_v5 = vpop.permute.xlu1 %8336  ;;  %v6392_v35 = vsel %vm6389_vm13, %v6383_v4, %v8333_v34  ;;  %v6393_v27 = vsel %vm6389_vm13, %v6384_v61, %v8334_v45  ;;  %v6603_v4 = vld [vmem:[%s9155_s5 + $0x28] sm:$0xff] }
0x1396   : > { %v8342_v29 = vpop.permute.xlu0 %8341  ;;  %v8339_v43 = vunpack.i.h.bf16 %v8337_v5  ;;  %v8338_v41 = vunpack.i.l.bf16 %v8337_v5 }
0x1397   : > { %v8344_v0 = vunpack.i.h.bf16 %v8342_v29  ;;  %v8343_v32 = vunpack.i.l.bf16 %v8342_v29  ;;  %v7131_v29 = vld [vmem:[%s11352_s21] ss:$0 sm:$0xff] }
0x1398   : > { %v6396_v18 = vsel %vm6389_vm13, %v6387_v3, %v8338_v41  ;;  %v6397_v21 = vsel %vm6389_vm13, %v6388_v24, %v8339_v43  ;;  %v6600_v3 = vld [vmem:[%s9155_s5 + $0x10] sm:$0xff] }
0x1399   : > { %v8347_v38 = vpop.permute.xlu1 %8346  ;;  %v6401_v62 = vsel %vm6398_vm14, %v6392_v35, %v8343_v32  ;;  %v6402_v42 = vsel %vm6398_vm14, %v6393_v27, %v8344_v0  ;;  %v6604_v27 = vld [vmem:[%s9155_s5 + $0x30] sm:$0xff] }
0x139a   : > { %v8352_v1 = vpop.permute.xlu0 %8351  ;;  %v8349_v11 = vunpack.i.h.bf16 %v8347_v38  ;;  %v8348_v6 = vunpack.i.l.bf16 %v8347_v38 }
0x139b   : > { %v8354_v26 = vunpack.i.h.bf16 %v8352_v1  ;;  %v8353_v9 = vunpack.i.l.bf16 %v8352_v1 }
0x139c   : > { %v6405_v53 = vsel %vm6398_vm14, %v6396_v18, %v8348_v6  ;;  %v6406_v54 = vsel %vm6398_vm14, %v6397_v21, %v8349_v11 }
0x139d   : > { %v8357_v57 = vpop.permute.xlu1 %8356  ;;  %v6410_v48 = vsel %vm6407_vm15, %v6401_v62, %v8353_v9  ;;  %v6411_v56 = vsel %vm6407_vm15, %v6402_v42, %v8354_v26 }
0x139e   : > { %v8362_v7 = vpop.permute.xlu0 %8361  ;;  %v8359_v55 = vunpack.i.h.bf16 %v8357_v57  ;;  %v8358_v19 = vunpack.i.l.bf16 %v8357_v57 }
0x139f   : > { %v8364_v51 = vunpack.i.h.bf16 %v8362_v7  ;;  %v8363_v28 = vunpack.i.l.bf16 %v8362_v7  ;;  %v6601_v7 = vld [vmem:[%s9155_s5 + $0x18] sm:$0xff] }
0x13a0   : > { %v6414_v47 = vsel %vm6407_vm15, %v6405_v53, %v8358_v19  ;;  %v6415_v58 = vsel %vm6407_vm15, %v6406_v54, %v8359_v55 }
0x13a1   : > { %v8367_v59 = vpop.permute.xlu1 %8366  ;;  %v6419_v37 = vsel %vm6416_vm0, %v6410_v48, %v8363_v28  ;;  %v6420_v17 = vsel %vm6416_vm0, %v6411_v56, %v8364_v51 }
0x13a2   : > { %v8369_v31 = vunpack.i.h.bf16 %v8367_v59  ;;  %v8368_v22 = vunpack.i.l.bf16 %v8367_v59  ;;  %v8372_v10 = vpop.permute.xlu0 %8371  ;;  %v6605_v59 = vld [vmem:[%s9155_s5 + $0x38] sm:$0xff] }
0x13a3   : > { %v8374_v25 = vunpack.i.h.bf16 %v8372_v10  ;;  %v8373_v52 = vunpack.i.l.bf16 %v8372_v10 }
0x13a4   : > { %v6423_v33 = vsel %vm6416_vm0, %v6414_v47, %v8368_v22  ;;  %v6424_v16 = vsel %vm6416_vm0, %v6415_v58, %v8369_v31 }
0x13a5   : > { %v8377_v44 = vpop.permute.xlu1 %8376  ;;  %v6428_v23 = vsel %vm6425_vm2, %v6419_v37, %v8373_v52  ;;  %v6429_v30 = vsel %vm6425_vm2, %v6420_v17, %v8374_v25 }
0x13a6   : > { %v8379_v12 = vunpack.i.h.bf16 %v8377_v44  ;;  %v8378_v15 = vunpack.i.l.bf16 %v8377_v44  ;;  %v6436_v14 = vpack.c.bf16 %v6429_v30, %v6428_v23 }
0x13a8   : > { %v6432_v5 = vsel %vm6425_vm2, %v6423_v33, %v8378_v15  ;;  %v6433_v46 = vsel %vm6425_vm2, %v6424_v16, %v8379_v12  ;;  %6574 = vmatmul.mubr.bf16.gmra.mrb[4].mxu0 %v6436_v14 }
0x13a9   : > { %v6440_v60 = vpack.c.bf16 %v6433_v46, %v6432_v5 }
0x13ab   : > { %6590 = vmatmul.mubr.bf16.gmra.mrb[4].mxu1 %v6440_v60 }
0x145f   : > { %v6567_v20 = vpop.f32.mrb[0].mxu0 }
0x1460   : > { %v6568_v39 = vadd.f32 %v7131_v29, %v6567_v20  ;;  %v6569_v49 = vpop.f32.mrb[1].mxu0 }
0x1461   : > { %v6570_v38 = vpop.f32.mrb[2].mxu0 }
0x1462   : > { %v6583_v13 = vpop.f32.mrb[0].mxu1  ;;  %v6606_v50 = vadd.f32 %v6598_v40, %v6568_v39  ;;  %v6571_v1 = vadd.f32 %v7131_v29, %v6570_v38  ;;  %v6572_v34 = vpop.f32.mrb[3].mxu0 }
0x1463   : > { %v6584_v45 = vadd.f32 %v7131_v29, %v6583_v13  ;;  %v6585_v36 = vpop.f32.mrb[1].mxu1 }
0x1464   : > { %v6586_v63 = vpop.f32.mrb[2].mxu1  ;;  %6614 = vst.msk [vmem:[%s9201_s27] sm:$0xff] %vm1034_vm1, %v6606_v50  ;;  %v6607_v61 = vadd.f32 %v6599_v2, %v6571_v1 }
0x1465   : > { %v6610_v57 = vadd.f32 %v6602_v8, %v6584_v45  ;;  %v6587_v43 = vadd.f32 %v7131_v29, %v6586_v63  ;;  %v6588_v41 = vpop.f32.mrb[3].mxu1 }
0x1466   : > { %6615 = vst.msk [vmem:[%s9201_s27 + $0x8] sm:$0xff] %vm1034_vm1, %v6607_v61 }
0x1467   : > { %6618 = vst.msk [vmem:[%s9201_s27 + $0x20] sm:$0xff] %vm1034_vm1, %v6610_v57  ;;  %v6611_v0 = vadd.f32 %v6603_v4, %v6587_v43 }
0x1469   : > { %6619 = vst.msk [vmem:[%s9201_s27 + $0x28] sm:$0xff] %vm1034_vm1, %v6611_v0 }
0x147b   : > { %v6575_v32 = vpop.f32.mrb[4].mxu0 }
0x147c   : > { %v6576_v24 = vadd.f32 %v7131_v29, %v6575_v32  ;;  %v6577_v11 = vpop.f32.mrb[5].mxu0 }
0x147d   : > { %v6578_v6 = vpop.f32.mrb[6].mxu0 }
0x147e   : > { %v6591_v35 = vpop.f32.mrb[4].mxu1  ;;  %v6608_v26 = vadd.f32 %v6600_v3, %v6576_v24  ;;  %v6579_v9 = vadd.f32 %v7131_v29, %v6578_v6  ;;  %v6580_v19 = vpop.f32.mrb[7].mxu0 }
0x147f   : > { %v6592_v55 = vadd.f32 %v7131_v29, %v6591_v35  ;;  %v6593_v51 = vpop.f32.mrb[5].mxu1 }
0x1480   : > { %v6594_v28 = vpop.f32.mrb[6].mxu1  ;;  %6616 = vst.msk [vmem:[%s9201_s27 + $0x10] sm:$0xff] %vm1034_vm1, %v6608_v26  ;;  %v6609_v18 = vadd.f32 %v6601_v7, %v6579_v9 }
0x1481   : > { %v6612_v21 = vadd.f32 %v6604_v27, %v6592_v55  ;;  %v6595_v62 = vadd.f32 %v7131_v29, %v6594_v28  ;;  %v6596_v42 = vpop.f32.mrb[7].mxu1 }
0x1482   : > { %6617 = vst.msk [vmem:[%s9201_s27 + $0x18] sm:$0xff] %vm1034_vm1, %v6609_v18 }
0x1483   : > { %6620 = vst.msk [vmem:[%s9201_s27 + $0x30] sm:$0xff] %vm1034_vm1, %v6612_v21  ;;  %v6613_v53 = vadd.f32 %v6605_v59, %v6595_v62 }
0x1485   : > { %6621 = vst.msk [vmem:[%s9201_s27 + $0x38] sm:$0xff] %vm1034_vm1, %v6613_v53 }
0x1486 PF: > { %s11353_s13 = sld [smem:[#allocation22_spill]]  ;;  %s11354_s0 = sld [smem:[#allocation18_spill]] }
0x1487   : > { %s11355_s30 = sld [smem:[#allocation19_spill]]  ;;  %s11356_s20 = sld [smem:[#allocation25_spill]] }
0x1488   : > { %s11357_s21 = sld [smem:[#allocation20_spill]]  ;;  %s11358_s1 = sld [smem:[#allocation21_spill]] }
0x1489   : > { %s11359_s22 = sld [smem:[#allocation23_spill]]  ;;  %s11360_s2 = sld [smem:[#allocation24_spill]] }
0x148c   : > { %s41_s23 = sadd.s32 1, %s11353_s13  }
0x148d   : > { %p38_p0 = scmp.ge.s32.totalorder %s41_s23, 6  }
0x148f   :  { %40 = sbr.rel (!%p38_p0) target bundleno = 31 (0x1f), region = 270 }
0x1496   :  { %6643 = vsyncpa [#allocation4], 1 }
0x1497   :  { %6645 = vsyncpa [#allocation4 + $0x1], 1 }
0x1498   :  { %6646 = vsyncpa [#allocation6], 1 }
0x1499   :  { %6648 = vsyncpa [#allocation6 + $0x1], 1 }
0x149a   :  { %6649 = vsyncpa [#allocation9], 1 }
0x149b   :  { %6651 = vsyncpa [#allocation9 + $0x1], 1 }
0x149c   :  { %6652 = vsyncpa [#allocation12], 1 }
0x149d   :  { %6654 = vsyncpa [#allocation12 + $0x1], 1 }

</bundles_post_ra>
